<compile_context>
chip_gen: v6e
topology: v6e:2x2x1
jax: 0.10.0
libtpu: 0.0.40
codegen_flags: <defaults>
</compile_context>

<pallas_src>
import math

import jax
import jax.numpy as jnp
from jax import lax
from jax.experimental import pallas as pl
from jax.experimental.pallas import tpu as pltpu

# ----------------------------- config ---------------------------------------
IMG, PATCH, IN_CH = 32, 16, 3
DIM, DEPTH, HEADS = 128, 2, 4
HEAD_DIM = DIM // HEADS
MLP = 4 * DIM
NCLS = 2
NCLS_PAD = 128                      # lane-dense padded head output
EPS = 1e-6                          # timm ViT LayerNorm eps
HP = IMG // PATCH
NP = HP * HP
T = NP + 1                          # tokens incl. cls (= 5)
CPP = IN_CH * PATCH * PATCH         # 768
ATTN_SCALE = 1.0 / math.sqrt(HEAD_DIM)

BB = 8                              # images fused per grid step (BB*T rows, multiple of 8)
MB = BB * T                         # fused row count per grid step (= 40)


# ----------------------------- shared math helpers ---------------------------
def _gelu(x):
    # tanh-approximation GELU: transcendental goes to the EUP slot instead of ~12 VALU ops.
    c = 0.7978845608028654  # sqrt(2/pi)
    return 0.5 * x * (1.0 + jnp.tanh(c * (x + 0.044715 * x * x * x)))


def _layernorm(x, g, b):
    mu = jnp.mean(x, axis=-1, keepdims=True)
    xc = x - mu
    var = jnp.mean(xc * xc, axis=-1, keepdims=True)      # biased, like torch LayerNorm
    return xc * lax.rsqrt(var + EPS) * g + b


def _mm(a, b):
    # bf16 MXU operands, f32 accumulate (mirrors the kernel's matmul numerics).
    return jnp.matmul(a.astype(jnp.bfloat16), b.astype(jnp.bfloat16),
                      preferred_element_type=jnp.float32)


# ----------------------------- fused kernel ----------------------------------
def _vit_kernel(patches_ref, patch_w_ref, tok_bias_ref, mask_ref,
                qkv_w_ref, qkv_b_ref, proj_w_ref,
                fc1_w_ref, fc1_b_ref, fc2_w_ref,
                vec_ref, final_ref, head_w_ref, out_ref):
    bf16 = jnp.bfloat16
    mask_bias = mask_ref[...]                                   # (MB, MB) additive 0 / -1e30

    # ---- patch embed; cls + pos + patch bias pre-folded into tok_bias ----
    x = jnp.dot(patches_ref[...], patch_w_ref[...],
                preferred_element_type=jnp.float32) + tok_bias_ref[...]       # (MB, DIM) f32

    for d in range(DEPTH):
        vec = vec_ref[d]                                        # (6, DIM): ln1_g, ln1_b, ln2_g, ln2_b, proj_b, fc2_b

        # ---- attention sublayer (block-diagonal over the BB fused images) ----
        h = _layernorm(x, vec[0:1], vec[1:2])
        qkv = jnp.dot(h.astype(bf16), qkv_w_ref[d],
                      preferred_element_type=jnp.float32) + qkv_b_ref[d]      # (MB, 3*DIM)
        q = qkv[:, 0:DIM].astype(bf16)                          # 1/sqrt(hd) pre-folded into qkv_w
        k = qkv[:, DIM:2 * DIM].astype(bf16)
        v = qkv[:, 2 * DIM:3 * DIM].astype(bf16)

        heads = []
        for hd in range(HEADS):
            lo = hd * HEAD_DIM
            hi = lo + HEAD_DIM
            # contract last dims (no explicit k transpose)
            s = lax.dot_general(q[:, lo:hi], k[:, lo:hi],
                                (((1,), (1,)), ((), ())),
                                preferred_element_type=jnp.float32)           # (MB, MB)
            s = s + mask_bias                                   # no cross-image attention
            s = s - jnp.max(s, axis=-1, keepdims=True)
            e = jnp.exp(s)
            p = e * pl.reciprocal(jnp.sum(e, axis=-1, keepdims=True), approx=True)
            heads.append(jnp.dot(p.astype(bf16), v[:, lo:hi],
                                 preferred_element_type=jnp.float32))         # (MB, HEAD_DIM)

        # concat heads -> ONE full-depth (128) projection matmul
        attn = jnp.concatenate(heads, axis=-1).astype(bf16)                   # (MB, DIM)
        x = x + jnp.dot(attn, proj_w_ref[d],
                        preferred_element_type=jnp.float32) + vec[4:5]

        # ---- MLP sublayer ----
        h = _layernorm(x, vec[2:3], vec[3:4])
        h = jnp.dot(h.astype(bf16), fc1_w_ref[d],
                    preferred_element_type=jnp.float32) + fc1_b_ref[d]
        h = _gelu(h)
        h = jnp.dot(h.astype(bf16), fc2_w_ref[d],
                    preferred_element_type=jnp.float32) + vec[5:6]
        x = x + h

    # ---- final norm + classifier head (all rows; cls rows picked in the wrapper) ----
    xn = _layernorm(x, final_ref[0:1], final_ref[1:2])
    out_ref[...] = jnp.dot(xn.astype(bf16), head_w_ref[...],
                           preferred_element_type=jnp.float32) + final_ref[2:3]


def _resident(shape):
    """Grid-invariant full-array block (kept resident in VMEM across grid steps)."""
    zeros = (0,) * len(shape)
    return pl.BlockSpec(shape, lambda b, _z=zeros: _z)


# ----------------------------- parameters ------------------------------------
def init_params(key):
    def nrm(k, shape, std=0.02):
        return jax.random.normal(k, shape, jnp.float32) * std

    keys = jax.random.split(key, 4 + DEPTH)
    qkv_w, proj_w, fc1_w, fc2_w = [], [], [], []
    for d in range(DEPTH):
        bk = jax.random.split(keys[4 + d], 4)
        qkv_w.append(nrm(bk[0], (DIM, 3 * DIM)))
        proj_w.append(nrm(bk[1], (DIM, DIM)))
        fc1_w.append(nrm(bk[2], (DIM, MLP)))
        fc2_w.append(nrm(bk[3], (MLP, DIM)))
    qkv_w = jnp.stack(qkv_w)                                    # (DEPTH, DIM, 3*DIM)

    # Fold attention scale into the q columns (init-time; zero per-call cost).
    q_scale = jnp.concatenate([jnp.full((DIM,), ATTN_SCALE, jnp.float32),
                               jnp.ones((2 * DIM,), jnp.float32)])
    qkv_w = qkv_w * q_scale[None, None, :]
    qkv_b = jnp.zeros((DEPTH, 1, 3 * DIM), jnp.float32)         # (scale fold is a no-op on zeros)

    cls = nrm(keys[1], (1, DIM))
    pos = nrm(keys[2], (T, DIM))
    patch_b = jnp.zeros((DIM,), jnp.float32)

    # cls token + pos embed + patch bias folded into one additive slab, tiled over BB images.
    tok_bias = pos + jnp.concatenate(
        [cls, jnp.broadcast_to(patch_b[None, :], (NP, DIM))], axis=0)         # (T, DIM)
    tok_bias = jnp.tile(tok_bias, (BB, 1))                                    # (MB, DIM)

    # Block-diagonal additive attention mask over the BB fused images.
    img_id = jnp.repeat(jnp.arange(BB), T)
    mask_bias = jnp.where(img_id[:, None] == img_id[None, :],
                          0.0, -1e30).astype(jnp.float32)                     # (MB, MB)

    head_w = jnp.zeros((DIM, NCLS_PAD), jnp.float32).at[:, :NCLS].set(
        nrm(keys[3], (DIM, NCLS)))

    # Packed per-layer small vectors: ln1_g, ln1_b, ln2_g, ln2_b, proj_b, fc2_b.
    vec = jnp.stack([jnp.ones((DEPTH, DIM), jnp.float32),
                     jnp.zeros((DEPTH, DIM), jnp.float32),
                     jnp.ones((DEPTH, DIM), jnp.float32),
                     jnp.zeros((DEPTH, DIM), jnp.float32),
                     jnp.zeros((DEPTH, DIM), jnp.float32),
                     jnp.zeros((DEPTH, DIM), jnp.float32)], axis=1)           # (DEPTH, 6, DIM)
    # Packed final small vectors: norm_g, norm_b, head_b (padded to 128 lanes).
    final_vec = jnp.concatenate([jnp.ones((1, DIM), jnp.float32),
                                 jnp.zeros((1, DIM), jnp.float32),
                                 jnp.zeros((1, NCLS_PAD), jnp.float32)], axis=0)  # (3, DIM)

    return {
        "patch_w": nrm(keys[0], (CPP, DIM)).astype(jnp.bfloat16),
        "patch_b": patch_b, "cls": cls, "pos": pos,
        "tok_bias": tok_bias, "mask_bias": mask_bias,
        "qkv_w": qkv_w.astype(jnp.bfloat16), "qkv_b": qkv_b,
        "proj_w": jnp.stack(proj_w).astype(jnp.bfloat16),
        "fc1_w": jnp.stack(fc1_w).astype(jnp.bfloat16),
        "fc1_b": jnp.zeros((DEPTH, 1, MLP), jnp.float32),
        "fc2_w": jnp.stack(fc2_w).astype(jnp.bfloat16),
        "vec": vec, "final_vec": final_vec,
        "head_w": head_w.astype(jnp.bfloat16),
    }


# ----------------------------- forward (single fused pallas_call) ------------
def vit_forward(params, x):
    B = x.shape[0]
    n_blk = -(-B // BB)
    B_pad = n_blk * BB

    # NCHW -> (B, Np, C*P*P) patch flatten (one tiny pre-kernel XLA copy).
    # TODO(synk): accept NHWC / fold permutation into patch_w at real 224x224 scale.
    patches = x.reshape(B, IN_CH, HP, PATCH, HP, PATCH)
    patches = patches.transpose(0, 2, 4, 1, 3, 5).reshape(B, NP, CPP)
    patches = jnp.pad(patches, ((0, B_pad - B), (1, 0), (0, 0)))   # cls-row slot + batch pad
    patches = patches.reshape(B_pad * T, CPP).astype(jnp.bfloat16)

    out = pl.pallas_call(
        _vit_kernel,
        out_shape=jax.ShapeDtypeStruct((B_pad * T, NCLS_PAD), jnp.float32),
        grid=(n_blk,),
        in_specs=[
            pl.BlockSpec((MB, CPP), lambda b: (b, 0)),   # patches: BB images per grid step
            _resident((CPP, DIM)),                       # patch_w (bf16)
            _resident((MB, DIM)),                        # tok_bias (cls+pos+patch_b, tiled)
            _resident((MB, MB)),                         # block-diagonal additive mask
            _resident((DEPTH, DIM, 3 * DIM)),            # qkv_w (bf16, q pre-scaled)
            _resident((DEPTH, 1, 3 * DIM)),              # qkv_b
            _resident((DEPTH, DIM, DIM)),                # proj_w (bf16)
            _resident((DEPTH, DIM, MLP)),                # fc1_w (bf16)
            _resident((DEPTH, 1, MLP)),                  # fc1_b
            _resident((DEPTH, MLP, DIM)),                # fc2_w (bf16)
            _resident((DEPTH, 6, DIM)),                  # packed LN gammas/betas + proj_b + fc2_b
            _resident((3, DIM)),                         # packed norm_g, norm_b, head_b
            _resident((DIM, NCLS_PAD)),                  # head_w (bf16, padded lanes)
        ],
        out_specs=pl.BlockSpec((MB, NCLS_PAD), lambda b: (b, 0)),
        compiler_params=pltpu.CompilerParams(
            dimension_semantics=("parallel",)),          # batch-block axis -> 2 TCs on v7x
    )(patches, params["patch_w"], params["tok_bias"], params["mask_bias"],
      params["qkv_w"], params["qkv_b"], params["proj_w"],
      params["fc1_w"], params["fc1_b"], params["fc2_w"],
      params["vec"], params["final_vec"], params["head_w"])

    return out.reshape(B_pad, T, NCLS_PAD)[:B, 0, :NCLS]


# ----------------------------- pure-JAX reference -----------------------------
def vit_reference(params, x):
    # Mirrors the kernel's numerics (bf16 MXU operands, f32 accumulate, tanh GELU,
    # scale folded into qkv_w) but uses standard per-image attention (no block mask).
    B = x.shape[0]
    patches = x.reshape(B, IN_CH, HP, PATCH, HP, PATCH)
    patches = patches.transpose(0, 2, 4, 1, 3, 5).reshape(B, NP, CPP).astype(jnp.bfloat16)
    tok = _mm(patches, params["patch_w"]) + params["patch_b"]
    cls = jnp.broadcast_to(params["cls"][None], (B, 1, DIM))
    xt = jnp.concatenate([cls, tok], axis=1) + params["pos"][None]
    for d in range(DEPTH):
        vec = params["vec"][d]
        h = _layernorm(xt, vec[0:1], vec[1:2])
        qkv = _mm(h, params["qkv_w"][d]) + params["qkv_b"][d]
        q, k, v = qkv[..., :DIM], qkv[..., DIM:2 * DIM], qkv[..., 2 * DIM:]
        q = q.reshape(B, T, HEADS, HEAD_DIM).transpose(0, 2, 1, 3)
        k = k.reshape(B, T, HEADS, HEAD_DIM).transpose(0, 2, 1, 3)
        v = v.reshape(B, T, HEADS, HEAD_DIM).transpose(0, 2, 1, 3)
        p = jax.nn.softmax(_mm(q, k.transpose(0, 1, 3, 2)), axis=-1)
        o = _mm(p, v).transpose(0, 2, 1, 3).reshape(B, T, DIM)
        xt = xt + _mm(o, params["proj_w"][d]) + vec[4:5]
        h = _layernorm(xt, vec[2:3], vec[3:4])
        h = _gelu(_mm(h, params["fc1_w"][d]) + params["fc1_b"][d])
        xt = xt + _mm(h, params["fc2_w"][d]) + vec[5:6]
    xn = _layernorm(xt, params["final_vec"][0:1], params["final_vec"][1:2])
    logits = _mm(xn[:, 0], params["head_w"]) + params["final_vec"][2:3]
    return logits[:, :NCLS]


# ----------------------------- main -------------------------------------------
if __name__ == "__main__":
    key = jax.random.PRNGKey(0)
    pkey, xkey = jax.random.split(key)
    params = init_params(pkey)
    B = 16                                                       # 2 grid steps of BB=8 images
    x = jax.random.normal(xkey, (B, IN_CH, IMG, IMG), jnp.float32)   # NCHW like PyTorch

    logits = jax.jit(vit_forward)(params, x)
    jax.block_until_ready(logits)
    assert logits.shape == (B, NCLS) and logits.dtype == jnp.float32

    ref = vit_reference(params, x)
    assert jnp.allclose(logits, ref, atol=2e-2, rtol=2e-2)
    print("KERNEL_OK")
</pallas_src>

<mosaic_0001>
module attributes {stable_mosaic.version = 11 : i64} {
  func.func @_vit_kernel(%arg0: i32, %arg1: memref<40x768xbf16, #tpu.memory_space<vmem>>, %arg2: memref<768x128xbf16, #tpu.memory_space<vmem>>, %arg3: memref<40x128xf32, #tpu.memory_space<vmem>>, %arg4: memref<40x40xf32, #tpu.memory_space<vmem>>, %arg5: memref<2x128x384xbf16, #tpu.memory_space<vmem>>, %arg6: memref<2x1x384xf32, #tpu.memory_space<vmem>>, %arg7: memref<2x128x128xbf16, #tpu.memory_space<vmem>>, %arg8: memref<2x128x512xbf16, #tpu.memory_space<vmem>>, %arg9: memref<2x1x512xf32, #tpu.memory_space<vmem>>, %arg10: memref<2x512x128xbf16, #tpu.memory_space<vmem>>, %arg11: memref<2x6x128xf32, #tpu.memory_space<vmem>>, %arg12: memref<3x128xf32, #tpu.memory_space<vmem>>, %arg13: memref<128x128xbf16, #tpu.memory_space<vmem>>, %arg14: memref<40x128xf32, #tpu.memory_space<vmem>>) attributes {dimension_semantics = [#tpu.dimension_semantics<parallel>], iteration_bounds = array<i64: 2>, scalar_prefetch = 0 : i64, scratch_operands = 0 : i64, tpu.core_type = #tpu.core_type<tc>, window_params = [{transform_indices = @transform_0, window_bounds = array<i64: 40, 768>}, {pipeline_mode = #tpu.pipeline_mode<synchronous>, transform_indices = @transform_1, window_bounds = array<i64: 768, 128>}, {pipeline_mode = #tpu.pipeline_mode<synchronous>, transform_indices = @transform_2, window_bounds = array<i64: 40, 128>}, {pipeline_mode = #tpu.pipeline_mode<synchronous>, transform_indices = @transform_3, window_bounds = array<i64: 40, 40>}, {pipeline_mode = #tpu.pipeline_mode<synchronous>, transform_indices = @transform_4, window_bounds = array<i64: 2, 128, 384>}, {pipeline_mode = #tpu.pipeline_mode<synchronous>, transform_indices = @transform_5, window_bounds = array<i64: 2, 1, 384>}, {pipeline_mode = #tpu.pipeline_mode<synchronous>, transform_indices = @transform_6, window_bounds = array<i64: 2, 128, 128>}, {pipeline_mode = #tpu.pipeline_mode<synchronous>, transform_indices = @transform_7, window_bounds = array<i64: 2, 128, 512>}, {pipeline_mode = #tpu.pipeline_mode<synchronous>, transform_indices = @transform_8, window_bounds = array<i64: 2, 1, 512>}, {pipeline_mode = #tpu.pipeline_mode<synchronous>, transform_indices = @transform_9, window_bounds = array<i64: 2, 512, 128>}, {pipeline_mode = #tpu.pipeline_mode<synchronous>, transform_indices = @transform_10, window_bounds = array<i64: 2, 6, 128>}, {pipeline_mode = #tpu.pipeline_mode<synchronous>, transform_indices = @transform_11, window_bounds = array<i64: 3, 128>}, {pipeline_mode = #tpu.pipeline_mode<synchronous>, transform_indices = @transform_12, window_bounds = array<i64: 128, 128>}, {transform_indices = @transform_13, window_bounds = array<i64: 40, 128>}]} {
    %c0 = arith.constant 0 : index
    %c0_0 = arith.constant 0 : index
    %0 = vector.load %arg4[%c0, %c0_0] : memref<40x40xf32, #tpu.memory_space<vmem>>, vector<40x40xf32>
    %c0_1 = arith.constant 0 : index
    %c0_2 = arith.constant 0 : index
    %1 = vector.load %arg1[%c0_1, %c0_2] : memref<40x768xbf16, #tpu.memory_space<vmem>>, vector<40x768xbf16>
    %c0_3 = arith.constant 0 : index
    %c0_4 = arith.constant 0 : index
    %2 = vector.load %arg2[%c0_3, %c0_4] : memref<768x128xbf16, #tpu.memory_space<vmem>>, vector<768x128xbf16>
    %cst = arith.constant dense<0.000000e+00> : vector<40x128xf32>
    %3 = tpu.matmul %1, %2, %cst {dimension_numbers = #tpu.dot_dimension_numbers<[1], [0], [0], [1], [0, 0, 1, 1], [], []>} : vector<40x768xbf16>, vector<768x128xbf16>, vector<40x128xf32> -> vector<40x128xf32>
    %c0_5 = arith.constant 0 : index
    %c0_6 = arith.constant 0 : index
    %4 = vector.load %arg3[%c0_5, %c0_6] : memref<40x128xf32, #tpu.memory_space<vmem>>, vector<40x128xf32>
    %5 = arith.addf %3, %4 : vector<40x128xf32>
    %c0_7 = arith.constant 0 : index
    %c0_8 = arith.constant 0 : index
    %c0_9 = arith.constant 0 : index
    %6 = vector.load %arg11[%c0_7, %c0_8, %c0_9] : memref<2x6x128xf32, #tpu.memory_space<vmem>>, vector<1x6x128xf32>
    %7 = vector.shape_cast %6 : vector<1x6x128xf32> to vector<6x128xf32>
    %8 = vector.extract_strided_slice %7 {offsets = [0, 0], sizes = [1, 128], strides = [1, 1]} : vector<6x128xf32> to vector<1x128xf32>
    %9 = vector.extract_strided_slice %7 {offsets = [1, 0], sizes = [1, 128], strides = [1, 1]} : vector<6x128xf32> to vector<1x128xf32>
    %cst_10 = arith.constant dense<0.000000e+00> : vector<40xf32>
    %10 = vector.multi_reduction <add>, %5, %cst_10 [1] : vector<40x128xf32> to vector<40xf32>
    %11 = vector.shape_cast %10 : vector<40xf32> to vector<40x1xf32>
    %cst_11 = arith.constant 1.280000e+02 : f32
    %12 = vector.broadcast %cst_11 : f32 to vector<40x1xf32>
    %13 = arith.divf %11, %12 : vector<40x1xf32>
    %14 = vector.broadcast %13 : vector<40x1xf32> to vector<40x128xf32>
    %15 = arith.subf %5, %14 : vector<40x128xf32>
    %16 = arith.mulf %15, %15 : vector<40x128xf32>
    %cst_12 = arith.constant dense<0.000000e+00> : vector<40xf32>
    %17 = vector.multi_reduction <add>, %16, %cst_12 [1] : vector<40x128xf32> to vector<40xf32>
    %18 = vector.shape_cast %17 : vector<40xf32> to vector<40x1xf32>
    %cst_13 = arith.constant 1.280000e+02 : f32
    %19 = vector.broadcast %cst_13 : f32 to vector<40x1xf32>
    %20 = arith.divf %18, %19 : vector<40x1xf32>
    %cst_14 = arith.constant 9.99999997E-7 : f32
    %21 = vector.broadcast %cst_14 : f32 to vector<40x1xf32>
    %22 = arith.addf %20, %21 : vector<40x1xf32>
    %23 = math.rsqrt %22 : vector<40x1xf32>
    %24 = vector.broadcast %23 : vector<40x1xf32> to vector<40x128xf32>
    %25 = arith.mulf %15, %24 : vector<40x128xf32>
    %26 = vector.broadcast %8 : vector<1x128xf32> to vector<40x128xf32>
    %27 = arith.mulf %25, %26 : vector<40x128xf32>
    %28 = vector.broadcast %9 : vector<1x128xf32> to vector<40x128xf32>
    %29 = arith.addf %27, %28 : vector<40x128xf32>
    %30 = arith.truncf %29 : vector<40x128xf32> to vector<40x128xbf16>
    %c0_15 = arith.constant 0 : index
    %c0_16 = arith.constant 0 : index
    %c0_17 = arith.constant 0 : index
    %31 = vector.load %arg5[%c0_15, %c0_16, %c0_17] : memref<2x128x384xbf16, #tpu.memory_space<vmem>>, vector<1x128x384xbf16>
    %32 = vector.shape_cast %31 : vector<1x128x384xbf16> to vector<128x384xbf16>
    %cst_18 = arith.constant dense<0.000000e+00> : vector<40x384xf32>
    %33 = tpu.matmul %30, %32, %cst_18 {dimension_numbers = #tpu.dot_dimension_numbers<[1], [0], [0], [1], [0, 0, 1, 1], [], []>} : vector<40x128xbf16>, vector<128x384xbf16>, vector<40x384xf32> -> vector<40x384xf32>
    %c0_19 = arith.constant 0 : index
    %c0_20 = arith.constant 0 : index
    %c0_21 = arith.constant 0 : index
    %34 = vector.load %arg6[%c0_19, %c0_20, %c0_21] : memref<2x1x384xf32, #tpu.memory_space<vmem>>, vector<1x1x384xf32>
    %35 = vector.shape_cast %34 : vector<1x1x384xf32> to vector<1x384xf32>
    %36 = vector.broadcast %35 : vector<1x384xf32> to vector<40x384xf32>
    %37 = arith.addf %33, %36 : vector<40x384xf32>
    %38 = vector.extract_strided_slice %37 {offsets = [0, 0], sizes = [40, 128], strides = [1, 1]} : vector<40x384xf32> to vector<40x128xf32>
    %39 = arith.truncf %38 : vector<40x128xf32> to vector<40x128xbf16>
    %40 = vector.extract_strided_slice %37 {offsets = [0, 128], sizes = [40, 128], strides = [1, 1]} : vector<40x384xf32> to vector<40x128xf32>
    %41 = arith.truncf %40 : vector<40x128xf32> to vector<40x128xbf16>
    %42 = vector.extract_strided_slice %37 {offsets = [0, 256], sizes = [40, 128], strides = [1, 1]} : vector<40x384xf32> to vector<40x128xf32>
    %43 = arith.truncf %42 : vector<40x128xf32> to vector<40x128xbf16>
    %44 = vector.extract_strided_slice %39 {offsets = [0, 0], sizes = [40, 32], strides = [1, 1]} : vector<40x128xbf16> to vector<40x32xbf16>
    %45 = vector.extract_strided_slice %41 {offsets = [0, 0], sizes = [40, 32], strides = [1, 1]} : vector<40x128xbf16> to vector<40x32xbf16>
    %cst_22 = arith.constant dense<0.000000e+00> : vector<40x40xf32>
    %46 = tpu.matmul %44, %45, %cst_22 {dimension_numbers = #tpu.dot_dimension_numbers<[1], [1], [0], [0], [0, 0, 1, 0], [], []>} : vector<40x32xbf16>, vector<40x32xbf16>, vector<40x40xf32> -> vector<40x40xf32>
    %47 = arith.addf %46, %0 : vector<40x40xf32>
    %cst_23 = arith.constant dense<0xFF800000> : vector<40xf32>
    %48 = vector.multi_reduction <maximumf>, %47, %cst_23 [1] : vector<40x40xf32> to vector<40xf32>
    %49 = vector.shape_cast %48 : vector<40xf32> to vector<40x1xf32>
    %50 = vector.broadcast %49 : vector<40x1xf32> to vector<40x40xf32>
    %51 = arith.subf %47, %50 : vector<40x40xf32>
    %52 = math.exp %51 : vector<40x40xf32>
    %cst_24 = arith.constant dense<0.000000e+00> : vector<40xf32>
    %53 = vector.multi_reduction <add>, %52, %cst_24 [1] : vector<40x40xf32> to vector<40xf32>
    %54 = vector.shape_cast %53 : vector<40xf32> to vector<40x1xf32>
    %55 = tpu.reciprocal %54 {approx = true} : vector<40x1xf32> -> vector<40x1xf32>
    %56 = vector.broadcast %55 : vector<40x1xf32> to vector<40x40xf32>
    %57 = arith.mulf %52, %56 : vector<40x40xf32>
    %58 = arith.truncf %57 : vector<40x40xf32> to vector<40x40xbf16>
    %59 = vector.extract_strided_slice %43 {offsets = [0, 0], sizes = [40, 32], strides = [1, 1]} : vector<40x128xbf16> to vector<40x32xbf16>
    %cst_25 = arith.constant dense<0.000000e+00> : vector<40x32xf32>
    %60 = tpu.matmul %58, %59, %cst_25 {dimension_numbers = #tpu.dot_dimension_numbers<[1], [0], [0], [1], [0, 0, 1, 1], [], []>} : vector<40x40xbf16>, vector<40x32xbf16>, vector<40x32xf32> -> vector<40x32xf32>
    %61 = vector.extract_strided_slice %39 {offsets = [0, 32], sizes = [40, 32], strides = [1, 1]} : vector<40x128xbf16> to vector<40x32xbf16>
    %62 = vector.extract_strided_slice %41 {offsets = [0, 32], sizes = [40, 32], strides = [1, 1]} : vector<40x128xbf16> to vector<40x32xbf16>
    %cst_26 = arith.constant dense<0.000000e+00> : vector<40x40xf32>
    %63 = tpu.matmul %61, %62, %cst_26 {dimension_numbers = #tpu.dot_dimension_numbers<[1], [1], [0], [0], [0, 0, 1, 0], [], []>} : vector<40x32xbf16>, vector<40x32xbf16>, vector<40x40xf32> -> vector<40x40xf32>
    %64 = arith.addf %63, %0 : vector<40x40xf32>
    %cst_27 = arith.constant dense<0xFF800000> : vector<40xf32>
    %65 = vector.multi_reduction <maximumf>, %64, %cst_27 [1] : vector<40x40xf32> to vector<40xf32>
    %66 = vector.shape_cast %65 : vector<40xf32> to vector<40x1xf32>
    %67 = vector.broadcast %66 : vector<40x1xf32> to vector<40x40xf32>
    %68 = arith.subf %64, %67 : vector<40x40xf32>
    %69 = math.exp %68 : vector<40x40xf32>
    %cst_28 = arith.constant dense<0.000000e+00> : vector<40xf32>
    %70 = vector.multi_reduction <add>, %69, %cst_28 [1] : vector<40x40xf32> to vector<40xf32>
    %71 = vector.shape_cast %70 : vector<40xf32> to vector<40x1xf32>
    %72 = tpu.reciprocal %71 {approx = true} : vector<40x1xf32> -> vector<40x1xf32>
    %73 = vector.broadcast %72 : vector<40x1xf32> to vector<40x40xf32>
    %74 = arith.mulf %69, %73 : vector<40x40xf32>
    %75 = arith.truncf %74 : vector<40x40xf32> to vector<40x40xbf16>
    %76 = vector.extract_strided_slice %43 {offsets = [0, 32], sizes = [40, 32], strides = [1, 1]} : vector<40x128xbf16> to vector<40x32xbf16>
    %cst_29 = arith.constant dense<0.000000e+00> : vector<40x32xf32>
    %77 = tpu.matmul %75, %76, %cst_29 {dimension_numbers = #tpu.dot_dimension_numbers<[1], [0], [0], [1], [0, 0, 1, 1], [], []>} : vector<40x40xbf16>, vector<40x32xbf16>, vector<40x32xf32> -> vector<40x32xf32>
    %78 = vector.extract_strided_slice %39 {offsets = [0, 64], sizes = [40, 32], strides = [1, 1]} : vector<40x128xbf16> to vector<40x32xbf16>
    %79 = vector.extract_strided_slice %41 {offsets = [0, 64], sizes = [40, 32], strides = [1, 1]} : vector<40x128xbf16> to vector<40x32xbf16>
    %cst_30 = arith.constant dense<0.000000e+00> : vector<40x40xf32>
    %80 = tpu.matmul %78, %79, %cst_30 {dimension_numbers = #tpu.dot_dimension_numbers<[1], [1], [0], [0], [0, 0, 1, 0], [], []>} : vector<40x32xbf16>, vector<40x32xbf16>, vector<40x40xf32> -> vector<40x40xf32>
    %81 = arith.addf %80, %0 : vector<40x40xf32>
    %cst_31 = arith.constant dense<0xFF800000> : vector<40xf32>
    %82 = vector.multi_reduction <maximumf>, %81, %cst_31 [1] : vector<40x40xf32> to vector<40xf32>
    %83 = vector.shape_cast %82 : vector<40xf32> to vector<40x1xf32>
    %84 = vector.broadcast %83 : vector<40x1xf32> to vector<40x40xf32>
    %85 = arith.subf %81, %84 : vector<40x40xf32>
    %86 = math.exp %85 : vector<40x40xf32>
    %cst_32 = arith.constant dense<0.000000e+00> : vector<40xf32>
    %87 = vector.multi_reduction <add>, %86, %cst_32 [1] : vector<40x40xf32> to vector<40xf32>
    %88 = vector.shape_cast %87 : vector<40xf32> to vector<40x1xf32>
    %89 = tpu.reciprocal %88 {approx = true} : vector<40x1xf32> -> vector<40x1xf32>
    %90 = vector.broadcast %89 : vector<40x1xf32> to vector<40x40xf32>
    %91 = arith.mulf %86, %90 : vector<40x40xf32>
    %92 = arith.truncf %91 : vector<40x40xf32> to vector<40x40xbf16>
    %93 = vector.extract_strided_slice %43 {offsets = [0, 64], sizes = [40, 32], strides = [1, 1]} : vector<40x128xbf16> to vector<40x32xbf16>
    %cst_33 = arith.constant dense<0.000000e+00> : vector<40x32xf32>
    %94 = tpu.matmul %92, %93, %cst_33 {dimension_numbers = #tpu.dot_dimension_numbers<[1], [0], [0], [1], [0, 0, 1, 1], [], []>} : vector<40x40xbf16>, vector<40x32xbf16>, vector<40x32xf32> -> vector<40x32xf32>
    %95 = vector.extract_strided_slice %39 {offsets = [0, 96], sizes = [40, 32], strides = [1, 1]} : vector<40x128xbf16> to vector<40x32xbf16>
    %96 = vector.extract_strided_slice %41 {offsets = [0, 96], sizes = [40, 32], strides = [1, 1]} : vector<40x128xbf16> to vector<40x32xbf16>
    %cst_34 = arith.constant dense<0.000000e+00> : vector<40x40xf32>
    %97 = tpu.matmul %95, %96, %cst_34 {dimension_numbers = #tpu.dot_dimension_numbers<[1], [1], [0], [0], [0, 0, 1, 0], [], []>} : vector<40x32xbf16>, vector<40x32xbf16>, vector<40x40xf32> -> vector<40x40xf32>
    %98 = arith.addf %97, %0 : vector<40x40xf32>
    %cst_35 = arith.constant dense<0xFF800000> : vector<40xf32>
    %99 = vector.multi_reduction <maximumf>, %98, %cst_35 [1] : vector<40x40xf32> to vector<40xf32>
    %100 = vector.shape_cast %99 : vector<40xf32> to vector<40x1xf32>
    %101 = vector.broadcast %100 : vector<40x1xf32> to vector<40x40xf32>
    %102 = arith.subf %98, %101 : vector<40x40xf32>
    %103 = math.exp %102 : vector<40x40xf32>
    %cst_36 = arith.constant dense<0.000000e+00> : vector<40xf32>
    %104 = vector.multi_reduction <add>, %103, %cst_36 [1] : vector<40x40xf32> to vector<40xf32>
    %105 = vector.shape_cast %104 : vector<40xf32> to vector<40x1xf32>
    %106 = tpu.reciprocal %105 {approx = true} : vector<40x1xf32> -> vector<40x1xf32>
    %107 = vector.broadcast %106 : vector<40x1xf32> to vector<40x40xf32>
    %108 = arith.mulf %103, %107 : vector<40x40xf32>
    %109 = arith.truncf %108 : vector<40x40xf32> to vector<40x40xbf16>
    %110 = vector.extract_strided_slice %43 {offsets = [0, 96], sizes = [40, 32], strides = [1, 1]} : vector<40x128xbf16> to vector<40x32xbf16>
    %cst_37 = arith.constant dense<0.000000e+00> : vector<40x32xf32>
    %111 = tpu.matmul %109, %110, %cst_37 {dimension_numbers = #tpu.dot_dimension_numbers<[1], [0], [0], [1], [0, 0, 1, 1], [], []>} : vector<40x40xbf16>, vector<40x32xbf16>, vector<40x32xf32> -> vector<40x32xf32>
    %112 = tpu.concatenate %60, %77, %94, %111 in 1 : vector<40x32xf32>, vector<40x32xf32>, vector<40x32xf32>, vector<40x32xf32> -> vector<40x128xf32>
    %113 = arith.truncf %112 : vector<40x128xf32> to vector<40x128xbf16>
    %c0_38 = arith.constant 0 : index
    %c0_39 = arith.constant 0 : index
    %c0_40 = arith.constant 0 : index
    %114 = vector.load %arg7[%c0_38, %c0_39, %c0_40] : memref<2x128x128xbf16, #tpu.memory_space<vmem>>, vector<1x128x128xbf16>
    %115 = vector.shape_cast %114 : vector<1x128x128xbf16> to vector<128x128xbf16>
    %cst_41 = arith.constant dense<0.000000e+00> : vector<40x128xf32>
    %116 = tpu.matmul %113, %115, %cst_41 {dimension_numbers = #tpu.dot_dimension_numbers<[1], [0], [0], [1], [0, 0, 1, 1], [], []>} : vector<40x128xbf16>, vector<128x128xbf16>, vector<40x128xf32> -> vector<40x128xf32>
    %117 = arith.addf %5, %116 : vector<40x128xf32>
    %118 = vector.extract_strided_slice %7 {offsets = [4, 0], sizes = [1, 128], strides = [1, 1]} : vector<6x128xf32> to vector<1x128xf32>
    %119 = vector.broadcast %118 : vector<1x128xf32> to vector<40x128xf32>
    %120 = arith.addf %117, %119 : vector<40x128xf32>
    %121 = vector.extract_strided_slice %7 {offsets = [2, 0], sizes = [1, 128], strides = [1, 1]} : vector<6x128xf32> to vector<1x128xf32>
    %122 = vector.extract_strided_slice %7 {offsets = [3, 0], sizes = [1, 128], strides = [1, 1]} : vector<6x128xf32> to vector<1x128xf32>
    %cst_42 = arith.constant dense<0.000000e+00> : vector<40xf32>
    %123 = vector.multi_reduction <add>, %120, %cst_42 [1] : vector<40x128xf32> to vector<40xf32>
    %124 = vector.shape_cast %123 : vector<40xf32> to vector<40x1xf32>
    %cst_43 = arith.constant 1.280000e+02 : f32
    %125 = vector.broadcast %cst_43 : f32 to vector<40x1xf32>
    %126 = arith.divf %124, %125 : vector<40x1xf32>
    %127 = vector.broadcast %126 : vector<40x1xf32> to vector<40x128xf32>
    %128 = arith.subf %120, %127 : vector<40x128xf32>
    %129 = arith.mulf %128, %128 : vector<40x128xf32>
    %cst_44 = arith.constant dense<0.000000e+00> : vector<40xf32>
    %130 = vector.multi_reduction <add>, %129, %cst_44 [1] : vector<40x128xf32> to vector<40xf32>
    %131 = vector.shape_cast %130 : vector<40xf32> to vector<40x1xf32>
    %cst_45 = arith.constant 1.280000e+02 : f32
    %132 = vector.broadcast %cst_45 : f32 to vector<40x1xf32>
    %133 = arith.divf %131, %132 : vector<40x1xf32>
    %cst_46 = arith.constant 9.99999997E-7 : f32
    %134 = vector.broadcast %cst_46 : f32 to vector<40x1xf32>
    %135 = arith.addf %133, %134 : vector<40x1xf32>
    %136 = math.rsqrt %135 : vector<40x1xf32>
    %137 = vector.broadcast %136 : vector<40x1xf32> to vector<40x128xf32>
    %138 = arith.mulf %128, %137 : vector<40x128xf32>
    %139 = vector.broadcast %121 : vector<1x128xf32> to vector<40x128xf32>
    %140 = arith.mulf %138, %139 : vector<40x128xf32>
    %141 = vector.broadcast %122 : vector<1x128xf32> to vector<40x128xf32>
    %142 = arith.addf %140, %141 : vector<40x128xf32>
    %143 = arith.truncf %142 : vector<40x128xf32> to vector<40x128xbf16>
    %c0_47 = arith.constant 0 : index
    %c0_48 = arith.constant 0 : index
    %c0_49 = arith.constant 0 : index
    %144 = vector.load %arg8[%c0_47, %c0_48, %c0_49] : memref<2x128x512xbf16, #tpu.memory_space<vmem>>, vector<1x128x512xbf16>
    %145 = vector.shape_cast %144 : vector<1x128x512xbf16> to vector<128x512xbf16>
    %cst_50 = arith.constant dense<0.000000e+00> : vector<40x512xf32>
    %146 = tpu.matmul %143, %145, %cst_50 {dimension_numbers = #tpu.dot_dimension_numbers<[1], [0], [0], [1], [0, 0, 1, 1], [], []>} : vector<40x128xbf16>, vector<128x512xbf16>, vector<40x512xf32> -> vector<40x512xf32>
    %c0_51 = arith.constant 0 : index
    %c0_52 = arith.constant 0 : index
    %c0_53 = arith.constant 0 : index
    %147 = vector.load %arg9[%c0_51, %c0_52, %c0_53] : memref<2x1x512xf32, #tpu.memory_space<vmem>>, vector<1x1x512xf32>
    %148 = vector.shape_cast %147 : vector<1x1x512xf32> to vector<1x512xf32>
    %149 = vector.broadcast %148 : vector<1x512xf32> to vector<40x512xf32>
    %150 = arith.addf %146, %149 : vector<40x512xf32>
    %cst_54 = arith.constant 5.000000e-01 : f32
    %151 = vector.broadcast %cst_54 : f32 to vector<40x512xf32>
    %152 = arith.mulf %151, %150 : vector<40x512xf32>
    %cst_55 = arith.constant 4.471500e-02 : f32
    %153 = vector.broadcast %cst_55 : f32 to vector<40x512xf32>
    %154 = arith.mulf %153, %150 : vector<40x512xf32>
    %155 = arith.mulf %154, %150 : vector<40x512xf32>
    %156 = arith.mulf %155, %150 : vector<40x512xf32>
    %157 = arith.addf %150, %156 : vector<40x512xf32>
    %cst_56 = arith.constant 0.797884583 : f32
    %158 = vector.broadcast %cst_56 : f32 to vector<40x512xf32>
    %159 = arith.mulf %158, %157 : vector<40x512xf32>
    %160 = math.tanh %159 : vector<40x512xf32>
    %cst_57 = arith.constant 1.000000e+00 : f32
    %161 = vector.broadcast %cst_57 : f32 to vector<40x512xf32>
    %162 = arith.addf %161, %160 : vector<40x512xf32>
    %163 = arith.mulf %152, %162 : vector<40x512xf32>
    %164 = arith.truncf %163 : vector<40x512xf32> to vector<40x512xbf16>
    %c0_58 = arith.constant 0 : index
    %c0_59 = arith.constant 0 : index
    %c0_60 = arith.constant 0 : index
    %165 = vector.load %arg10[%c0_58, %c0_59, %c0_60] : memref<2x512x128xbf16, #tpu.memory_space<vmem>>, vector<1x512x128xbf16>
    %166 = vector.shape_cast %165 : vector<1x512x128xbf16> to vector<512x128xbf16>
    %cst_61 = arith.constant dense<0.000000e+00> : vector<40x128xf32>
    %167 = tpu.matmul %164, %166, %cst_61 {dimension_numbers = #tpu.dot_dimension_numbers<[1], [0], [0], [1], [0, 0, 1, 1], [], []>} : vector<40x512xbf16>, vector<512x128xbf16>, vector<40x128xf32> -> vector<40x128xf32>
    %168 = vector.extract_strided_slice %7 {offsets = [5, 0], sizes = [1, 128], strides = [1, 1]} : vector<6x128xf32> to vector<1x128xf32>
    %169 = vector.broadcast %168 : vector<1x128xf32> to vector<40x128xf32>
    %170 = arith.addf %167, %169 : vector<40x128xf32>
    %171 = arith.addf %120, %170 : vector<40x128xf32>
    %c1 = arith.constant 1 : index
    %c0_62 = arith.constant 0 : index
    %c0_63 = arith.constant 0 : index
    %172 = vector.load %arg11[%c1, %c0_62, %c0_63] : memref<2x6x128xf32, #tpu.memory_space<vmem>>, vector<1x6x128xf32>
    %173 = vector.shape_cast %172 : vector<1x6x128xf32> to vector<6x128xf32>
    %174 = vector.extract_strided_slice %173 {offsets = [0, 0], sizes = [1, 128], strides = [1, 1]} : vector<6x128xf32> to vector<1x128xf32>
    %175 = vector.extract_strided_slice %173 {offsets = [1, 0], sizes = [1, 128], strides = [1, 1]} : vector<6x128xf32> to vector<1x128xf32>
    %cst_64 = arith.constant dense<0.000000e+00> : vector<40xf32>
    %176 = vector.multi_reduction <add>, %171, %cst_64 [1] : vector<40x128xf32> to vector<40xf32>
    %177 = vector.shape_cast %176 : vector<40xf32> to vector<40x1xf32>
    %cst_65 = arith.constant 1.280000e+02 : f32
    %178 = vector.broadcast %cst_65 : f32 to vector<40x1xf32>
    %179 = arith.divf %177, %178 : vector<40x1xf32>
    %180 = vector.broadcast %179 : vector<40x1xf32> to vector<40x128xf32>
    %181 = arith.subf %171, %180 : vector<40x128xf32>
    %182 = arith.mulf %181, %181 : vector<40x128xf32>
    %cst_66 = arith.constant dense<0.000000e+00> : vector<40xf32>
    %183 = vector.multi_reduction <add>, %182, %cst_66 [1] : vector<40x128xf32> to vector<40xf32>
    %184 = vector.shape_cast %183 : vector<40xf32> to vector<40x1xf32>
    %cst_67 = arith.constant 1.280000e+02 : f32
    %185 = vector.broadcast %cst_67 : f32 to vector<40x1xf32>
    %186 = arith.divf %184, %185 : vector<40x1xf32>
    %cst_68 = arith.constant 9.99999997E-7 : f32
    %187 = vector.broadcast %cst_68 : f32 to vector<40x1xf32>
    %188 = arith.addf %186, %187 : vector<40x1xf32>
    %189 = math.rsqrt %188 : vector<40x1xf32>
    %190 = vector.broadcast %189 : vector<40x1xf32> to vector<40x128xf32>
    %191 = arith.mulf %181, %190 : vector<40x128xf32>
    %192 = vector.broadcast %174 : vector<1x128xf32> to vector<40x128xf32>
    %193 = arith.mulf %191, %192 : vector<40x128xf32>
    %194 = vector.broadcast %175 : vector<1x128xf32> to vector<40x128xf32>
    %195 = arith.addf %193, %194 : vector<40x128xf32>
    %196 = arith.truncf %195 : vector<40x128xf32> to vector<40x128xbf16>
    %c1_69 = arith.constant 1 : index
    %c0_70 = arith.constant 0 : index
    %c0_71 = arith.constant 0 : index
    %197 = vector.load %arg5[%c1_69, %c0_70, %c0_71] : memref<2x128x384xbf16, #tpu.memory_space<vmem>>, vector<1x128x384xbf16>
    %198 = vector.shape_cast %197 : vector<1x128x384xbf16> to vector<128x384xbf16>
    %cst_72 = arith.constant dense<0.000000e+00> : vector<40x384xf32>
    %199 = tpu.matmul %196, %198, %cst_72 {dimension_numbers = #tpu.dot_dimension_numbers<[1], [0], [0], [1], [0, 0, 1, 1], [], []>} : vector<40x128xbf16>, vector<128x384xbf16>, vector<40x384xf32> -> vector<40x384xf32>
    %c1_73 = arith.constant 1 : index
    %c0_74 = arith.constant 0 : index
    %c0_75 = arith.constant 0 : index
    %200 = vector.load %arg6[%c1_73, %c0_74, %c0_75] : memref<2x1x384xf32, #tpu.memory_space<vmem>>, vector<1x1x384xf32>
    %201 = vector.shape_cast %200 : vector<1x1x384xf32> to vector<1x384xf32>
    %202 = vector.broadcast %201 : vector<1x384xf32> to vector<40x384xf32>
    %203 = arith.addf %199, %202 : vector<40x384xf32>
    %204 = vector.extract_strided_slice %203 {offsets = [0, 0], sizes = [40, 128], strides = [1, 1]} : vector<40x384xf32> to vector<40x128xf32>
    %205 = arith.truncf %204 : vector<40x128xf32> to vector<40x128xbf16>
    %206 = vector.extract_strided_slice %203 {offsets = [0, 128], sizes = [40, 128], strides = [1, 1]} : vector<40x384xf32> to vector<40x128xf32>
    %207 = arith.truncf %206 : vector<40x128xf32> to vector<40x128xbf16>
    %208 = vector.extract_strided_slice %203 {offsets = [0, 256], sizes = [40, 128], strides = [1, 1]} : vector<40x384xf32> to vector<40x128xf32>
    %209 = arith.truncf %208 : vector<40x128xf32> to vector<40x128xbf16>
    %210 = vector.extract_strided_slice %205 {offsets = [0, 0], sizes = [40, 32], strides = [1, 1]} : vector<40x128xbf16> to vector<40x32xbf16>
    %211 = vector.extract_strided_slice %207 {offsets = [0, 0], sizes = [40, 32], strides = [1, 1]} : vector<40x128xbf16> to vector<40x32xbf16>
    %cst_76 = arith.constant dense<0.000000e+00> : vector<40x40xf32>
    %212 = tpu.matmul %210, %211, %cst_76 {dimension_numbers = #tpu.dot_dimension_numbers<[1], [1], [0], [0], [0, 0, 1, 0], [], []>} : vector<40x32xbf16>, vector<40x32xbf16>, vector<40x40xf32> -> vector<40x40xf32>
    %213 = arith.addf %212, %0 : vector<40x40xf32>
    %cst_77 = arith.constant dense<0xFF800000> : vector<40xf32>
    %214 = vector.multi_reduction <maximumf>, %213, %cst_77 [1] : vector<40x40xf32> to vector<40xf32>
    %215 = vector.shape_cast %214 : vector<40xf32> to vector<40x1xf32>
    %216 = vector.broadcast %215 : vector<40x1xf32> to vector<40x40xf32>
    %217 = arith.subf %213, %216 : vector<40x40xf32>
    %218 = math.exp %217 : vector<40x40xf32>
    %cst_78 = arith.constant dense<0.000000e+00> : vector<40xf32>
    %219 = vector.multi_reduction <add>, %218, %cst_78 [1] : vector<40x40xf32> to vector<40xf32>
    %220 = vector.shape_cast %219 : vector<40xf32> to vector<40x1xf32>
    %221 = tpu.reciprocal %220 {approx = true} : vector<40x1xf32> -> vector<40x1xf32>
    %222 = vector.broadcast %221 : vector<40x1xf32> to vector<40x40xf32>
    %223 = arith.mulf %218, %222 : vector<40x40xf32>
    %224 = arith.truncf %223 : vector<40x40xf32> to vector<40x40xbf16>
    %225 = vector.extract_strided_slice %209 {offsets = [0, 0], sizes = [40, 32], strides = [1, 1]} : vector<40x128xbf16> to vector<40x32xbf16>
    %cst_79 = arith.constant dense<0.000000e+00> : vector<40x32xf32>
    %226 = tpu.matmul %224, %225, %cst_79 {dimension_numbers = #tpu.dot_dimension_numbers<[1], [0], [0], [1], [0, 0, 1, 1], [], []>} : vector<40x40xbf16>, vector<40x32xbf16>, vector<40x32xf32> -> vector<40x32xf32>
    %227 = vector.extract_strided_slice %205 {offsets = [0, 32], sizes = [40, 32], strides = [1, 1]} : vector<40x128xbf16> to vector<40x32xbf16>
    %228 = vector.extract_strided_slice %207 {offsets = [0, 32], sizes = [40, 32], strides = [1, 1]} : vector<40x128xbf16> to vector<40x32xbf16>
    %cst_80 = arith.constant dense<0.000000e+00> : vector<40x40xf32>
    %229 = tpu.matmul %227, %228, %cst_80 {dimension_numbers = #tpu.dot_dimension_numbers<[1], [1], [0], [0], [0, 0, 1, 0], [], []>} : vector<40x32xbf16>, vector<40x32xbf16>, vector<40x40xf32> -> vector<40x40xf32>
    %230 = arith.addf %229, %0 : vector<40x40xf32>
    %cst_81 = arith.constant dense<0xFF800000> : vector<40xf32>
    %231 = vector.multi_reduction <maximumf>, %230, %cst_81 [1] : vector<40x40xf32> to vector<40xf32>
    %232 = vector.shape_cast %231 : vector<40xf32> to vector<40x1xf32>
    %233 = vector.broadcast %232 : vector<40x1xf32> to vector<40x40xf32>
    %234 = arith.subf %230, %233 : vector<40x40xf32>
    %235 = math.exp %234 : vector<40x40xf32>
    %cst_82 = arith.constant dense<0.000000e+00> : vector<40xf32>
    %236 = vector.multi_reduction <add>, %235, %cst_82 [1] : vector<40x40xf32> to vector<40xf32>
    %237 = vector.shape_cast %236 : vector<40xf32> to vector<40x1xf32>
    %238 = tpu.reciprocal %237 {approx = true} : vector<40x1xf32> -> vector<40x1xf32>
    %239 = vector.broadcast %238 : vector<40x1xf32> to vector<40x40xf32>
    %240 = arith.mulf %235, %239 : vector<40x40xf32>
    %241 = arith.truncf %240 : vector<40x40xf32> to vector<40x40xbf16>
    %242 = vector.extract_strided_slice %209 {offsets = [0, 32], sizes = [40, 32], strides = [1, 1]} : vector<40x128xbf16> to vector<40x32xbf16>
    %cst_83 = arith.constant dense<0.000000e+00> : vector<40x32xf32>
    %243 = tpu.matmul %241, %242, %cst_83 {dimension_numbers = #tpu.dot_dimension_numbers<[1], [0], [0], [1], [0, 0, 1, 1], [], []>} : vector<40x40xbf16>, vector<40x32xbf16>, vector<40x32xf32> -> vector<40x32xf32>
    %244 = vector.extract_strided_slice %205 {offsets = [0, 64], sizes = [40, 32], strides = [1, 1]} : vector<40x128xbf16> to vector<40x32xbf16>
    %245 = vector.extract_strided_slice %207 {offsets = [0, 64], sizes = [40, 32], strides = [1, 1]} : vector<40x128xbf16> to vector<40x32xbf16>
    %cst_84 = arith.constant dense<0.000000e+00> : vector<40x40xf32>
    %246 = tpu.matmul %244, %245, %cst_84 {dimension_numbers = #tpu.dot_dimension_numbers<[1], [1], [0], [0], [0, 0, 1, 0], [], []>} : vector<40x32xbf16>, vector<40x32xbf16>, vector<40x40xf32> -> vector<40x40xf32>
    %247 = arith.addf %246, %0 : vector<40x40xf32>
    %cst_85 = arith.constant dense<0xFF800000> : vector<40xf32>
    %248 = vector.multi_reduction <maximumf>, %247, %cst_85 [1] : vector<40x40xf32> to vector<40xf32>
    %249 = vector.shape_cast %248 : vector<40xf32> to vector<40x1xf32>
    %250 = vector.broadcast %249 : vector<40x1xf32> to vector<40x40xf32>
    %251 = arith.subf %247, %250 : vector<40x40xf32>
    %252 = math.exp %251 : vector<40x40xf32>
    %cst_86 = arith.constant dense<0.000000e+00> : vector<40xf32>
    %253 = vector.multi_reduction <add>, %252, %cst_86 [1] : vector<40x40xf32> to vector<40xf32>
    %254 = vector.shape_cast %253 : vector<40xf32> to vector<40x1xf32>
    %255 = tpu.reciprocal %254 {approx = true} : vector<40x1xf32> -> vector<40x1xf32>
    %256 = vector.broadcast %255 : vector<40x1xf32> to vector<40x40xf32>
    %257 = arith.mulf %252, %256 : vector<40x40xf32>
    %258 = arith.truncf %257 : vector<40x40xf32> to vector<40x40xbf16>
    %259 = vector.extract_strided_slice %209 {offsets = [0, 64], sizes = [40, 32], strides = [1, 1]} : vector<40x128xbf16> to vector<40x32xbf16>
    %cst_87 = arith.constant dense<0.000000e+00> : vector<40x32xf32>
    %260 = tpu.matmul %258, %259, %cst_87 {dimension_numbers = #tpu.dot_dimension_numbers<[1], [0], [0], [1], [0, 0, 1, 1], [], []>} : vector<40x40xbf16>, vector<40x32xbf16>, vector<40x32xf32> -> vector<40x32xf32>
    %261 = vector.extract_strided_slice %205 {offsets = [0, 96], sizes = [40, 32], strides = [1, 1]} : vector<40x128xbf16> to vector<40x32xbf16>
    %262 = vector.extract_strided_slice %207 {offsets = [0, 96], sizes = [40, 32], strides = [1, 1]} : vector<40x128xbf16> to vector<40x32xbf16>
    %cst_88 = arith.constant dense<0.000000e+00> : vector<40x40xf32>
    %263 = tpu.matmul %261, %262, %cst_88 {dimension_numbers = #tpu.dot_dimension_numbers<[1], [1], [0], [0], [0, 0, 1, 0], [], []>} : vector<40x32xbf16>, vector<40x32xbf16>, vector<40x40xf32> -> vector<40x40xf32>
    %264 = arith.addf %263, %0 : vector<40x40xf32>
    %cst_89 = arith.constant dense<0xFF800000> : vector<40xf32>
    %265 = vector.multi_reduction <maximumf>, %264, %cst_89 [1] : vector<40x40xf32> to vector<40xf32>
    %266 = vector.shape_cast %265 : vector<40xf32> to vector<40x1xf32>
    %267 = vector.broadcast %266 : vector<40x1xf32> to vector<40x40xf32>
    %268 = arith.subf %264, %267 : vector<40x40xf32>
    %269 = math.exp %268 : vector<40x40xf32>
    %cst_90 = arith.constant dense<0.000000e+00> : vector<40xf32>
    %270 = vector.multi_reduction <add>, %269, %cst_90 [1] : vector<40x40xf32> to vector<40xf32>
    %271 = vector.shape_cast %270 : vector<40xf32> to vector<40x1xf32>
    %272 = tpu.reciprocal %271 {approx = true} : vector<40x1xf32> -> vector<40x1xf32>
    %273 = vector.broadcast %272 : vector<40x1xf32> to vector<40x40xf32>
    %274 = arith.mulf %269, %273 : vector<40x40xf32>
    %275 = arith.truncf %274 : vector<40x40xf32> to vector<40x40xbf16>
    %276 = vector.extract_strided_slice %209 {offsets = [0, 96], sizes = [40, 32], strides = [1, 1]} : vector<40x128xbf16> to vector<40x32xbf16>
    %cst_91 = arith.constant dense<0.000000e+00> : vector<40x32xf32>
    %277 = tpu.matmul %275, %276, %cst_91 {dimension_numbers = #tpu.dot_dimension_numbers<[1], [0], [0], [1], [0, 0, 1, 1], [], []>} : vector<40x40xbf16>, vector<40x32xbf16>, vector<40x32xf32> -> vector<40x32xf32>
    %278 = tpu.concatenate %226, %243, %260, %277 in 1 : vector<40x32xf32>, vector<40x32xf32>, vector<40x32xf32>, vector<40x32xf32> -> vector<40x128xf32>
    %279 = arith.truncf %278 : vector<40x128xf32> to vector<40x128xbf16>
    %c1_92 = arith.constant 1 : index
    %c0_93 = arith.constant 0 : index
    %c0_94 = arith.constant 0 : index
    %280 = vector.load %arg7[%c1_92, %c0_93, %c0_94] : memref<2x128x128xbf16, #tpu.memory_space<vmem>>, vector<1x128x128xbf16>
    %281 = vector.shape_cast %280 : vector<1x128x128xbf16> to vector<128x128xbf16>
    %cst_95 = arith.constant dense<0.000000e+00> : vector<40x128xf32>
    %282 = tpu.matmul %279, %281, %cst_95 {dimension_numbers = #tpu.dot_dimension_numbers<[1], [0], [0], [1], [0, 0, 1, 1], [], []>} : vector<40x128xbf16>, vector<128x128xbf16>, vector<40x128xf32> -> vector<40x128xf32>
    %283 = arith.addf %171, %282 : vector<40x128xf32>
    %284 = vector.extract_strided_slice %173 {offsets = [4, 0], sizes = [1, 128], strides = [1, 1]} : vector<6x128xf32> to vector<1x128xf32>
    %285 = vector.broadcast %284 : vector<1x128xf32> to vector<40x128xf32>
    %286 = arith.addf %283, %285 : vector<40x128xf32>
    %287 = vector.extract_strided_slice %173 {offsets = [2, 0], sizes = [1, 128], strides = [1, 1]} : vector<6x128xf32> to vector<1x128xf32>
    %288 = vector.extract_strided_slice %173 {offsets = [3, 0], sizes = [1, 128], strides = [1, 1]} : vector<6x128xf32> to vector<1x128xf32>
    %cst_96 = arith.constant dense<0.000000e+00> : vector<40xf32>
    %289 = vector.multi_reduction <add>, %286, %cst_96 [1] : vector<40x128xf32> to vector<40xf32>
    %290 = vector.shape_cast %289 : vector<40xf32> to vector<40x1xf32>
    %cst_97 = arith.constant 1.280000e+02 : f32
    %291 = vector.broadcast %cst_97 : f32 to vector<40x1xf32>
    %292 = arith.divf %290, %291 : vector<40x1xf32>
    %293 = vector.broadcast %292 : vector<40x1xf32> to vector<40x128xf32>
    %294 = arith.subf %286, %293 : vector<40x128xf32>
    %295 = arith.mulf %294, %294 : vector<40x128xf32>
    %cst_98 = arith.constant dense<0.000000e+00> : vector<40xf32>
    %296 = vector.multi_reduction <add>, %295, %cst_98 [1] : vector<40x128xf32> to vector<40xf32>
    %297 = vector.shape_cast %296 : vector<40xf32> to vector<40x1xf32>
    %cst_99 = arith.constant 1.280000e+02 : f32
    %298 = vector.broadcast %cst_99 : f32 to vector<40x1xf32>
    %299 = arith.divf %297, %298 : vector<40x1xf32>
    %cst_100 = arith.constant 9.99999997E-7 : f32
    %300 = vector.broadcast %cst_100 : f32 to vector<40x1xf32>
    %301 = arith.addf %299, %300 : vector<40x1xf32>
    %302 = math.rsqrt %301 : vector<40x1xf32>
    %303 = vector.broadcast %302 : vector<40x1xf32> to vector<40x128xf32>
    %304 = arith.mulf %294, %303 : vector<40x128xf32>
    %305 = vector.broadcast %287 : vector<1x128xf32> to vector<40x128xf32>
    %306 = arith.mulf %304, %305 : vector<40x128xf32>
    %307 = vector.broadcast %288 : vector<1x128xf32> to vector<40x128xf32>
    %308 = arith.addf %306, %307 : vector<40x128xf32>
    %309 = arith.truncf %308 : vector<40x128xf32> to vector<40x128xbf16>
    %c1_101 = arith.constant 1 : index
    %c0_102 = arith.constant 0 : index
    %c0_103 = arith.constant 0 : index
    %310 = vector.load %arg8[%c1_101, %c0_102, %c0_103] : memref<2x128x512xbf16, #tpu.memory_space<vmem>>, vector<1x128x512xbf16>
    %311 = vector.shape_cast %310 : vector<1x128x512xbf16> to vector<128x512xbf16>
    %cst_104 = arith.constant dense<0.000000e+00> : vector<40x512xf32>
    %312 = tpu.matmul %309, %311, %cst_104 {dimension_numbers = #tpu.dot_dimension_numbers<[1], [0], [0], [1], [0, 0, 1, 1], [], []>} : vector<40x128xbf16>, vector<128x512xbf16>, vector<40x512xf32> -> vector<40x512xf32>
    %c1_105 = arith.constant 1 : index
    %c0_106 = arith.constant 0 : index
    %c0_107 = arith.constant 0 : index
    %313 = vector.load %arg9[%c1_105, %c0_106, %c0_107] : memref<2x1x512xf32, #tpu.memory_space<vmem>>, vector<1x1x512xf32>
    %314 = vector.shape_cast %313 : vector<1x1x512xf32> to vector<1x512xf32>
    %315 = vector.broadcast %314 : vector<1x512xf32> to vector<40x512xf32>
    %316 = arith.addf %312, %315 : vector<40x512xf32>
    %cst_108 = arith.constant 5.000000e-01 : f32
    %317 = vector.broadcast %cst_108 : f32 to vector<40x512xf32>
    %318 = arith.mulf %317, %316 : vector<40x512xf32>
    %cst_109 = arith.constant 4.471500e-02 : f32
    %319 = vector.broadcast %cst_109 : f32 to vector<40x512xf32>
    %320 = arith.mulf %319, %316 : vector<40x512xf32>
    %321 = arith.mulf %320, %316 : vector<40x512xf32>
    %322 = arith.mulf %321, %316 : vector<40x512xf32>
    %323 = arith.addf %316, %322 : vector<40x512xf32>
    %cst_110 = arith.constant 0.797884583 : f32
    %324 = vector.broadcast %cst_110 : f32 to vector<40x512xf32>
    %325 = arith.mulf %324, %323 : vector<40x512xf32>
    %326 = math.tanh %325 : vector<40x512xf32>
    %cst_111 = arith.constant 1.000000e+00 : f32
    %327 = vector.broadcast %cst_111 : f32 to vector<40x512xf32>
    %328 = arith.addf %327, %326 : vector<40x512xf32>
    %329 = arith.mulf %318, %328 : vector<40x512xf32>
    %330 = arith.truncf %329 : vector<40x512xf32> to vector<40x512xbf16>
    %c1_112 = arith.constant 1 : index
    %c0_113 = arith.constant 0 : index
    %c0_114 = arith.constant 0 : index
    %331 = vector.load %arg10[%c1_112, %c0_113, %c0_114] : memref<2x512x128xbf16, #tpu.memory_space<vmem>>, vector<1x512x128xbf16>
    %332 = vector.shape_cast %331 : vector<1x512x128xbf16> to vector<512x128xbf16>
    %cst_115 = arith.constant dense<0.000000e+00> : vector<40x128xf32>
    %333 = tpu.matmul %330, %332, %cst_115 {dimension_numbers = #tpu.dot_dimension_numbers<[1], [0], [0], [1], [0, 0, 1, 1], [], []>} : vector<40x512xbf16>, vector<512x128xbf16>, vector<40x128xf32> -> vector<40x128xf32>
    %334 = vector.extract_strided_slice %173 {offsets = [5, 0], sizes = [1, 128], strides = [1, 1]} : vector<6x128xf32> to vector<1x128xf32>
    %335 = vector.broadcast %334 : vector<1x128xf32> to vector<40x128xf32>
    %336 = arith.addf %333, %335 : vector<40x128xf32>
    %337 = arith.addf %286, %336 : vector<40x128xf32>
    %c0_116 = arith.constant 0 : index
    %c0_117 = arith.constant 0 : index
    %338 = vector.load %arg12[%c0_116, %c0_117] : memref<3x128xf32, #tpu.memory_space<vmem>>, vector<1x128xf32>
    %c1_118 = arith.constant 1 : index
    %c0_119 = arith.constant 0 : index
    %339 = vector.load %arg12[%c1_118, %c0_119] : memref<3x128xf32, #tpu.memory_space<vmem>>, vector<1x128xf32>
    %cst_120 = arith.constant dense<0.000000e+00> : vector<40xf32>
    %340 = vector.multi_reduction <add>, %337, %cst_120 [1] : vector<40x128xf32> to vector<40xf32>
    %341 = vector.shape_cast %340 : vector<40xf32> to vector<40x1xf32>
    %cst_121 = arith.constant 1.280000e+02 : f32
    %342 = vector.broadcast %cst_121 : f32 to vector<40x1xf32>
    %343 = arith.divf %341, %342 : vector<40x1xf32>
    %344 = vector.broadcast %343 : vector<40x1xf32> to vector<40x128xf32>
    %345 = arith.subf %337, %344 : vector<40x128xf32>
    %346 = arith.mulf %345, %345 : vector<40x128xf32>
    %cst_122 = arith.constant dense<0.000000e+00> : vector<40xf32>
    %347 = vector.multi_reduction <add>, %346, %cst_122 [1] : vector<40x128xf32> to vector<40xf32>
    %348 = vector.shape_cast %347 : vector<40xf32> to vector<40x1xf32>
    %cst_123 = arith.constant 1.280000e+02 : f32
    %349 = vector.broadcast %cst_123 : f32 to vector<40x1xf32>
    %350 = arith.divf %348, %349 : vector<40x1xf32>
    %cst_124 = arith.constant 9.99999997E-7 : f32
    %351 = vector.broadcast %cst_124 : f32 to vector<40x1xf32>
    %352 = arith.addf %350, %351 : vector<40x1xf32>
    %353 = math.rsqrt %352 : vector<40x1xf32>
    %354 = vector.broadcast %353 : vector<40x1xf32> to vector<40x128xf32>
    %355 = arith.mulf %345, %354 : vector<40x128xf32>
    %356 = vector.broadcast %338 : vector<1x128xf32> to vector<40x128xf32>
    %357 = arith.mulf %355, %356 : vector<40x128xf32>
    %358 = vector.broadcast %339 : vector<1x128xf32> to vector<40x128xf32>
    %359 = arith.addf %357, %358 : vector<40x128xf32>
    %360 = arith.truncf %359 : vector<40x128xf32> to vector<40x128xbf16>
    %c0_125 = arith.constant 0 : index
    %c0_126 = arith.constant 0 : index
    %361 = vector.load %arg13[%c0_125, %c0_126] : memref<128x128xbf16, #tpu.memory_space<vmem>>, vector<128x128xbf16>
    %cst_127 = arith.constant dense<0.000000e+00> : vector<40x128xf32>
    %362 = tpu.matmul %360, %361, %cst_127 {dimension_numbers = #tpu.dot_dimension_numbers<[1], [0], [0], [1], [0, 0, 1, 1], [], []>} : vector<40x128xbf16>, vector<128x128xbf16>, vector<40x128xf32> -> vector<40x128xf32>
    %c2 = arith.constant 2 : index
    %c0_128 = arith.constant 0 : index
    %363 = vector.load %arg12[%c2, %c0_128] : memref<3x128xf32, #tpu.memory_space<vmem>>, vector<1x128xf32>
    %364 = vector.broadcast %363 : vector<1x128xf32> to vector<40x128xf32>
    %365 = arith.addf %362, %364 : vector<40x128xf32>
    %c0_129 = arith.constant 0 : index
    %c0_130 = arith.constant 0 : index
    %366 = vector.load %arg14[%c0_129, %c0_130] : memref<40x128xf32, #tpu.memory_space<vmem>>, vector<40x128xf32>
    tpu.vector_store %arg14[%c0_129, %c0_130], %365 {strides = array<i32>} : memref<40x128xf32, #tpu.memory_space<vmem>>, vector<40x128xf32>,
    return
  }
  func.func @transform_0(%arg0: i32) -> (i32, i32) {
    %c0_i32 = arith.constant 0 : i32
    %c0_i32_0 = arith.constant 0 : i32
    return %arg0, %c0_i32 : i32, i32
  }
  func.func @transform_1(%arg0: i32) -> (i32, i32) {
    %c0_i32 = arith.constant 0 : i32
    %c0_i32_0 = arith.constant 0 : i32
    %c0_i32_1 = arith.constant 0 : i32
    return %c0_i32, %c0_i32_0 : i32, i32
  }
  func.func @transform_2(%arg0: i32) -> (i32, i32) {
    %c0_i32 = arith.constant 0 : i32
    %c0_i32_0 = arith.constant 0 : i32
    %c0_i32_1 = arith.constant 0 : i32
    return %c0_i32, %c0_i32_0 : i32, i32
  }
  func.func @transform_3(%arg0: i32) -> (i32, i32) {
    %c0_i32 = arith.constant 0 : i32
    %c0_i32_0 = arith.constant 0 : i32
    %c0_i32_1 = arith.constant 0 : i32
    return %c0_i32, %c0_i32_0 : i32, i32
  }
  func.func @transform_4(%arg0: i32) -> (i32, i32, i32) {
    %c0_i32 = arith.constant 0 : i32
    %c0_i32_0 = arith.constant 0 : i32
    %c0_i32_1 = arith.constant 0 : i32
    %c0_i32_2 = arith.constant 0 : i32
    return %c0_i32, %c0_i32_0, %c0_i32_1 : i32, i32, i32
  }
  func.func @transform_5(%arg0: i32) -> (i32, i32, i32) {
    %c0_i32 = arith.constant 0 : i32
    %c0_i32_0 = arith.constant 0 : i32
    %c0_i32_1 = arith.constant 0 : i32
    %c0_i32_2 = arith.constant 0 : i32
    return %c0_i32, %c0_i32_0, %c0_i32_1 : i32, i32, i32
  }
  func.func @transform_6(%arg0: i32) -> (i32, i32, i32) {
    %c0_i32 = arith.constant 0 : i32
    %c0_i32_0 = arith.constant 0 : i32
    %c0_i32_1 = arith.constant 0 : i32
    %c0_i32_2 = arith.constant 0 : i32
    return %c0_i32, %c0_i32_0, %c0_i32_1 : i32, i32, i32
  }
  func.func @transform_7(%arg0: i32) -> (i32, i32, i32) {
    %c0_i32 = arith.constant 0 : i32
    %c0_i32_0 = arith.constant 0 : i32
    %c0_i32_1 = arith.constant 0 : i32
    %c0_i32_2 = arith.constant 0 : i32
    return %c0_i32, %c0_i32_0, %c0_i32_1 : i32, i32, i32
  }
  func.func @transform_8(%arg0: i32) -> (i32, i32, i32) {
    %c0_i32 = arith.constant 0 : i32
    %c0_i32_0 = arith.constant 0 : i32
    %c0_i32_1 = arith.constant 0 : i32
    %c0_i32_2 = arith.constant 0 : i32
    return %c0_i32, %c0_i32_0, %c0_i32_1 : i32, i32, i32
  }
  func.func @transform_9(%arg0: i32) -> (i32, i32, i32) {
    %c0_i32 = arith.constant 0 : i32
    %c0_i32_0 = arith.constant 0 : i32
    %c0_i32_1 = arith.constant 0 : i32
    %c0_i32_2 = arith.constant 0 : i32
    return %c0_i32, %c0_i32_0, %c0_i32_1 : i32, i32, i32
  }
  func.func @transform_10(%arg0: i32) -> (i32, i32, i32) {
    %c0_i32 = arith.constant 0 : i32
    %c0_i32_0 = arith.constant 0 : i32
    %c0_i32_1 = arith.constant 0 : i32
    %c0_i32_2 = arith.constant 0 : i32
    return %c0_i32, %c0_i32_0, %c0_i32_1 : i32, i32, i32
  }
  func.func @transform_11(%arg0: i32) -> (i32, i32) {
    %c0_i32 = arith.constant 0 : i32
    %c0_i32_0 = arith.constant 0 : i32
    %c0_i32_1 = arith.constant 0 : i32
    return %c0_i32, %c0_i32_0 : i32, i32
  }
  func.func @transform_12(%arg0: i32) -> (i32, i32) {
    %c0_i32 = arith.constant 0 : i32
    %c0_i32_0 = arith.constant 0 : i32
    %c0_i32_1 = arith.constant 0 : i32
    return %c0_i32, %c0_i32_0 : i32, i32
  }
  func.func @transform_13(%arg0: i32) -> (i32, i32) {
    %c0_i32 = arith.constant 0 : i32
    %c0_i32_0 = arith.constant 0 : i32
    return %arg0, %c0_i32 : i32, i32
  }
}

</mosaic_0001>

<bundles_post_ra>
// kernel: vit_forward.1
= control target key start
LH: loop header
LB: loop body
LE: loop exit
PB: predicated region body
PF: predicated region fallthrough
CT: control target
= control target key end

     0   :  { %s8335_s25 = smov 0   ;;  %s10787_s0 = inlined_call_operand.vmem [shape: bf16[80,768], index: 0, kind: input, shape index: {}]   ;;  %s10788_s1 = inlined_call_operand.vmem [shape: bf16[768,128], index: 1, kind: input, shape index: {}]   ;;  %s10789_s2 = inlined_call_operand.vmem [shape: f32[40,128], index: 2, kind: input, shape index: {}]   ;;  %s10790_s3 = inlined_call_operand.vmem [shape: f32[40,40], index: 3, kind: input, shape index: {}]   ;;  %s10791_s4 = inlined_call_operand.vmem [shape: bf16[2,128,384], index: 4, kind: input, shape index: {}]   ;;  %s10792_s5 = inlined_call_operand.vmem [shape: f32[2,1,384], index: 5, kind: input, shape index: {}]   ;;  %s10793_s6 = inlined_call_operand.vmem [shape: bf16[2,128,128], index: 6, kind: input, shape index: {}]   ;;  %s10794_s7 = inlined_call_operand.vmem [shape: bf16[2,128,512], index: 7, kind: input, shape index: {}]   ;;  %s10795_s8 = inlined_call_operand.vmem [shape: f32[2,1,512], index: 8, kind: input, shape index: {}]   ;;  %s10796_s9 = inlined_call_operand.vmem [shape: bf16[2,512,128], index: 9, kind: input, shape index: {}]   ;;  %s10797_s10 = inlined_call_operand.vmem [shape: f32[2,6,128], index: 10, kind: input, shape index: {}]   ;;  %s10798_s11 = inlined_call_operand.vmem [shape: f32[3,128], index: 11, kind: input, shape index: {}]   ;;  %s10799_s12 = inlined_call_operand.vmem [shape: bf16[128,128], index: 12, kind: input, shape index: {}]   ;;  %s10800_s13 = inlined_call_operand.vmem [shape: f32[80,128], index: 13, kind: output, shape index: {}]  }
   0x1 LB: > { %s6267_s26 = sadd.s32 4294967295, %s8257_s25   ;;  %p6271_p0 = scmp.ge.s32.totalorder %s8257_s25, 1  ;;  %s8257_s25 = sphi %s8335_s25, %s23_s25  }
   0x2   : > { %p389_p1 = scmp.lt.s32.totalorder %s8257_s25, 3 }
   0x4   : > { %p390_p2 = pnand %p6271_p0, %p389_p1 }
   0x5   : > { %s434_s21 = smul.u32 (!%p390_p2), 5, %s6267_s26  ;;  %s8262_s24 = smov (!%p390_p2), 96  }
   0x6   : > { %393 = sbr.rel (%p390_p2) target bundleno = 5964 (0x174c), region = 72  ;;  %s8263_s27 = smov (!%p390_p2), 64  }
   0x7   : > { %p435_p3 = scmp.lt.s32.totalorder (!%p390_p2), %s434_s21, 9  ;;  %s8264_s28 = smov (!%p390_p2), 32  }
   0xb   : > { %v7632_v0 = vld [vmem:[%s10788_s1 + $0x78] sm:$0xff]   ;;  %v7636_v4 = vld [vmem:[%s10788_s1 + $0x70] sm:$0xff]   ;;  %v7640_v8 = vld [vmem:[%s10788_s1 + $0x68] sm:$0xff]   ;;  %s10802_s21 = smov (!%p435_p3, %s434_s21), 9  ;;  %vm8261_vm0 = vmmov 0   ;;  %vm1487_vm1 = vcmask 261120  }
   0xc   : > { %v7633_v1 = vld [vmem:[%s10788_s1 + $0x38] sm:$0xff]   ;;  %6740 = vmatprep.subr.bf16.mxu0 %v7632_v0  ;;  %v7637_v5 = vld [vmem:[%s10788_s1 + $0x30] sm:$0xff]   ;;  %v7641_v9 = vld [vmem:[%s10788_s1 + $0x28] sm:$0xff]   ;;  %s7557_s15 = smul.u32 24, %s10802_s21  ;;  %vm1630_vm2 = vcmask 1043456   ;;  %vm1562_vm3 = vcmask 326656  }
   0xd   : > { %v7634_v2 = vld [vmem:[%s10788_s1 + $0xf8] sm:$0xff]   ;;  %6741 = vmatpush3.bf16.msra.mxu0 %v7633_v1  ;;  %v7638_v6 = vld [vmem:[%s10788_s1 + $0xf0] sm:$0xff]   ;;  %v7642_v10 = vld [vmem:[%s10788_s1 + $0xe8] sm:$0xff]   ;;  %vm2424_vm4 = vcmask 523264   ;;  %vm2430_vm5 = vcmask 785408   ;;  %s6273_s23 = sshll.u32 %s10802_s21, 3 }
   0xe   : > { %v7635_v3 = vld [vmem:[%s10788_s1 + $0xb8] sm:$0xff]   ;;  %6774 = vmatprep.subr.bf16.mxu1 %v7634_v2  ;;  %6742 = vmatprep.subr.bf16.mxu0 %v7636_v4  ;;  %v7639_v7 = vld [vmem:[%s10788_s1 + $0xb0] sm:$0xff]   ;;  %v7643_v11 = vld [vmem:[%s10788_s1 + $0xa8] sm:$0xff]   ;;  %s8436_s29 = scalar_lea.vmem %s10787_s0, %s7557_s15  ;;  %s445_s15 = scalar_lea.vmem %s10800_s13, %s6273_s23 }
   0xf   : > { %6775 = vmatpush3.bf16.msra.mxu1 %v7635_v3  ;;  %v7644_v12 = vld [vmem:[%s10788_s1 + $0x60] sm:$0xff]   ;;  %v7648_v16 = vld [vmem:[%s10788_s1 + $0x58] sm:$0xff]   ;;  %v7652_v20 = vld [vmem:[%s10788_s1 + $0x50] sm:$0xff]  }
  0x10   : > { %6776 = vmatprep.subr.bf16.mxu1 %v7638_v6  ;;  %v7645_v13 = vld [vmem:[%s10788_s1 + $0x20] sm:$0xff]   ;;  %v7649_v17 = vld [vmem:[%s10788_s1 + $0x18] sm:$0xff]   ;;  %v7653_v21 = vld [vmem:[%s10788_s1 + $0x10] sm:$0xff]  }
  0x11   : > { %6743 = vmatpush3.bf16.msra.mxu0 %v7637_v5  ;;  %v7646_v14 = vld [vmem:[%s10788_s1 + $0xe0] sm:$0xff]   ;;  %v7650_v18 = vld [vmem:[%s10788_s1 + $0xd8] sm:$0xff]   ;;  %v7654_v22 = vld [vmem:[%s10788_s1 + $0xd0] sm:$0xff]  }
  0x12   : > { %6744 = vmatprep.subr.bf16.mxu0 %v7640_v8  ;;  %v7647_v15 = vld [vmem:[%s10788_s1 + $0xa0] sm:$0xff]   ;;  %v7651_v19 = vld [vmem:[%s10788_s1 + $0x98] sm:$0xff]   ;;  %v7655_v23 = vld [vmem:[%s10788_s1 + $0x90] sm:$0xff]  }
  0x13   : > { %6777 = vmatpush3.bf16.msra.mxu1 %v7639_v7  ;;  %v7656_v24 = vld [vmem:[%s10788_s1 + $0x48] sm:$0xff]   ;;  %v7660_v28 = vld [vmem:[%s10788_s1 + $0x40] sm:$0xff]   ;;  %v7667_v34 = vld [vmem:[%s10788_s1 + $0x178] sm:$0xff]  }
  0x14   : > { %6778 = vmatprep.subr.bf16.mxu1 %v7642_v10  ;;  %v7657_v25 = vld [vmem:[%s10788_s1 + $0x8] sm:$0xff]   ;;  %v7661_v29 = vld [vmem:[%s10788_s1] sm:$0xff]   ;;  %v7671_v37 = vld [vmem:[%s10788_s1 + $0x138] sm:$0xff]  }
  0x15   : > { %6745 = vmatpush3.bf16.msra.mxu0 %v7641_v9  ;;  %v7658_v26 = vld [vmem:[%s10788_s1 + $0xc8] sm:$0xff]   ;;  %v7662_v30 = vld [vmem:[%s10788_s1 + $0xc0] sm:$0xff]   ;;  %v7672_v38 = vld [vmem:[%s10788_s1 + $0x170] sm:$0xff]  }
  0x16   : > { %6746 = vmatprep.subr.bf16.mxu0 %v7644_v12  ;;  %v7659_v27 = vld [vmem:[%s10788_s1 + $0x88] sm:$0xff]   ;;  %v7663_v31 = vld [vmem:[%s8436_s29] ss:$24 sps:$4 sm:$0xff]   ;;  %v7665_v32 = vld [vmem:[%s8436_s29 + $0x4] ss:$24 sps:$4 sm:$0xff]  }
  0x17   : > { %6779 = vmatpush3.bf16.msra.mxu1 %v7643_v11  ;;  %v7666_v33 = vld [vmem:[%s10788_s1 + $0x80] sm:$0xff]   ;;  %970 = vmatprep.mubr.bf16.mxu0 %v7665_v32  ;;  %v7673_v39 = vld [vmem:[%s10788_s1 + $0x130] sm:$0xff]   ;;  %v7674_v40 = vld [vmem:[%s10788_s1 + $0x168] sm:$0xff]  }
  0x18   : > { %6780 = vmatprep.subr.bf16.mxu1 %v7646_v14  ;;  %v7668_v35 = vld [vmem:[%s8436_s29 + $0x8] ss:$24 sps:$4 sm:$0xff]   ;;  %v7670_v36 = vld [vmem:[%s8436_s29 + $0xc] ss:$24 sps:$4 sm:$0xff]   ;;  %v7679_v44 = vld [vmem:[%s8436_s29 + $0x3c] ss:$24 sps:$4 sm:$0xff]  }
  0x19   : > { %6747 = vmatpush3.bf16.msra.mxu0 %v7645_v13  ;;  %1026 = vmatprep.mubr.bf16.mxu1 %v7670_v36  ;;  %v7675_v41 = vld [vmem:[%s8436_s29 + $0x34] ss:$24 sps:$4 sm:$0xff]   ;;  %v7678_v43 = vld [vmem:[%s8436_s29 + $0x30] ss:$24 sps:$4 sm:$0xff]   ;;  %v7682_v46 = vld [vmem:[%s10788_s1 + $0x160] sm:$0xff]  }
  0x1a   : > { %6748 = vmatprep.subr.bf16.mxu0 %v7648_v16  ;;  %v7677_v42 = vld [vmem:[%s10788_s1 + $0x128] sm:$0xff]   ;;  %v7681_v45 = vld [vmem:[%s8436_s29 + $0x38] ss:$24 sps:$4 sm:$0xff]   ;;  %v7683_v47 = vld [vmem:[%s10788_s1 + $0x120] sm:$0xff]  }
  0x1b   : > { %6781 = vmatpush3.bf16.msra.mxu1 %v7647_v15  ;;  %v465_v48 = vld [vmem:[%s8436_s29 + $0x60] sm:$0xff]  ;;  %v7684_v49 = vld [vmem:[%s10788_s1 + $0x158] sm:$0xff]   ;;  %v466_v52 = vld [vmem:[%s8436_s29 + $0x68] sm:$0xff] }
  0x1c   : > { %6782 = vmatprep.subr.bf16.mxu1 %v7650_v18  ;;  %v6287_v50 = vcombine.high %v465_v48, %v465_v48  ;;  %v6286_v51 = vcombine.low %v465_v48, %v465_v48  ;;  %v7686_v53 = vld [vmem:[%s10788_s1 + $0x118] sm:$0xff]   ;;  %v6289_v54 = vcombine.high %v466_v52, %v466_v52  ;;  %v6288_v55 = vcombine.low %v466_v52, %v466_v52  ;;  %v7688_v56 = vld [vmem:[%s10788_s1 + $0x150] sm:$0xff]   ;;  %v7692_v58 = vld [vmem:[%s10788_s1 + $0x148] sm:$0xff]  }
  0x1d   : > { %6749 = vmatpush3.bf16.msra.mxu0 %v7649_v17  ;;  %v7689_v57 = vld [vmem:[%s10788_s1 + $0x110] sm:$0xff]   ;;  %v7693_v60 = vld [vmem:[%s10788_s1 + $0x108] sm:$0xff]   ;;  %v7694_v61 = vld [vmem:[%s10788_s1 + $0x140] sm:$0xff]  }
  0x1e   : > { %6750 = vmatprep.subr.bf16.mxu0 %v7652_v20  ;;  %v7698_v59 = vld [vmem:[%s8436_s29 + $0x14] ss:$24 sps:$4 sm:$0xff]   ;;  %v7695_v62 = vld [vmem:[%s10788_s1 + $0x100] sm:$0xff]   ;;  %v7696_v63 = vld [vmem:[%s8436_s29 + $0x10] ss:$24 sps:$4 sm:$0xff]  }
  0x1f   : > { %6783 = vmatpush3.bf16.msra.mxu1 %v7651_v19  ;;  %v7699_v0 = vld [vmem:[%s8436_s29 + $0x44] ss:$24 sps:$4 sm:$0xff]   ;;  %v467_v1 = vld [vmem:[%s8436_s29 + $0x70] sm:$0xff]  ;;  %v7701_v2 = vld [vmem:[%s8436_s29 + $0x40] ss:$24 sps:$4 sm:$0xff]  }
  0x20   : > { %6784 = vmatprep.subr.bf16.mxu1 %v7654_v22  ;;  %v6291_v3 = vcombine.high %v467_v1, %v467_v1  ;;  %v6290_v4 = vcombine.low %v467_v1, %v467_v1 }
  0x21   : > { %6751 = vmatpush3.bf16.msra.mxu0 %v7653_v21 }
  0x22   : > { %6752 = vmatprep.subr.bf16.mxu0 %v7656_v24 }
  0x23   : > { %6785 = vmatpush3.bf16.msra.mxu1 %v7655_v23 }
  0x24   : > { %6786 = vmatprep.subr.bf16.mxu1 %v7658_v26 }
  0x25   : > { %6753 = vmatpush3.bf16.msra.mxu0 %v7657_v25 }
  0x26   : > { %6754 = vmatprep.subr.bf16.mxu0 %v7660_v28 }
  0x27   : > { %6787 = vmatpush3.bf16.msra.mxu1 %v7659_v27 }
  0x28   : > { %6788 = vmatprep.subr.bf16.mxu1 %v7662_v30  ;;  %v564_v30 = vld [vmem:[%s10789_s2] sm:$0xff] }
  0x29   : > { %6755 = vmatpush3.bf16.msra.mxu0 %v7661_v29 }
  0x2a   : > { %6808 = vmatprep.subr.bf16.mxu0 %v7667_v34  ;;  %v565_v34 = vld [vmem:[%s10789_s2 + $0x8] sm:$0xff] }
  0x2b   : > { %6789 = vmatpush3.bf16.msra.mxu1 %v7666_v33 }
  0x2c   : > { %971 = vmatmul.mubr.bf16.vlgmr.msra.gmra.mxu0 %v7663_v31 }
  0x2d   : > { %6809 = vmatpush3.bf16.msra.mxu0 %v7671_v37  ;;  %978 = vmatprep.mubr.bf16.mxu0 %v7675_v41  ;;  %v566_v41 = vld [vmem:[%s10789_s2 + $0x10] sm:$0xff] }
  0x2e   : > { %1027 = vmatmul.mubr.bf16.vlgmr.msra.gmra.mxu1 %v7668_v35  ;;  %6810 = vmatprep.subr.bf16.mxu0 %v7672_v38 }
  0x2f   : > { %1034 = vmatprep.mubr.bf16.mxu1 %v7679_v44 }
  0x31   : > { %6811 = vmatpush3.bf16.msra.mxu0 %v7673_v39 }
  0x32   : > { %6812 = vmatprep.subr.bf16.mxu0 %v7674_v40 }
  0x34   : > { %979 = vmatmul.mubr.bf16.gmra.mxu0 %v7678_v43 }
  0x35   : > { %6813 = vmatpush3.bf16.msra.mxu0 %v7677_v42  ;;  %986 = vmatprep.mubr.bf16.mxu0 %v6287_v50 }
  0x36   : > { %1035 = vmatmul.mubr.bf16.gmra.mxu1 %v7681_v45  ;;  %6814 = vmatprep.subr.bf16.mxu0 %v7682_v46 }
  0x37   : > { %1042 = vmatprep.mubr.bf16.mxu1 %v6289_v54 }
  0x39   : > { %6815 = vmatpush3.bf16.msra.mxu0 %v7683_v47 }
  0x3a   : > { %6816 = vmatprep.subr.bf16.mxu0 %v7684_v49 }
  0x3c   : > { %987 = vmatmul.mubr.bf16.gmra.mxu0 %v6286_v51  ;;  %v567_v51 = vld [vmem:[%s10789_s2 + $0x18] sm:$0xff] }
  0x3d   : > { %6817 = vmatpush3.bf16.msra.mxu0 %v7686_v53  ;;  %1082 = vmatprep.mubr.bf16.mxu0 %v7698_v59 }
  0x3e   : > { %1043 = vmatmul.mubr.bf16.gmra.mxu1 %v6288_v55  ;;  %6818 = vmatprep.subr.bf16.mxu0 %v7688_v56 }
  0x41   : > { %6819 = vmatpush3.bf16.msra.mxu0 %v7689_v57 }
  0x42   : > { %6820 = vmatprep.subr.bf16.mxu0 %v7692_v58 }
  0x45   : > { %6821 = vmatpush3.bf16.msra.mxu0 %v7693_v60  ;;  %v568_v60 = vld [vmem:[%s10789_s2 + $0x20] sm:$0xff] }
  0x46   : > { %6822 = vmatprep.subr.bf16.mxu0 %v7694_v61 }
  0x49   : > { %6823 = vmatpush3.bf16.msra.mxu0 %v7695_v62 }
  0x4c   : > { %1083 = vmatmul.mubr.bf16.vlgmr.msra.gmra.mxu0 %v7696_v63 }
  0x4d   : > { %1090 = vmatprep.mubr.bf16.mxu0 %v7699_v0 }
  0x54   : > { %1091 = vmatmul.mubr.bf16.gmra.mxu0 %v7701_v2 }
  0x55   : > { %1098 = vmatprep.mubr.bf16.mxu0 %v6291_v3 }
  0x5c   : > { %1099 = vmatmul.mubr.bf16.gmra.mxu0 %v6290_v4 }
  0xec   : > { %v6756_v5 = vpop.f32.mrf.mxu0 }
  0xee   : > { %v6757_v6 = vpop.f32.mrf.mxu0  ;;  %v6790_v7 = vpop.f32.mrf.mxu1 }
  0xef   : > { %v6758_v29 = vadd.f32 %v6757_v6, %v6756_v5 }
  0xf0   : > { %v6759_v8 = vpop.f32.mrf.mxu0  ;;  %v6791_v9 = vpop.f32.mrf.mxu1 }
  0xf1   : > { %v973_v31 = vadd.f32 %v6758_v29, %v564_v30  ;;  %v6792_v32 = vadd.f32 %v6791_v9, %v6790_v7 }
  0xf2   : > { %v6760_v10 = vpop.f32.mrf.mxu0  ;;  %v6793_v11 = vpop.f32.mrf.mxu1 }
  0xf3   : > { %v6761_v33 = vadd.f32 %v6760_v10, %v6759_v8  ;;  %v1029_v38 = vadd.f32 %v6792_v32, %v973_v31 }
  0xf4   : > { %v6762_v12 = vpop.f32.mrf.mxu0  ;;  %v6794_v13 = vpop.f32.mrf.mxu1 }
  0xf5   : > { %v976_v39 = vadd.f32 %v6761_v33, %v565_v34  ;;  %v6795_v40 = vadd.f32 %v6794_v13, %v6793_v11  ;;  %v7706_v13 = vld [vmem:[%s10791_s4 + $0xac] ss:$12 sps:$4 sm:$0xff]   ;;  %v7710_v34 = vld [vmem:[%s10791_s4 + $0x94] ss:$12 sps:$4 sm:$0xff]  }
  0xf6   : > { %v6763_v14 = vpop.f32.mrf.mxu0  ;;  %v6796_v15 = vpop.f32.mrf.mxu1  ;;  %1361 = vmatprep.subr.bf16.mxu1 %v7706_v13 }
  0xf7   : > { %v6764_v36 = vadd.f32 %v6763_v14, %v6762_v12  ;;  %v1032_v48 = vadd.f32 %v6795_v40, %v976_v39  ;;  %v7704_v12 = vld [vmem:[%s10791_s4 + $0xa8] ss:$12 sps:$4 sm:$0xff]   ;;  %v8259_v14 = vmov 0.0   ;;  %v7712_v40 = vld [vmem:[%s10791_s4 + $0x78] ss:$12 sps:$4 sm:$0xff]  }
  0xf8   : > { %v6765_v16 = vpop.f32.mrf.mxu0  ;;  %v6797_v17 = vpop.f32.mrf.mxu1  ;;  %7129 = vmatprep.subr.bf16.mxu0 %v8259_v14  ;;  %1362 = vmatpush1.bf16.msra.mxu1 %v7704_v12  ;;  %v7714_v39 = vld [vmem:[%s10791_s4 + $0x7c] ss:$12 sps:$4 sm:$0xff]  }
  0xf9   : > { %v981_v45 = vadd.f32 %v6764_v36, %v566_v41  ;;  %v6798_v46 = vadd.f32 %v6797_v17, %v6796_v15  ;;  %v7707_v15 = vld [vmem:[%s10791_s4 + $0xb0] ss:$12 sps:$4 sm:$0xff]   ;;  %v7711_v36 = vld [vmem:[%s10791_s4 + $0x98] ss:$12 sps:$4 sm:$0xff]   ;;  %1363 = vmatprep.subr.bf16.mxu1 %v7710_v34  ;;  %v7715_v41 = vld [vmem:[%s10791_s4 + $0x80] ss:$12 sps:$4 sm:$0xff]   ;;  %7145 = vmatprep.mubr.msk.bf16.mxu0 %vm8261_vm0, %v8259_v14 }
  0xfa   : > { %v6766_v18 = vpop.f32.mrf.mxu0  ;;  %v6799_v19 = vpop.f32.mrf.mxu1  ;;  %7130 = vmatpush3.bf16.msra.mxu0 %v7707_v15 }
  0xfb   : > { %v6767_v49 = vadd.f32 %v6766_v18, %v6765_v16  ;;  %v1037_v54 = vadd.f32 %v6798_v46, %v981_v45  ;;  %7131 = vmatprep.subr.bf16.mxu0 %v8259_v14  ;;  %v7719_v45 = vld [vmem:[%s10791_s4 + $0x68] ss:$12 sps:$4 sm:$0xff]   ;;  %v7722_v46 = vld [vmem:[%s10791_s4 + $0x4c] ss:$12 sps:$4 sm:$0xff]  }
  0xfc   : > { %v6768_v20 = vpop.f32.mrf.mxu0  ;;  %v6800_v21 = vpop.f32.mrf.mxu1 }
  0xfd   : > { %v984_v56 = vadd.f32 %v6767_v49, %v567_v51  ;;  %v6801_v57 = vadd.f32 %v6800_v21, %v6799_v19  ;;  %v7726_v49 = vld [vmem:[%s10791_s4 + $0x34] ss:$12 sps:$4 sm:$0xff]   ;;  %v7727_v51 = vld [vmem:[%s10791_s4 + $0x38] ss:$12 sps:$4 sm:$0xff]  }
  0xfe   : > { %v6769_v22 = vpop.f32.mrf.mxu0  ;;  %v6802_v23 = vpop.f32.mrf.mxu1  ;;  %7132 = vmatpush3.bf16.msra.mxu0 %v7711_v36 }
  0xff   : > { %v6770_v58 = vadd.f32 %v6769_v22, %v6768_v20  ;;  %v1040_v0 = vadd.f32 %v6801_v57, %v984_v56  ;;  %7133 = vmatprep.subr.bf16.mxu0 %v8259_v14  ;;  %v7734_v56 = vld [vmem:[%s10791_s4 + $0x4] ss:$12 sps:$4 sm:$0xff]   ;;  %v7732_v57 = vld [vmem:[%s10791_s4] ss:$12 sps:$4 sm:$0xff]  }
 0x100   : > { %v6771_v24 = vpop.f32.mrf.mxu0  ;;  %v6803_v25 = vpop.f32.mrf.mxu1 }
 0x101   : > { %v989_v1 = vadd.f32 %v6770_v58, %v568_v60  ;;  %v6804_v2 = vadd.f32 %v6803_v25, %v6802_v23  ;;  %v7735_v58 = vld [vmem:[%s10791_s4 + $0x8] ss:$12 sps:$4 sm:$0xff]  }
 0x102   : > { %v6772_v26 = vpop.f32.mrf.mxu0  ;;  %v6805_v27 = vpop.f32.mrf.mxu1  ;;  %7134 = vmatpush3.bf16.msra.mxu0 %v7715_v41 }
 0x103   : > { %v1045_v7 = vadd.f32 %v6804_v2, %v989_v1  ;;  %7135 = vmatprep.subr.bf16.mxu0 %v8259_v14 }
 0x104   : > { %v6806_v28 = vpop.f32.mrf.mxu1 }
 0x106   : > { %7136 = vmatpush3.bf16.msra.mxu0 %v7719_v45 }
 0x107   : > { %7137 = vmatprep.subr.bf16.mxu0 %v8259_v14 }
 0x10c   : > { %v6824_v35 = vpop.f32.mrf.mxu0 }
 0x10e   : > { %v6825_v37 = vpop.f32.mrf.mxu0 }
 0x10f   : > { %v6826_v42 = vadd.f32 %v6825_v37, %v6824_v35  ;;  %v7708_v35 = vld [vmem:[%s10791_s4 + $0x90] ss:$12 sps:$4 sm:$0xff]  }
 0x110   : > { %v6827_v43 = vpop.f32.mrf.mxu0  ;;  %1364 = vmatpush1.bf16.msra.mxu1 %v7708_v35 }
 0x111   : > { %v8519_v44 = vadd.f32 %v6826_v42, %v1029_v38  ;;  %1365 = vmatprep.subr.bf16.mxu1 %v7714_v39  ;;  %v7718_v42 = vld [vmem:[%s10791_s4 + $0x64] ss:$12 sps:$4 sm:$0xff]  }
 0x112   : > { %v6828_v47 = vpop.f32.mrf.mxu0 }
 0x113   : > { %v6829_v50 = vadd.f32 %v6828_v47, %v6827_v43  ;;  %1107 = vadd.xlane.f32.xlu0 %v8519_v44  ;;  %v7716_v43 = vld [vmem:[%s10791_s4 + $0x60] ss:$12 sps:$4 sm:$0xff]   ;;  %v7720_v47 = vld [vmem:[%s10791_s4 + $0x48] ss:$12 sps:$4 sm:$0xff]  }
 0x114   : > { %v6830_v52 = vpop.f32.mrf.mxu0  ;;  %1366 = vmatpush1.bf16.msra.mxu1 %v7712_v40 }
 0x115   : > { %v8525_v53 = vadd.f32 %v6829_v50, %v1032_v48  ;;  %1367 = vmatprep.subr.bf16.mxu1 %v7718_v42  ;;  %v7723_v48 = vld [vmem:[%s10791_s4 + $0x50] ss:$12 sps:$4 sm:$0xff]  }
 0x116   : > { %v6831_v55 = vpop.f32.mrf.mxu0  ;;  %7138 = vmatpush3.bf16.msra.mxu0 %v7723_v48  ;;  %v7724_v50 = vld [vmem:[%s10791_s4 + $0x30] ss:$12 sps:$4 sm:$0xff]  }
 0x117   : > { %v6832_v59 = vadd.f32 %v6831_v55, %v6830_v52  ;;  %1109 = vadd.xlane.f32.xlu0 %v8525_v53  ;;  %7139 = vmatprep.subr.bf16.mxu0 %v8259_v14  ;;  %v7730_v52 = vld [vmem:[%s10791_s4 + $0x1c] ss:$12 sps:$4 sm:$0xff]   ;;  %v7731_v55 = vld [vmem:[%s10791_s4 + $0x20] ss:$12 sps:$4 sm:$0xff]  }
 0x118   : > { %v6833_v61 = vpop.f32.mrf.mxu0  ;;  %1368 = vmatpush1.bf16.msra.mxu1 %v7716_v43 }
 0x119   : > { %v8531_v62 = vadd.f32 %v6832_v59, %v1037_v54  ;;  %1369 = vmatprep.subr.bf16.mxu1 %v7722_v46  ;;  %v7728_v54 = vld [vmem:[%s10791_s4 + $0x18] ss:$12 sps:$4 sm:$0xff]   ;;  %v8260_v59 = vmov 0  }
 0x11a   : > { %v6834_v63 = vpop.f32.mrf.mxu0  ;;  %7140 = vmatpush3.bf16.msra.mxu0 %v7727_v51  ;;  %1393 = vmatprep.mubr.bf16.mxu1 %v8260_v59 }
 0x11b   : > { %v6835_v3 = vadd.f32 %v6834_v63, %v6833_v61  ;;  %1111 = vadd.xlane.f32.xlu1 %v8531_v62  ;;  %7141 = vmatprep.subr.bf16.mxu0 %v8259_v14 }
 0x11c   : > { %v6836_v4 = vpop.f32.mrf.mxu0  ;;  %1370 = vmatpush1.bf16.msra.mxu1 %v7720_v47 }
 0x11d   : > { %v8534_v5 = vadd.f32 %v6835_v3, %v1040_v0  ;;  %1371 = vmatprep.subr.bf16.mxu1 %v7726_v49  ;;  %v1163_v3 = vlaneseq }
 0x11e   : > { %v6837_v6 = vpop.f32.mrf.mxu0  ;;  %7142 = vmatpush3.bf16.msra.mxu0 %v7731_v55 }
 0x11f   : > { %v6838_v8 = vadd.f32 %v6837_v6, %v6836_v4  ;;  %1113 = vadd.xlane.f32.xlu1 %v8534_v5  ;;  %7143 = vmatprep.subr.bf16.mxu0 %v8259_v14 }
 0x120   : > { %v6839_v9 = vpop.f32.mrf.mxu0  ;;  %1372 = vmatpush1.bf16.msra.mxu1 %v7724_v50 }
 0x121   : > { %v8537_v10 = vadd.f32 %v6838_v8, %v1045_v7  ;;  %1373 = vmatprep.subr.bf16.mxu1 %v7730_v52  ;;  %v8650_v8 = vshrl.u32 %v1163_v3, 7 }
 0x122   : > { %v6840_v11 = vpop.f32.mrf.mxu0  ;;  %7144 = vmatpush3.bf16.msra.mxu0 %v7735_v58 }
 0x123   : > { %1115 = vadd.xlane.f32.xlu0 %v8537_v10  ;;  %7193 = vmatprep.subr.bf16.mxu0 %v8259_v14  ;;  %v8653_v13 = vsub.s32 0, %v8650_v8 }
 0x124   : > { %1374 = vmatpush1.bf16.msra.mxu1 %v7728_v54 }
 0x125   : > { %1375 = vmatprep.subr.bf16.mxu1 %v7734_v56 }
 0x128   : > { %1376 = vmatpush1.bf16.msra.mxu1 %v7732_v57 }
 0x129   : > { %7157 = vmatprep.subr.bf16.mxu1 %v8259_v14 }
 0x19c   : > { %v1108_v16 = vpop.xlane.xlu0 %1107 }
 0x19d   : > { %v1118_v17 = vmul.f32 0.0078125, %v1108_v16  ;;  %v1106_v16 = vld [vmem:[%s10797_s10] sm:$0x3f] }
 0x19f   : > { %v8552_v18 = vsub.f32 %v8519_v44, %v1118_v17 }
 0x1a0   : > { %v1110_v19 = vpop.xlane.xlu0 %1109 }
 0x1a1   : > { %v1119_v20 = vmul.f32 0.0078125, %v1110_v19  ;;  %v1128_v21 = vmul.f32 %v8552_v18, %v8552_v18 }
 0x1a3   : > { %1133 = vadd.xlane.f32.xlu1 %v1128_v21  ;;  %v8557_v22 = vsub.f32 %v8525_v53, %v1119_v20 }
 0x1a4   : > { %v1112_v23 = vpop.xlane.xlu1 %1111 }
 0x1a5   : > { %v1120_v24 = vmul.f32 0.0078125, %v1112_v23  ;;  %v1129_v25 = vmul.f32 %v8557_v22, %v8557_v22  ;;  %v1166_v23 = vrot.slane %v1106_v16, %v8653_v13 }
 0x1a7   : > { %1135 = vadd.xlane.f32.xlu0 %v1129_v25  ;;  %v8562_v26 = vsub.f32 %v8531_v62, %v1120_v24  ;;  %v8661_v24 = vsub.s32 1, %v8650_v8 }
 0x1a8   : > { %v1114_v27 = vpop.xlane.xlu1 %1113 }
 0x1a9   : > { %v1121_v28 = vmul.f32 0.0078125, %v1114_v27  ;;  %v1130_v29 = vmul.f32 %v8562_v26, %v8562_v26 }
 0x1ab   : > { %1137 = vadd.xlane.f32.xlu1 %v1130_v29  ;;  %v8567_v30 = vsub.f32 %v8534_v5, %v1121_v28  ;;  %v1175_v29 = vrot.slane %v1106_v16, %v8661_v24 }
 0x1ac   : > { %v1116_v31 = vpop.xlane.xlu0 %1115 }
 0x1ad   : > { %v1122_v32 = vmul.f32 0.0078125, %v1116_v31  ;;  %v1131_v33 = vmul.f32 %v8567_v30, %v8567_v30 }
 0x1af   : > { %1139 = vadd.xlane.f32.xlu0 %v1131_v33  ;;  %v8581_v37 = vsub.f32 %v8537_v10, %v1122_v32 }
 0x1b1   : > { %v1132_v38 = vmul.f32 %v8581_v37, %v8581_v37 }
 0x1b3   : > { %1141 = vadd.xlane.f32.xlu1 %v1132_v38 }
 0x22c   : > { %v1134_v60 = vpop.xlane.xlu1 %1133 }
 0x22d   : > { %v1143_v61 = vmul.f32 0.0078125, %v1134_v60  ;;  %v1216_v60 = vld [vmem:[%s10792_s5] sm:$0x7] }
 0x22e   : > { %v1221_v16 = vrot.slane %v1216_v60, %v8653_v13 }
 0x22f   : > { %v1148_v63 = vadd.f32 1e-06, %v1143_v61 }
 0x230   : > { %v1136_v0 = vpop.xlane.xlu0 %1135 }
 0x231   : > { %7952 = vrsqrt.f32 %v1148_v63  ;;  %v1144_v1 = vmul.f32 0.0078125, %v1136_v0  ;;  %v1225_v0 = vrot.slane %v1216_v60, %v8661_v24 }
 0x233   : > { %v1149_v2 = vadd.f32 1e-06, %v1144_v1 }
 0x234   : > { %v1138_v4 = vpop.xlane.xlu1 %1137 }
 0x235   : > { %7954 = vrsqrt.f32 %v1149_v2  ;;  %v1145_v6 = vmul.f32 0.0078125, %v1138_v4 }
 0x237   : > { %v1150_v7 = vadd.f32 1e-06, %v1145_v6 }
 0x238   : > { %v1140_v9 = vpop.xlane.xlu0 %1139 }
 0x239   : > { %7956 = vrsqrt.f32 %v1150_v7  ;;  %v1146_v11 = vmul.f32 0.0078125, %v1140_v9 }
 0x23b   : > { %v1151_v12 = vadd.f32 1e-06, %v1146_v11 }
 0x23c   : > { %v1142_v15 = vpop.xlane.xlu1 %1141 }
 0x23d   : > { %7958 = vrsqrt.f32 %v1151_v12  ;;  %v1147_v17 = vmul.f32 0.0078125, %v1142_v15 }
 0x23e   : > { %v7953_v19 = vpop.eup %7952 }
 0x23f   : > { %v1158_v20 = vmul.f32 %v7953_v19, %v8552_v18  ;;  %v1152_v21 = vadd.f32 1e-06, %v1147_v17 }
 0x241   : > { %7960 = vrsqrt.f32 %v1152_v21  ;;  %v1167_v28 = vmul.f32 %v1166_v23, %v1158_v20 }
 0x242   : > { %v7955_v25 = vpop.eup %7954 }
 0x243   : > { %v1159_v27 = vmul.f32 %v7955_v25, %v8557_v22  ;;  %v1176_v33 = vadd.f32 %v1175_v29, %v1167_v28 }
 0x245   : > { %v1168_v31 = vmul.f32 %v1166_v23, %v1159_v27 }
 0x246   : > { %v7957_v32 = vpop.eup %7956 }
 0x247   : > { %v1177_v34 = vadd.f32 %v1175_v29, %v1168_v31  ;;  %v1160_v35 = vmul.f32 %v7957_v32, %v8562_v26 }
 0x249   : > { %v1181_v18 = vpack.c.bf16 %v1177_v34, %v1176_v33  ;;  %v1169_v39 = vmul.f32 %v1166_v23, %v1160_v35 }
 0x24a   : > { %v7959_v36 = vpop.eup %7958 }
 0x24b   : > { %1394 = vmatmul.mubr.bf16.vlgmr.msra.gmra.mxu1 %v1181_v18  ;;  %7146 = vmatmul.mubr.bf16.vlgmr.msra.gmra.mxu0 %v1181_v18  ;;  %v1161_v38 = vmul.f32 %v7959_v36, %v8567_v30  ;;  %v1178_v41 = vadd.f32 %v1175_v29, %v1169_v39  ;;  %v8700_v39 = vsub.s32 2, %v8650_v8 }
 0x24c   : > { %1403 = vmatprep.mubr.bf16.mxu1 %v8260_v59  ;;  %7149 = vmatprep.mubr.msk.bf16.mxu0 %vm8261_vm0, %v8259_v14 }
 0x24d   : > { %v1170_v22 = vmul.f32 %v1166_v23, %v1161_v38 }
 0x24e   : > { %v7961_v40 = vpop.eup %7960 }
 0x24f   : > { %v1179_v42 = vadd.f32 %v1175_v29, %v1170_v22  ;;  %v1162_v43 = vmul.f32 %v7961_v40, %v8581_v37  ;;  %v1229_v40 = vrot.slane %v1216_v60, %v8700_v39 }
 0x251   : > { %v1182_v45 = vpack.c.bf16 %v1179_v42, %v1178_v41  ;;  %v1171_v26 = vmul.f32 %v1166_v23, %v1162_v43 }
 0x253   : > { %1404 = vmatmul.mubr.bf16.gmra.mxu1 %v1182_v45  ;;  %7150 = vmatmul.mubr.bf16.gmra.mxu0 %v1182_v45  ;;  %v1180_v30 = vadd.f32 %v1175_v29, %v1171_v26 }
 0x254   : > { %1413 = vmatprep.mubr.bf16.mxu1 %v8260_v59  ;;  %7153 = vmatprep.mubr.msk.bf16.mxu0 %vm8261_vm0, %v8259_v14 }
 0x255   : > { %v1183_v46 = vpack.c.bf16 %v1180_v30, %v1180_v30 }
 0x25b   : > { %1414 = vmatmul.mubr.bf16.gmra.mxu1 %v1183_v46  ;;  %7154 = vmatmul.mubr.bf16.gmra.mxu0 %v1183_v46 }
 0x25c   : > { %7163 = vmatprep.mubr.msk.bf16.mxu1 %vm8261_vm0, %v8259_v14  ;;  %7199 = vmatprep.mubr.msk.bf16.mxu0 %vm8261_vm0, %v8259_v14 }
 0x30b   : > { %v1395_v37 = vpop.f32.mrf.mxu1  ;;  %v8678_v47 = vpop.f32.mrf.mxu0 }
 0x30c   : > { %v1396_v31 = vadd.f32 %v1395_v37, %v1221_v16 }
 0x30d   : > { %v1397_v48 = vpop.f32.mrf.mxu1  ;;  %v7147_v49 = vpop.f32.mrf.mxu0 }
 0x30e   : > { %v1398_v17 = vadd.f32 %v1397_v48, %v1225_v0  ;;  %v1457_v48 = vadd.f32 %v8678_v47, %v1229_v40 }
 0x30f   : > { %v1399_v50 = vpop.f32.mrf.mxu1  ;;  %v8680_v51 = vpop.f32.mrf.mxu0 }
 0x310   : > { %v1400_v23 = vadd.f32 %v1399_v50, %v1221_v16  ;;  %v1460_v46 = vadd.f32 %v8680_v51, %v1229_v40 }
 0x311   : > { %v1401_v52 = vpop.f32.mrf.mxu1  ;;  %v7148_v54 = vpop.f32.mrf.mxu0 }
 0x312   : > { %v1402_v9 = vadd.f32 %v1401_v52, %v1225_v0  ;;  %v1478_v33 = vpack.c.bf16 %v1400_v23, %v1396_v31  ;;  %v8731_v49 = vpack.c.bf16 %v1460_v46, %v1457_v48 }
 0x313   : > { %v1405_v55 = vpop.f32.mrf.mxu1  ;;  %v8682_v56 = vpop.f32.mrf.mxu0 }
 0x314   : > { %v1481_v25 = vpack.c.bf16 %v1402_v9, %v1398_v17  ;;  %v1406_v35 = vadd.f32 %v1405_v55, %v1221_v16  ;;  %v1465_v30 = vadd.f32 %v8682_v56, %v1229_v40 }
 0x315   : > { %v1407_v57 = vpop.f32.mrf.mxu1  ;;  %v7151_v58 = vpop.f32.mrf.mxu0 }
 0x316   : > { %v1408_v3 = vadd.f32 %v1407_v57, %v1225_v0  ;;  %v1498_v42 = vsel %vm1487_vm1, %v1481_v25, 0 }
 0x317   : > { %v1409_v61 = vpop.f32.mrf.mxu1  ;;  %v1467_v63 = vpop.f32.mrf.mxu0 }
 0x318   : > { %v1410_v34 = vadd.f32 %v1409_v61, %v1221_v16  ;;  %v1468_v45 = vadd.f32 %v1467_v63, %v1229_v40 }
 0x319   : > { %v1411_v1 = vpop.f32.mrf.mxu1  ;;  %v7152_v2 = vpop.f32.mrf.mxu0 }
 0x31a   : > { %v1412_v4 = vadd.f32 %v1411_v1, %v1225_v0  ;;  %v1479_v18 = vpack.c.bf16 %v1410_v34, %v1406_v35  ;;  %v8724_v37 = vpack.c.bf16 %v1468_v45, %v1465_v30  ;;  %v8816_v45 = vld [vmem:[%s10790_s3 + $0x10] sm:$0xff]  ;;  %v8824_v30 = vld [vmem:[%s10790_s3 + $0x18] sm:$0xff] }
 0x31b   : > { %v1415_v6 = vpop.f32.mrf.mxu1  ;;  %v1472_v7 = vpop.f32.mrf.mxu0 }
 0x31c   : > { %v1482_v11 = vpack.c.bf16 %v1412_v4, %v1408_v3  ;;  %v1416_v36 = vadd.f32 %v1415_v6, %v1221_v16  ;;  %v1473_v41 = vadd.f32 %v1472_v7, %v1229_v40 }
 0x31d   : > { %v1417_v12 = vpop.f32.mrf.mxu1  ;;  %v7155_v15 = vpop.f32.mrf.mxu0 }
 0x31e   : > { %v1418_v19 = vadd.f32 %v1417_v12, %v1225_v0  ;;  %1704 = vrot.lane.b32.xlu1 %v1482_v11, %s8262_s24  ;;  %v1501_v38 = vsel %vm1487_vm1, %v1482_v11, 0  ;;  %v1480_v22 = vpack.c.bf16 %v1416_v36, %v1416_v36  ;;  %v8710_v43 = vpack.c.bf16 %v1473_v41, %v1473_v41 }
 0x31f   : > { %v1419_v20 = vpop.f32.mrf.mxu1  ;;  %v1475_v21 = vpop.f32.mrf.mxu0 }
 0x320   : > { %v1483_v27 = vpack.c.bf16 %v1418_v19, %v1418_v19  ;;  %v1632_v26 = vsel %vm1630_vm2, %v8710_v43, 0  ;;  %v8792_v21 = vld [vmem:[%s10790_s3] sm:$0xff] }
 0x321   : > { %v1420_v28 = vpop.f32.mrf.mxu1  ;;  %v7156_v29 = vpop.f32.mrf.mxu0 }
 0x322   : > { %1706 = vrot.lane.b32.xlu0 %v1483_v27, %s8262_s24  ;;  %1702 = vrot.lane.b32.xlu1 %v1481_v25, %s8262_s24  ;;  %v1504_v32 = vsel %vm1487_vm1, %v1483_v27, 0  ;;  %v8800_v28 = vld [vmem:[%s10790_s3 + $0x8] sm:$0xff] }
 0x323   : > { %7158 = vmatpush3.bf16.xpose.msra.mxu1 %v1504_v32 }
 0x324   : > { %7159 = vmatprep.subr.bf16.mxu1 %v8259_v14 }
 0x326   : > { %1929 = vrot.lane.b32.xlu0 %v1483_v27, %s8263_s27  ;;  %1693 = vrot.lane.b32.xlu1 %v1478_v33, %s8262_s24 }
 0x32a   : > { %1927 = vrot.lane.b32.xlu0 %v1482_v11, %s8263_s27  ;;  %1695 = vrot.lane.b32.xlu1 %v1479_v18, %s8262_s24 }
 0x32b   : > { %7160 = vmatpush3.bf16.xpose.msra.mxu1 %v1501_v38 }
 0x32c   : > { %7161 = vmatprep.subr.bf16.mxu1 %v8259_v14 }
 0x32e   : > { %1925 = vrot.lane.b32.xlu0 %v1481_v25, %s8263_s27  ;;  %1697 = vrot.lane.b32.xlu1 %v1480_v22, %s8262_s24 }
 0x332   : > { %2149 = vrot.lane.b32.xlu0 %v1483_v27, %s8264_s28  ;;  %1919 = vrot.lane.b32.xlu1 %v1478_v33, %s8263_s27 }
 0x333   : > { %7162 = vmatpush3.bf16.xpose.msra.mxu1 %v1498_v42 }
 0x334   : > { %7175 = vmatprep.subr.bf16.mxu1 %v8259_v14 }
 0x336   : > { %2147 = vrot.lane.b32.xlu0 %v1482_v11, %s8264_s28  ;;  %1921 = vrot.lane.b32.xlu1 %v1479_v18, %s8263_s27 }
 0x33a   : > { %2145 = vrot.lane.b32.xlu0 %v1481_v25, %s8264_s28  ;;  %7164 = vmatmul.mubr.msk.bf16.vlgmr.msra.gmra.mxu1 %vm1487_vm1, %v1478_v33 }
 0x33b   : > { %1923 = vrot.lane.b32.xlu1 %v1480_v22, %s8263_s27  ;;  %7176 = vmatpush3.bf16.msra.mxu1 %v1632_v26 }
 0x33c   : > { %7177 = vmatprep.subr.bf16.mxu1 %v8259_v14  ;;  %7167 = vmatprep.mubr.msk.bf16.mxu1 %vm8261_vm0, %v8259_v14 }
 0x33e   : > { %2141 = vrot.lane.b32.xlu0 %v1479_v18, %s8264_s28 }
 0x33f   : > { %2139 = vrot.lane.b32.xlu1 %v1478_v33, %s8264_s28  ;;  %7178 = vmatpush3.bf16.msra.mxu1 %v8724_v37 }
 0x340   : > { %7179 = vmatprep.subr.bf16.mxu1 %v8259_v14 }
 0x342   : > { %1847 = vrot.lane.b32.xlu0 %v8710_v43, %s8262_s24  ;;  %7168 = vmatmul.mubr.msk.bf16.gmra.mxu1 %vm1487_vm1, %v1479_v18 }
 0x343   : > { %2143 = vrot.lane.b32.xlu1 %v1480_v22, %s8264_s28  ;;  %7180 = vmatpush3.bf16.msra.mxu1 %v8731_v49 }
 0x344   : > { %7171 = vmatprep.mubr.msk.bf16.mxu1 %vm8261_vm0, %v8259_v14  ;;  %7211 = vmatprep.subr.bf16.mxu1 %v8259_v14 }
 0x34a   : > { %7172 = vmatmul.mubr.msk.bf16.gmra.mxu1 %vm1487_vm1, %v1480_v22 }
 0x34b   : > { %7181 = vmatprep.mubr.msk.bf16.mxu1 %vm8261_vm0, %v8259_v14 }
 0x390   : > { %v1705_v51 = vpop.permute.xlu1 %1704 }
 0x391   : > { %v1721_v52 = vsel %vm1487_vm1, %v1705_v51, 0 }
 0x394   : > { %v1707_v47 = vpop.permute.xlu0 %1706  ;;  %v1703_v54 = vpop.permute.xlu1 %1702 }
 0x395   : > { %v1724_v50 = vsel %vm1487_vm1, %v1707_v47, 0  ;;  %v1718_v55 = vsel %vm1487_vm1, %v1703_v54, 0  ;;  %v8834_v47 = vld [vmem:[%s10790_s3 + $0x20] sm:$0xff] }
 0x396   : > { %7194 = vmatpush3.bf16.xpose.msra.mxu0 %v1724_v50 }
 0x397   : > { %7195 = vmatprep.subr.bf16.mxu0 %v8259_v14 }
 0x398   : > { %v1930_v56 = vpop.permute.xlu0 %1929  ;;  %v1694_v57 = vpop.permute.xlu1 %1693 }
 0x399   : > { %v1947_v58 = vsel %vm1487_vm1, %v1930_v56, 0 }
 0x39c   : > { %v1928_v60 = vpop.permute.xlu0 %1927  ;;  %v1696_v61 = vpop.permute.xlu1 %1695 }
 0x39d   : > { %v1944_v63 = vsel %vm1487_vm1, %v1928_v60, 0 }
 0x39e   : > { %7196 = vmatpush3.bf16.xpose.msra.mxu0 %v1721_v52 }
 0x39f   : > { %7197 = vmatprep.subr.bf16.mxu0 %v8259_v14 }
 0x3a0   : > { %v1926_v0 = vpop.permute.xlu0 %1925  ;;  %v1698_v1 = vpop.permute.xlu1 %1697 }
 0x3a1   : > { %v1941_v2 = vsel %vm1487_vm1, %v1926_v0, 0 }
 0x3a4   : > { %v2150_v3 = vpop.permute.xlu0 %2149  ;;  %v1920_v4 = vpop.permute.xlu1 %1919 }
 0x3a5   : > { %v2167_v6 = vsel %vm1487_vm1, %v2150_v3, 0 }
 0x3a6   : > { %7198 = vmatpush3.bf16.xpose.msra.mxu0 %v1718_v55 }
 0x3a7   : > { %7229 = vmatprep.subr.bf16.mxu0 %v8259_v14 }
 0x3a8   : > { %v2148_v7 = vpop.permute.xlu0 %2147  ;;  %v1922_v9 = vpop.permute.xlu1 %1921 }
 0x3a9   : > { %v2164_v11 = vsel %vm1487_vm1, %v2148_v7, 0 }
 0x3ac   : > { %v2146_v12 = vpop.permute.xlu0 %2145 }
 0x3ad   : > { %7200 = vmatmul.mubr.msk.bf16.vlgmr.msra.gmra.mxu0 %vm1487_vm1, %v1694_v57  ;;  %v1924_v15 = vpop.permute.xlu1 %1923  ;;  %v2161_v16 = vsel %vm1487_vm1, %v2146_v12, 0 }
 0x3ae   : > { %7230 = vmatpush3.bf16.xpose.msra.mxu0 %v1947_v58  ;;  %7203 = vmatprep.mubr.msk.bf16.mxu0 %vm8261_vm0, %v8259_v14 }
 0x3af   : > { %7231 = vmatprep.subr.bf16.mxu0 %v8259_v14 }
 0x3b0   : > { %v2142_v19 = vpop.permute.xlu0 %2141 }
 0x3b1   : > { %v2140_v17 = vpop.permute.xlu1 %2139 }
 0x3b5   : > { %7204 = vmatmul.mubr.msk.bf16.gmra.mxu0 %vm1487_vm1, %v1696_v61  ;;  %v2144_v20 = vpop.permute.xlu1 %2143 }
 0x3b6   : > { %7232 = vmatpush3.bf16.xpose.msra.mxu0 %v1944_v63  ;;  %7207 = vmatprep.mubr.msk.bf16.mxu0 %vm8261_vm0, %v8259_v14 }
 0x3b7   : > { %7233 = vmatprep.subr.bf16.mxu0 %v8259_v14 }
 0x3bd   : > { %7208 = vmatmul.mubr.msk.bf16.gmra.mxu0 %vm1487_vm1, %v1698_v1 }
 0x3be   : > { %7234 = vmatpush3.bf16.xpose.msra.mxu0 %v1941_v2  ;;  %7235 = vmatprep.mubr.msk.bf16.mxu0 %vm8261_vm0, %v8259_v14 }
 0x3bf   : > { %7265 = vmatprep.subr.bf16.mxu0 %v8259_v14 }
 0x3c5   : > { %7236 = vmatmul.mubr.msk.bf16.vlgmr.msra.gmra.mxu0 %vm1487_vm1, %v1920_v4 }
 0x3c6   : > { %7266 = vmatpush3.bf16.xpose.msra.mxu0 %v2167_v6  ;;  %7239 = vmatprep.mubr.msk.bf16.mxu0 %vm8261_vm0, %v8259_v14 }
 0x3c7   : > { %7267 = vmatprep.subr.bf16.mxu0 %v8259_v14 }
 0x3cd   : > { %7240 = vmatmul.mubr.msk.bf16.gmra.mxu0 %vm1487_vm1, %v1922_v9 }
 0x3ce   : > { %7268 = vmatpush3.bf16.xpose.msra.mxu0 %v2164_v11  ;;  %7243 = vmatprep.mubr.msk.bf16.mxu0 %vm8261_vm0, %v8259_v14 }
 0x3cf   : > { %7269 = vmatprep.subr.bf16.mxu0 %v8259_v14 }
 0x3d5   : > { %7244 = vmatmul.mubr.msk.bf16.gmra.mxu0 %vm1487_vm1, %v1924_v15 }
 0x3d6   : > { %7270 = vmatpush3.bf16.xpose.msra.mxu0 %v2161_v16  ;;  %7271 = vmatprep.mubr.msk.bf16.mxu0 %vm8261_vm0, %v8259_v14 }
 0x3d7   : > { %7301 = vmatprep.subr.bf16.mxu0 %v8259_v14 }
 0x3dd   : > { %7272 = vmatmul.mubr.msk.bf16.vlgmr.msra.gmra.mxu0 %vm1487_vm1, %v2140_v17 }
 0x3de   : > { %7275 = vmatprep.mubr.msk.bf16.mxu0 %vm8261_vm0, %v8259_v14 }
 0x3e5   : > { %7276 = vmatmul.mubr.msk.bf16.gmra.mxu0 %vm1487_vm1, %v2142_v19  ;;  %v8868_v19 = vpop.permute.xlu0 %1847 }
 0x3e6   : > { %7279 = vmatprep.mubr.msk.bf16.mxu0 %vm8261_vm0, %v8259_v14 }
 0x3ed   : > { %7280 = vmatmul.mubr.msk.bf16.gmra.mxu0 %vm1487_vm1, %v2144_v20 }
 0x3ee   : > { %7317 = vmatprep.mubr.msk.bf16.mxu0 %vm8261_vm0, %v8259_v14 }
 0x3fa   : > { %v1540_v23 = vpop.f32.mrf.mxu1 }
 0x3fb   : > { %v8795_v25 = vadd.f32 %v1540_v23, %v8792_v21 }
 0x3fc   : > { %v7165_v27 = vpop.f32.mrf.mxu1 }
 0x3fd   : > { %v1563_v29 = vsel %vm1562_vm3, %v8795_v25, -inf }
 0x3fe   : > { %v1543_v31 = vpop.f32.mrf.mxu1  ;;  %1564 = vmax.xlane.f32.xlu0 %v1563_v29 }
 0x3ff   : > { %v8805_v32 = vadd.f32 %v1543_v31, %v8800_v28 }
 0x400   : > { %v7166_v33 = vpop.f32.mrf.mxu1 }
 0x401   : > { %v1566_v34 = vsel %vm1562_vm3, %v8805_v32, -inf }
 0x402   : > { %1567 = vmax.xlane.f32.xlu1 %v1566_v34  ;;  %v1548_v35 = vpop.f32.mrf.mxu1 }
 0x403   : > { %v8819_v26 = vadd.f32 %v1548_v35, %v8816_v45 }
 0x404   : > { %v7169_v18 = vpop.f32.mrf.mxu1 }
 0x405   : > { %v1569_v48 = vsel %vm1562_vm3, %v8819_v26, -inf }
 0x406   : > { %v1551_v36 = vpop.f32.mrf.mxu1 }
 0x407   : > { %v8827_v46 = vadd.f32 %v1551_v36, %v8824_v30 }
 0x408   : > { %v7170_v38 = vpop.f32.mrf.mxu1 }
 0x409   : > { %v1572_v51 = vsel %vm1562_vm3, %v8827_v46, -inf }
 0x40a   : > { %v1556_v22 = vpop.f32.mrf.mxu1 }
 0x40b   : > { %v8837_v50 = vadd.f32 %v1556_v22, %v8834_v47 }
 0x40c   : > { %v7173_v40 = vpop.f32.mrf.mxu1 }
 0x40d   : > { %v1575_v52 = vsel %vm1562_vm3, %v8837_v50, -inf }
 0x40e   : > { %v1559_v41 = vpop.f32.mrf.mxu1 }
 0x410   : > { %v7174_v42 = vpop.f32.mrf.mxu1 }
 0x413   : > { %1845 = vrot.lane.b32.xlu1 %v8724_v37, %s8262_s24 }
 0x414   : > { %1843 = vrot.lane.b32.xlu0 %v8731_v49, %s8262_s24 }
 0x433   : > { %1570 = vmax.xlane.f32.xlu0 %v1569_v48 }
 0x437   : > { %1573 = vmax.xlane.f32.xlu0 %v1572_v51 }
 0x43b   : > { %1576 = vmax.xlane.f32.xlu0 %v1575_v52 }
 0x46d   : > { %v1760_v54 = vpop.f32.mrf.mxu0 }
 0x46e   : > { %v8844_v55 = vadd.f32 %v1760_v54, %v8792_v21 }
 0x46f   : > { %v7201_v56 = vpop.f32.mrf.mxu0 }
 0x470   : > { %v1782_v57 = vsel %vm1562_vm3, %v8844_v55, -inf }
 0x471   : > { %v1763_v58 = vpop.f32.mrf.mxu0  ;;  %1783 = vmax.xlane.f32.xlu1 %v1782_v57 }
 0x472   : > { %v8849_v60 = vadd.f32 %v1763_v58, %v8800_v28 }
 0x473   : > { %v7202_v61 = vpop.f32.mrf.mxu0 }
 0x474   : > { %v1785_v63 = vsel %vm1562_vm3, %v8849_v60, -inf }
 0x475   : > { %v1768_v0 = vpop.f32.mrf.mxu0  ;;  %1786 = vmax.xlane.f32.xlu0 %v1785_v63 }
 0x476   : > { %v8854_v1 = vadd.f32 %v1768_v0, %v8816_v45 }
 0x477   : > { %v7205_v2 = vpop.f32.mrf.mxu0 }
 0x478   : > { %v1788_v3 = vsel %vm1562_vm3, %v8854_v1, -inf }
 0x479   : > { %1789 = vmax.xlane.f32.xlu1 %v1788_v3  ;;  %v1771_v4 = vpop.f32.mrf.mxu0 }
 0x47a   : > { %v8859_v6 = vadd.f32 %v1771_v4, %v8824_v30 }
 0x47b   : > { %v7206_v7 = vpop.f32.mrf.mxu0 }
 0x47c   : > { %v1791_v9 = vsel %vm1562_vm3, %v8859_v6, -inf }
 0x47d   : > { %v1776_v11 = vpop.f32.mrf.mxu0  ;;  %1792 = vmax.xlane.f32.xlu0 %v1791_v9 }
 0x47e   : > { %v8864_v12 = vadd.f32 %v1776_v11, %v8834_v47 }
 0x47f   : > { %v7209_v15 = vpop.f32.mrf.mxu0 }
 0x480   : > { %v1794_v16 = vsel %vm1562_vm3, %v8864_v12, -inf }
 0x481   : > { %1795 = vmax.xlane.f32.xlu1 %v1794_v16  ;;  %v1779_v17 = vpop.f32.mrf.mxu0 }
 0x483   : > { %v7210_v20 = vpop.f32.mrf.mxu0 }
 0x485   : > { %v1983_v23 = vpop.f32.mrf.mxu0 }
 0x486   : > { %v8871_v27 = vadd.f32 %v1983_v23, %v8792_v21 }
 0x487   : > { %v1565_v29 = vpop.xlane.xlu0 %1564  ;;  %v7237_v31 = vpop.f32.mrf.mxu0 }
 0x488   : > { %v1578_v33 = vsub.f32 %v8795_v25, %v1565_v29  ;;  %v2005_v34 = vsel %vm1562_vm3, %v8871_v27, -inf }
 0x489   : > { %v1986_v35 = vpop.f32.mrf.mxu0  ;;  %2006 = vmax.xlane.f32.xlu0 %v2005_v34 }
 0x48a   : > { %v1583_v18 = vmul.f32 1.442695, %v1578_v33  ;;  %v8877_v36 = vadd.f32 %v1986_v35, %v8800_v28 }
 0x48b   : > { %v7238_v38 = vpop.f32.mrf.mxu0  ;;  %v1568_v22 = vpop.xlane.xlu1 %1567 }
 0x48c   : > { %7962 = vpow2.f32 %v1583_v18  ;;  %v2008_v40 = vsel %vm1562_vm3, %v8877_v36, -inf  ;;  %v1579_v41 = vsub.f32 %v8805_v32, %v1568_v22 }
 0x48d   : > { %2009 = vmax.xlane.f32.xlu1 %v2008_v40  ;;  %v1991_v42 = vpop.f32.mrf.mxu0 }
 0x48e   : > { %v8883_v25 = vadd.f32 %v1991_v42, %v8816_v45  ;;  %v1585_v48 = vmul.f32 1.442695, %v1579_v41  ;;  %v8915_v42 = vpop.permute.xlu0 %1843 }
 0x48f   : > { %v7241_v51 = vpop.f32.mrf.mxu0 }
 0x490   : > { %v2011_v52 = vsel %vm1562_vm3, %v8883_v25, -inf  ;;  %7964 = vpow2.f32 %v1585_v48 }
 0x491   : > { %v1994_v54 = vpop.f32.mrf.mxu0  ;;  %2012 = vmax.xlane.f32.xlu0 %v2011_v52 }
 0x492   : > { %v8888_v56 = vadd.f32 %v1994_v54, %v8824_v30 }
 0x493   : > { %v7242_v57 = vpop.f32.mrf.mxu0 }
 0x494   : > { %v2014_v32 = vsel %vm1562_vm3, %v8888_v56, -inf }
 0x495   : > { %2015 = vmax.xlane.f32.xlu1 %v2014_v32  ;;  %v1999_v58 = vpop.f32.mrf.mxu0 }
 0x496   : > { %v8893_v61 = vadd.f32 %v1999_v58, %v8834_v47 }
 0x497   : > { %v7245_v63 = vpop.f32.mrf.mxu0 }
 0x498   : > { %v2017_v0 = vsel %vm1562_vm3, %v8893_v61, -inf }
 0x499   : > { %v8897_v2 = vpop.eup %7962  ;;  %v2002_v3 = vpop.f32.mrf.mxu0  ;;  %2018 = vmax.xlane.f32.xlu0 %v2017_v0 }
 0x49a   : > { %v1593_v4 = vsel %vm1562_vm3, %v8897_v2, 0.0 }
 0x49b   : > { %1594 = vadd.xlane.f32.xlu1 %v1593_v4  ;;  %v7246_v7 = vpop.f32.mrf.mxu0 }
 0x49c   : > { %v8937_v7 = vpop.permute.xlu1 %1845 }
 0x49d   : > { %v2203_v9 = vpop.f32.mrf.mxu0  ;;  %v8901_v11 = vpop.eup %7964 }
 0x49e   : > { %v8904_v15 = vadd.f32 %v2203_v9, %v8792_v21  ;;  %v1596_v17 = vsel %vm1562_vm3, %v8901_v11, 0.0 }
 0x49f   : > { %v7273_v16 = vpop.f32.mrf.mxu0  ;;  %1597 = vadd.xlane.f32.xlu0 %v1596_v17 }
 0x4a0   : > { %v2225_v20 = vsel %vm1562_vm3, %v8904_v15, -inf }
 0x4a1   : > { %2226 = vmax.xlane.f32.xlu1 %v2225_v20  ;;  %v2206_v23 = vpop.f32.mrf.mxu0 }
 0x4a2   : > { %v8911_v29 = vadd.f32 %v2206_v23, %v8800_v28 }
 0x4a3   : > { %v7274_v31 = vpop.f32.mrf.mxu0 }
 0x4a4   : > { %v2228_v33 = vsel %vm1562_vm3, %v8911_v29, -inf }
 0x4a5   : > { %v2211_v34 = vpop.f32.mrf.mxu0  ;;  %2229 = vmax.xlane.f32.xlu0 %v2228_v33 }
 0x4a6   : > { %v8922_v58 = vadd.f32 %v2211_v34, %v8816_v45 }
 0x4a7   : > { %v7277_v21 = vpop.f32.mrf.mxu0 }
 0x4a9   : > { %v2214_v35 = vpop.f32.mrf.mxu0 }
 0x4ab   : > { %v7278_v18 = vpop.f32.mrf.mxu0 }
 0x4ad   : > { %v2219_v38 = vpop.f32.mrf.mxu0 }
 0x4ae   : > { %v8943_v21 = vadd.f32 %v2219_v38, %v8834_v47 }
 0x4af   : > { %v7281_v22 = vpop.f32.mrf.mxu0 }
 0x4b1   : > { %v2222_v40 = vpop.f32.mrf.mxu0 }
 0x4b2   : > { %v8949_v40 = vadd.f32 %v2214_v35, %v8824_v30 }
 0x4b3   : > { %v7282_v41 = vpop.f32.mrf.mxu0 }
 0x4bc   : > { %v1571_v48 = vpop.xlane.xlu0 %1570 }
 0x4bd   : > { %v1580_v51 = vsub.f32 %v8819_v26, %v1571_v48  ;;  %v2231_v26 = vsel %vm1562_vm3, %v8922_v58, -inf }
 0x4bf   : > { %v1587_v28 = vmul.f32 1.442695, %v1580_v51 }
 0x4c0   : > { %v1574_v52 = vpop.xlane.xlu0 %1573 }
 0x4c1   : > { %7966 = vpow2.f32 %v1587_v28  ;;  %v1581_v54 = vsub.f32 %v8827_v46, %v1574_v52 }
 0x4c3   : > { %v1589_v57 = vmul.f32 1.442695, %v1581_v54 }
 0x4c4   : > { %v1577_v45 = vpop.xlane.xlu0 %1576 }
 0x4c5   : > { %7968 = vpow2.f32 %v1589_v57  ;;  %v1582_v46 = vsub.f32 %v8837_v50, %v1577_v45 }
 0x4c7   : > { %v1591_v4 = vmul.f32 1.442695, %v1582_v46 }
 0x4c9   : > { %7970 = vpow2.f32 %v1591_v4 }
 0x4ce   : > { %v8919_v32 = vpop.eup %7966 }
 0x4cf   : > { %v1599_v63 = vsel %vm1562_vm3, %v8919_v32, 0.0 }
 0x4d0   : > { %1600 = vadd.xlane.f32.xlu1 %v1599_v63 }
 0x4d2   : > { %v8926_v0 = vpop.eup %7968 }
 0x4d3   : > { %v1602_v3 = vsel %vm1562_vm3, %v8926_v0, 0.0 }
 0x4d4   : > { %2232 = vmax.xlane.f32.xlu1 %v2231_v26  ;;  %1603 = vadd.xlane.f32.xlu0 %v1602_v3 }
 0x4d6   : > { %v8945_v50 = vpop.eup %7970 }
 0x4d7   : > { %v1605_v41 = vsel %vm1562_vm3, %v8945_v50, 0.0 }
 0x4e5   : > { %2067 = vrot.lane.b32.xlu1 %v8710_v43, %s8263_s27 }
 0x4ea   : > { %2065 = vrot.lane.b32.xlu0 %v8724_v37, %s8263_s27 }
 0x4fa   : > { %v1784_v9 = vpop.xlane.xlu1 %1783 }
 0x4fb   : > { %v1797_v16 = vsub.f32 %v8844_v55, %v1784_v9 }
 0x4fd   : > { %v1802_v17 = vmul.f32 1.442695, %v1797_v16 }
 0x4fe   : > { %v1787_v20 = vpop.xlane.xlu0 %1786 }
 0x4ff   : > { %7972 = vpow2.f32 %v1802_v17  ;;  %v1798_v23 = vsub.f32 %v8849_v60, %v1787_v20  ;;  %v2237_v60 = vsel %vm1562_vm3, %v8943_v21, -inf }
 0x501   : > { %v1804_v31 = vmul.f32 1.442695, %v1798_v23 }
 0x502   : > { %v1790_v33 = vpop.xlane.xlu1 %1789 }
 0x503   : > { %7974 = vpow2.f32 %v1804_v31  ;;  %v1799_v34 = vsub.f32 %v8854_v1, %v1790_v33 }
 0x505   : > { %v1806_v18 = vmul.f32 1.442695, %v1799_v34 }
 0x506   : > { %v1793_v22 = vpop.xlane.xlu0 %1792 }
 0x507   : > { %7976 = vpow2.f32 %v1806_v18  ;;  %v1800_v55 = vsub.f32 %v8859_v6, %v1793_v22  ;;  %v2234_v6 = vsel %vm1562_vm3, %v8949_v40, -inf }
 0x509   : > { %v1808_v1 = vmul.f32 1.442695, %v1800_v55  ;;  %2238 = vmax.xlane.f32.xlu1 %v2237_v60  ;;  %1606 = vadd.xlane.f32.xlu0 %v1605_v41 }
 0x50a   : > { %v1796_v47 = vpop.xlane.xlu1 %1795 }
 0x50b   : > { %7978 = vpow2.f32 %v1808_v1  ;;  %v1801_v38 = vsub.f32 %v8864_v12, %v1796_v47 }
 0x50c   : > { %v8956_v48 = vpop.eup %7972 }
 0x50d   : > { %v1810_v30 = vmul.f32 1.442695, %v1801_v38  ;;  %2235 = vmax.xlane.f32.xlu0 %v2234_v6  ;;  %v1812_v35 = vsel %vm1562_vm3, %v8956_v48, 0.0 }
 0x50e   : > { %1813 = vadd.xlane.f32.xlu1 %v1812_v35 }
 0x50f   : > { %7980 = vpow2.f32 %v1810_v30 }
 0x510   : > { %v8962_v51 = vpop.eup %7974 }
 0x511   : > { %v1815_v28 = vsel %vm1562_vm3, %v8962_v51, 0.0 }
 0x512   : > { %1816 = vadd.xlane.f32.xlu0 %v1815_v28  ;;  %v2007_v52 = vpop.xlane.xlu0 %2006 }
 0x513   : > { %v2020_v12 = vsub.f32 %v8871_v27, %v2007_v52 }
 0x514   : > { %v8967_v54 = vpop.eup %7976 }
 0x515   : > { %v2025_v57 = vmul.f32 1.442695, %v2020_v12  ;;  %v1818_v63 = vsel %vm1562_vm3, %v8967_v54, 0.0 }
 0x516   : > { %1819 = vadd.xlane.f32.xlu1 %v1818_v63  ;;  %v2010_v45 = vpop.xlane.xlu1 %2009 }
 0x517   : > { %7982 = vpow2.f32 %v2025_v57  ;;  %v2021_v28 = vsub.f32 %v8877_v36, %v2010_v45 }
 0x518   : > { %v8971_v26 = vpop.eup %7978 }
 0x519   : > { %v1821_v3 = vsel %vm1562_vm3, %v8971_v26, 0.0  ;;  %v2027_v63 = vmul.f32 1.442695, %v2021_v28 }
 0x51a   : > { %1822 = vadd.xlane.f32.xlu0 %v1821_v3  ;;  %v2013_v46 = vpop.xlane.xlu0 %2012 }
 0x51b   : > { %v2022_v4 = vsub.f32 %v8883_v25, %v2013_v46 }
 0x51c   : > { %v8976_v9 = vpop.eup %7980 }
 0x51d   : > { %v2029_v27 = vmul.f32 1.442695, %v2022_v4  ;;  %v1824_v16 = vsel %vm1562_vm3, %v8976_v9, 0.0  ;;  %v1861_v4 = vsel %vm1630_vm2, %v8868_v19, 0 }
 0x51e   : > { %v2016_v17 = vpop.xlane.xlu1 %2015  ;;  %1825 = vadd.xlane.f32.xlu1 %v1824_v16 }
 0x51f   : > { %7984 = vpow2.f32 %v2029_v27  ;;  %v2023_v20 = vsub.f32 %v8888_v56, %v2016_v17 }
 0x521   : > { %v2031_v23 = vmul.f32 1.442695, %v2023_v20 }
 0x522   : > { %v2019_v31 = vpop.xlane.xlu0 %2018 }
 0x523   : > { %7986 = vpow2.f32 %v2031_v23  ;;  %v2024_v33 = vsub.f32 %v8893_v61, %v2019_v31 }
 0x524   : > { %v8982_v34 = vpop.eup %7982  ;;  %v1595_v25 = vpop.xlane.xlu1 %1594 }
 0x525   : > { %v2033_v18 = vmul.f32 1.442695, %v2024_v33  ;;  %v2035_v22 = vsel %vm1562_vm3, %v8982_v34, 0.0 }
 0x526   : > { %2036 = vadd.xlane.f32.xlu1 %v2035_v22 }
 0x527   : > { %7988 = vpow2.f32 %v2033_v18 }
 0x528   : > { %7990 = vrcp.f32 %v1595_v25  ;;  %v1598_v55 = vpop.xlane.xlu0 %1597 }
 0x529   : > { %7992 = vrcp.f32 %v1598_v55 }
 0x52a   : > { %v2227_v52 = vpop.xlane.xlu1 %2226 }
 0x52b   : > { %v2240_v3 = vsub.f32 %v8904_v15, %v2227_v52 }
 0x52c   : > { %v8986_v60 = vpop.eup %7984 }
 0x52d   : > { %v2041_v56 = vsel %vm1562_vm3, %v8986_v60, 0.0  ;;  %v2245_v36 = vmul.f32 1.442695, %v2240_v3 }
 0x52e   : > { %2042 = vadd.xlane.f32.xlu1 %v2041_v56  ;;  %v2230_v41 = vpop.xlane.xlu0 %2229 }
 0x52f   : > { %v2241_v61 = vsub.f32 %v8911_v29, %v2230_v41 }
 0x530   : > { %v8991_v1 = vpop.eup %7986  ;;  %2063 = vrot.lane.b32.xlu0 %v8731_v49, %s8263_s27 }
 0x531   : > { %v2247_v47 = vmul.f32 1.442695, %v2241_v61  ;;  %v2044_v38 = vsel %vm1562_vm3, %v8991_v1, 0.0 }
 0x532   : > { %2045 = vadd.xlane.f32.xlu1 %v2044_v38 }
 0x533   : > { %7994 = vpow2.f32 %v2247_v47 }
 0x534   : > { %v8997_v6 = vpop.eup %7988  ;;  %7996 = vpow2.f32 %v2027_v63 }
 0x535   : > { %v7991_v30 = vpop.eup %7990  ;;  %v2047_v35 = vsel %vm1562_vm3, %v8997_v6, 0.0  ;;  %7998 = vpow2.f32 %v2245_v36 }
 0x536   : > { %2048 = vadd.xlane.f32.xlu1 %v2047_v35  ;;  %v7993_v29 = vpop.eup %7992  ;;  %v1613_v12 = vmul.f32 %v7991_v30, %v8897_v2 }
 0x537   : > { %v1614_v57 = vmul.f32 %v7993_v29, %v8901_v11 }
 0x539   : > { %v1618_v46 = vpack.c.bf16 %v1614_v57, %v1613_v12 }
 0x53b   : > { %7182 = vmatmul.mubr.msk.bf16.vlgmr.msra.gmra.mxu1 %vm1562_vm3, %v1618_v46 }
 0x53c   : > { %7212 = vmatpush3.bf16.msra.mxu1 %v1861_v4  ;;  %7185 = vmatprep.mubr.msk.bf16.mxu1 %vm8261_vm0, %v8259_v14 }
 0x53d   : > { %7213 = vmatprep.subr.bf16.mxu1 %v8259_v14 }
 0x540   : > { %v9011_v2 = vpop.eup %7994  ;;  %7214 = vmatpush3.bf16.msra.mxu1 %v8937_v7 }
 0x541   : > { %v2258_v11 = vsel %vm1562_vm3, %v9011_v2, 0.0  ;;  %7215 = vmatprep.subr.bf16.mxu1 %v8259_v14  ;;  %v9019_v19 = vpop.eup %7996 }
 0x542   : > { %2259 = vadd.xlane.f32.xlu1 %v2258_v11  ;;  %v2038_v15 = vsel %vm1562_vm3, %v9019_v19, 0.0  ;;  %v9023_v45 = vpop.eup %7998 }
 0x543   : > { %v2255_v7 = vsel %vm1562_vm3, %v9023_v45, 0.0 }
 0x544   : > { %7216 = vmatpush3.bf16.msra.mxu1 %v8915_v42 }
 0x545   : > { %7247 = vmatprep.subr.bf16.mxu1 %v8259_v14 }
 0x54f   : > { %2039 = vadd.xlane.f32.xlu0 %v2038_v15 }
 0x553   : > { %2256 = vadd.xlane.f32.xlu0 %v2255_v7 }
 0x559   : > { %v1601_v27 = vpop.xlane.xlu1 %1600 }
 0x55a   : > { %8000 = vrcp.f32 %v1601_v27 }
 0x55d   : > { %v2233_v16 = vpop.xlane.xlu1 %2232  ;;  %v1604_v17 = vpop.xlane.xlu0 %1603 }
 0x55e   : > { %v2242_v42 = vsub.f32 %v8922_v58, %v2233_v16  ;;  %8002 = vrcp.f32 %v1604_v17 }
 0x560   : > { %v2249_v20 = vmul.f32 1.442695, %v2242_v42 }
 0x561   : > { %v2066_v55 = vpop.permute.xlu0 %2065 }
 0x562   : > { %8004 = vpow2.f32 %v2249_v20 }
 0x567   : > { %v8001_v23 = vpop.eup %8000 }
 0x568   : > { %v1615_v33 = vmul.f32 %v8001_v23, %v8919_v32 }
 0x569   : > { %2285 = vrot.lane.b32.xlu0 %v8724_v37, %s8264_s28  ;;  %v2068_v37 = vpop.permute.xlu1 %2067 }
 0x56a   : > { %v2081_v15 = vsel %vm1630_vm2, %v2068_v37, 0 }
 0x56b   : > { %v8003_v31 = vpop.eup %8002 }
 0x56c   : > { %v1616_v18 = vmul.f32 %v8003_v31, %v8926_v0 }
 0x56d   : > { %2283 = vrot.lane.b32.xlu0 %v8731_v49, %s8264_s28 }
 0x56e   : > { %v1619_v25 = vpack.c.bf16 %v1616_v18, %v1615_v33 }
 0x56f   : > { %v9034_v22 = vpop.eup %8004 }
 0x570   : > { %7186 = vmatmul.mubr.msk.bf16.gmra.mxu1 %vm1562_vm3, %v1619_v25  ;;  %v2261_v58 = vsel %vm1562_vm3, %v9034_v22, 0.0 }
 0x571   : > { %2262 = vadd.xlane.f32.xlu1 %v2261_v58  ;;  %7189 = vmatprep.mubr.msk.bf16.mxu1 %vm8261_vm0, %v8259_v14 }
 0x592   : > { %v2239_v32 = vpop.xlane.xlu1 %2238  ;;  %v1607_v56 = vpop.xlane.xlu0 %1606 }
 0x593   : > { %v2244_v0 = vsub.f32 %v8943_v21, %v2239_v32  ;;  %8006 = vrcp.f32 %v1607_v56 }
 0x595   : > { %v2253_v49 = vmul.f32 1.442695, %v2244_v0 }
 0x596   : > { %v2236_v41 = vpop.xlane.xlu0 %2235 }
 0x597   : > { %8008 = vpow2.f32 %v2253_v49  ;;  %v2243_v61 = vsub.f32 %v8949_v40, %v2236_v41  ;;  %v1814_v47 = vpop.xlane.xlu1 %1813 }
 0x598   : > { %8010 = vrcp.f32 %v1814_v47 }
 0x599   : > { %v2251_v38 = vmul.f32 1.442695, %v2243_v61 }
 0x59b   : > { %8012 = vpow2.f32 %v2251_v38  ;;  %v1817_v30 = vpop.xlane.xlu0 %1816 }
 0x59c   : > { %8014 = vrcp.f32 %v1817_v30 }
 0x59f   : > { %v1820_v35 = vpop.xlane.xlu1 %1819 }
 0x5a0   : > { %v8007_v28 = vpop.eup %8006  ;;  %8016 = vrcp.f32 %v1820_v35 }
 0x5a1   : > { %v1617_v29 = vmul.f32 %v8007_v28, %v8945_v50 }
 0x5a3   : > { %v1823_v52 = vpop.xlane.xlu0 %1822  ;;  %v1620_v12 = vpack.c.bf16 %v1617_v29, %v1617_v29 }
 0x5a4   : > { %v9044_v21 = vpop.eup %8008  ;;  %8018 = vrcp.f32 %v1823_v52 }
 0x5a5   : > { %7190 = vmatmul.mubr.msk.bf16.gmra.mxu1 %vm1562_vm3, %v1620_v12  ;;  %v2267_v40 = vsel %vm1562_vm3, %v9044_v21, 0.0  ;;  %v8011_v57 = vpop.eup %8010 }
 0x5a6   : > { %2268 = vadd.xlane.f32.xlu0 %v2267_v40  ;;  %7217 = vmatprep.mubr.msk.bf16.mxu1 %vm8261_vm0, %v8259_v14  ;;  %v1832_v4 = vmul.f32 %v8011_v57, %v8956_v48 }
 0x5a7   : > { %v1826_v63 = vpop.xlane.xlu1 %1825  ;;  %v2064_v42 = vpop.permute.xlu0 %2063 }
 0x5a8   : > { %v9051_v3 = vpop.eup %8012  ;;  %8020 = vrcp.f32 %v1826_v63 }
 0x5a9   : > { %v8015_v50 = vpop.eup %8014  ;;  %v2264_v46 = vsel %vm1562_vm3, %v9051_v3, 0.0 }
 0x5aa   : > { %v1833_v36 = vmul.f32 %v8015_v50, %v8962_v51  ;;  %2265 = vadd.xlane.f32.xlu1 %v2264_v46 }
 0x5ac   : > { %v1837_v11 = vpack.c.bf16 %v1833_v36, %v1832_v4 }
 0x5ad   : > { %v8017_v7 = vpop.eup %8016 }
 0x5ae   : > { %7218 = vmatmul.mubr.msk.bf16.vlgmr.msra.gmra.mxu1 %vm1562_vm3, %v1837_v11  ;;  %v1834_v16 = vmul.f32 %v8017_v7, %v8967_v54 }
 0x5af   : > { %7248 = vmatpush3.bf16.msra.mxu1 %v2081_v15  ;;  %7221 = vmatprep.mubr.msk.bf16.mxu1 %vm8261_vm0, %v8259_v14 }
 0x5b0   : > { %7249 = vmatprep.subr.bf16.mxu1 %v8259_v14 }
 0x5b1   : > { %v8019_v27 = vpop.eup %8018 }
 0x5b2   : > { %v1835_v48 = vmul.f32 %v8019_v27, %v8971_v26  ;;  %v2037_v26 = vpop.xlane.xlu1 %2036 }
 0x5b3   : > { %7250 = vmatpush3.bf16.msra.mxu1 %v2066_v55  ;;  %8022 = vrcp.f32 %v2037_v26 }
 0x5b4   : > { %7251 = vmatprep.subr.bf16.mxu1 %v8259_v14  ;;  %v1838_v51 = vpack.c.bf16 %v1835_v48, %v1834_v16 }
 0x5b5   : > { %v8021_v17 = vpop.eup %8020 }
 0x5b6   : > { %7222 = vmatmul.mubr.msk.bf16.gmra.mxu1 %vm1562_vm3, %v1838_v51  ;;  %v1836_v20 = vmul.f32 %v8021_v17, %v8976_v9 }
 0x5b7   : > { %7252 = vmatpush3.bf16.msra.mxu1 %v2064_v42  ;;  %7225 = vmatprep.mubr.msk.bf16.mxu1 %vm8261_vm0, %v8259_v14  ;;  %v2043_v23 = vpop.xlane.xlu1 %2042 }
 0x5b8   : > { %7283 = vmatprep.subr.bf16.mxu1 %v8259_v14  ;;  %v1839_v54 = vpack.c.bf16 %v1836_v20, %v1836_v20 }
 0x5bb   : > { %2287 = vrot.lane.b32.xlu1 %v8710_v43, %s8264_s28  ;;  %v2046_v33 = vpop.xlane.xlu1 %2045 }
 0x5be   : > { %7226 = vmatmul.mubr.msk.bf16.gmra.mxu1 %vm1562_vm3, %v1839_v54 }
 0x5bf   : > { %7253 = vmatprep.mubr.msk.bf16.mxu1 %vm8261_vm0, %v8259_v14  ;;  %v2049_v9 = vpop.xlane.xlu1 %2048 }
 0x5c0   : > { %v8023_v18 = vpop.eup %8022 }
 0x5c1   : > { %v2055_v43 = vmul.f32 %v8023_v18, %v8982_v34 }
 0x5cb   : > { %v2260_v38 = vpop.xlane.xlu1 %2259 }
 0x5d8   : > { %v2040_v31 = vpop.xlane.xlu0 %2039 }
 0x5d9   : > { %8024 = vrcp.f32 %v2040_v31 }
 0x5da   : > { %8026 = vrcp.f32 %v2046_v33 }
 0x5db   : > { %8028 = vrcp.f32 %v2043_v23 }
 0x5dc   : > { %8030 = vrcp.f32 %v2049_v9  ;;  %v2257_v30 = vpop.xlane.xlu0 %2256 }
 0x5dd   : > { %8032 = vrcp.f32 %v2257_v30  ;;  %v7738_v30 = vld [vmem:[%s10793_s6 + $0x28] sm:$0xff]  }
 0x5de   : > { %8034 = vrcp.f32 %v2260_v38 }
 0x5e6   : > { %v8025_v25 = vpop.eup %8024 }
 0x5e7   : > { %v2056_v58 = vmul.f32 %v8025_v25, %v9019_v19  ;;  %v8027_v55 = vpop.eup %8026 }
 0x5e8   : > { %v8029_v32 = vpop.eup %8028  ;;  %v2058_v56 = vmul.f32 %v8027_v55, %v8991_v1 }
 0x5e9   : > { %v2060_v37 = vpack.c.bf16 %v2056_v58, %v2055_v43  ;;  %v2057_v0 = vmul.f32 %v8029_v32, %v8986_v60  ;;  %v8031_v41 = vpop.eup %8030 }
 0x5ea   : > { %v2059_v34 = vmul.f32 %v8031_v41, %v8997_v6  ;;  %v2286_v6 = vpop.permute.xlu0 %2285  ;;  %v8033_v46 = vpop.eup %8032  ;;  %v7736_v41 = vld [vmem:[%s10793_s6 + $0x38] sm:$0xff]  }
 0x5eb   : > { %7254 = vmatmul.mubr.msk.bf16.vlgmr.msra.gmra.mxu1 %vm1562_vm3, %v2060_v37  ;;  %v2061_v49 = vpack.c.bf16 %v2058_v56, %v2057_v0  ;;  %v8035_v36 = vpop.eup %8034  ;;  %v2275_v11 = vmul.f32 %v8033_v46, %v9023_v45  ;;  %7302 = vmatpush3.bf16.msra.mxu0 %v7736_v41 }
 0x5ec   : > { %7257 = vmatprep.mubr.msk.bf16.mxu1 %vm8261_vm0, %v8259_v14  ;;  %v2062_v19 = vpack.c.bf16 %v2059_v34, %v2059_v34  ;;  %v2276_v15 = vmul.f32 %v8035_v36, %v9011_v2  ;;  %7303 = vmatprep.subr.bf16.mxu0 %v8259_v14 }
 0x5ee   : > { %v2284_v57 = vpop.permute.xlu0 %2283  ;;  %v2280_v7 = vpack.c.bf16 %v2276_v15, %v2275_v11  ;;  %v7742_v11 = vld [vmem:[%s10793_s6 + $0x8] sm:$0xff]   ;;  %v7743_v15 = vld [vmem:[%s10793_s6] sm:$0xff]  }
 0x5f3   : > { %7258 = vmatmul.mubr.msk.bf16.gmra.mxu1 %vm1562_vm3, %v2061_v49 }
 0x5f4   : > { %7261 = vmatprep.mubr.msk.bf16.mxu1 %vm8261_vm0, %v8259_v14 }
 0x5fa   : > { %v2263_v35 = vpop.xlane.xlu1 %2262 }
 0x5fb   : > { %7262 = vmatmul.mubr.msk.bf16.gmra.mxu1 %vm1562_vm3, %v2062_v19  ;;  %v9087_v61 = vpop.f32.mrf.mxu1 }
 0x5fc   : > { %7289 = vmatprep.mubr.msk.bf16.mxu1 %vm8261_vm0, %v8259_v14 }
 0x5fd   : > { %v7183_v1 = vpop.f32.mrf.mxu1 }
 0x5fe   : > { %v7737_v1 = vld [vmem:[%s10793_s6 + $0x30] sm:$0xff]  }
 0x5ff   : > { %v9091_v47 = vpop.f32.mrf.mxu1  ;;  %7304 = vmatpush3.bf16.msra.mxu0 %v7737_v1 }
 0x600   : > { %7305 = vmatprep.subr.bf16.mxu0 %v8259_v14 }
 0x601   : > { %v7184_v60 = vpop.f32.mrf.mxu1 }
 0x603   : > { %7306 = vmatpush3.bf16.msra.mxu0 %v7738_v30 }
 0x604   : > { %7307 = vmatprep.subr.bf16.mxu0 %v8259_v14 }
 0x62f   : > { %v2269_v4 = vpop.xlane.xlu0 %2268 }
 0x630   : > { %v9093_v28 = vpop.f32.mrf.mxu1 }
 0x632   : > { %v7187_v29 = vpop.f32.mrf.mxu1 }
 0x633   : > { %v2266_v52 = vpop.xlane.xlu1 %2265 }
 0x634   : > { %v9095_v12 = vpop.f32.mrf.mxu1  ;;  %8036 = vrcp.f32 %v2266_v52  ;;  %v7739_v52 = vld [vmem:[%s10793_s6 + $0x20] sm:$0xff]  }
 0x635   : > { %8038 = vrcp.f32 %v2263_v35  ;;  %7308 = vmatpush3.bf16.msra.mxu0 %v7739_v52 }
 0x636   : > { %v7188_v40 = vpop.f32.mrf.mxu1  ;;  %8040 = vrcp.f32 %v2269_v4  ;;  %7309 = vmatprep.subr.bf16.mxu0 %v8259_v14  ;;  %v7741_v4 = vld [vmem:[%s10793_s6 + $0x10] sm:$0xff]  }
 0x637   : > { %v2288_v63 = vpop.permute.xlu1 %2287 }
 0x638   : > { %v2301_v50 = vsel %vm1630_vm2, %v2288_v63, 0  ;;  %v7740_v63 = vld [vmem:[%s10793_s6 + $0x18] sm:$0xff]  }
 0x639   : > { %7284 = vmatpush3.bf16.msra.mxu1 %v2301_v50  ;;  %7310 = vmatpush3.bf16.msra.mxu0 %v7740_v63 }
 0x63a   : > { %7285 = vmatprep.subr.bf16.mxu1 %v8259_v14  ;;  %7311 = vmatprep.subr.bf16.mxu0 %v8259_v14 }
 0x63d   : > { %7286 = vmatpush3.bf16.msra.mxu1 %v2286_v6  ;;  %7312 = vmatpush3.bf16.msra.mxu0 %v7741_v4 }
 0x63e   : > { %7287 = vmatprep.subr.bf16.mxu1 %v8259_v14  ;;  %7313 = vmatprep.subr.bf16.mxu0 %v8259_v14 }
 0x641   : > { %7288 = vmatpush3.bf16.msra.mxu1 %v2284_v57  ;;  %v8037_v27 = vpop.eup %8036  ;;  %7314 = vmatpush3.bf16.msra.mxu0 %v7742_v11 }
 0x642   : > { %v8039_v16 = vpop.eup %8038  ;;  %v2278_v48 = vmul.f32 %v8037_v27, %v9051_v3  ;;  %7315 = vmatprep.subr.bf16.mxu0 %v8259_v14 }
 0x643   : > { %v2277_v51 = vmul.f32 %v8039_v16, %v9034_v22  ;;  %v8041_v45 = vpop.eup %8040 }
 0x644   : > { %7290 = vmatmul.mubr.msk.bf16.vlgmr.msra.gmra.mxu1 %vm1562_vm3, %v2280_v7  ;;  %v2279_v2 = vmul.f32 %v8041_v45, %v9044_v21 }
 0x645   : > { %7293 = vmatprep.mubr.msk.bf16.mxu1 %vm8261_vm0, %v8259_v14  ;;  %v2281_v17 = vpack.c.bf16 %v2278_v48, %v2277_v51  ;;  %7316 = vmatpush3.bf16.msra.mxu0 %v7743_v15 }
 0x646   : > { %v2282_v42 = vpack.c.bf16 %v2279_v2, %v2279_v2 }
 0x64c   : > { %7294 = vmatmul.mubr.msk.bf16.gmra.mxu1 %vm1562_vm3, %v2281_v17 }
 0x64d   : > { %7297 = vmatprep.mubr.msk.bf16.mxu1 %vm8261_vm0, %v8259_v14 }
 0x654   : > { %7298 = vmatmul.mubr.msk.bf16.gmra.mxu1 %vm1562_vm3, %v2282_v42 }
 0x655   : > { %2895 = vmatprep.mubr.bf16.mxu1 %v8260_v59 }
 0x665   : > { %v9113_v20 = vpop.f32.mrf.mxu1 }
 0x667   : > { %v7191_v54 = vpop.f32.mrf.mxu1 }
 0x669   : > { %v1687_v3 = vpop.f32.mrf.mxu1 }
 0x66b   : > { %v7192_v26 = vpop.f32.mrf.mxu1 }
 0x66e   : > { %v1897_v22 = vpop.f32.mrf.mxu1 }
 0x670   : > { %v7219_v23 = vpop.f32.mrf.mxu1 }
 0x672   : > { %v1900_v31 = vpop.f32.mrf.mxu1 }
 0x673   : > { %v7572_v33 = vpack.i.bf16 %v1900_v31, %v1897_v22 }
 0x674   : > { %v7220_v9 = vpop.f32.mrf.mxu1 }
 0x675   : > { %7573 = vrot.lane.b32.xlu1 %v7572_v33, %s8264_s28 }
 0x676   : > { %v1905_v18 = vpop.f32.mrf.mxu1 }
 0x678   : > { %v7223_v25 = vpop.f32.mrf.mxu1 }
 0x67a   : > { %v1908_v21 = vpop.f32.mrf.mxu1 }
 0x67b   : > { %v7577_v43 = vpack.i.bf16 %v1908_v21, %v1905_v18 }
 0x67c   : > { %v7224_v58 = vpop.f32.mrf.mxu1 }
 0x67d   : > { %7578 = vrot.lane.b32.xlu1 %v7577_v43, %s8264_s28 }
 0x67e   : > { %v1913_v37 = vpop.f32.mrf.mxu1 }
 0x680   : > { %v7227_v55 = vpop.f32.mrf.mxu1 }
 0x682   : > { %v1916_v32 = vpop.f32.mrf.mxu1 }
 0x684   : > { %v7228_v56 = vpop.f32.mrf.mxu1 }
 0x6ab   : > { %v2117_v0 = vpop.f32.mrf.mxu1 }
 0x6ad   : > { %v7255_v49 = vpop.f32.mrf.mxu1 }
 0x6af   : > { %v2120_v34 = vpop.f32.mrf.mxu1 }
 0x6b0   : > { %v7582_v19 = vpack.i.bf16 %v2120_v34, %v2117_v0 }
 0x6b1   : > { %v7256_v60 = vpop.f32.mrf.mxu1 }
 0x6b2   : > { %7583 = vrot.lane.b32.xlu1 %v7582_v19, %s8263_s27 }
 0x6b3   : > { %v2125_v38 = vpop.f32.mrf.mxu1 }
 0x6b5   : > { %v7259_v35 = vpop.f32.mrf.mxu1 }
 0x6b7   : > { %v2128_v6 = vpop.f32.mrf.mxu1 }
 0x6b8   : > { %v7592_v29 = vpack.i.bf16 %v2128_v6, %v2125_v38 }
 0x6b9   : > { %v7260_v40 = vpop.f32.mrf.mxu1 }
 0x6bb   : > { %v2133_v57 = vpop.f32.mrf.mxu1 }
 0x6bc   : > { %2392 = vrot.lane.b32.xlu0 %v2133_v57, %s8263_s27 }
 0x6bd   : > { %v7263_v50 = vpop.f32.mrf.mxu1 }
 0x6bf   : > { %v2136_v46 = vpop.f32.mrf.mxu1 }
 0x6c1   : > { %v7264_v36 = vpop.f32.mrf.mxu1 }
 0x6e7   : > { %v7574_v31 = vpop.permute.xlu1 %7573 }
 0x6e8   : > { %v7576_v18 = vunpack.i.h.bf16 %v7574_v31  ;;  %v7575_v25 = vunpack.i.l.bf16 %v7574_v31 }
 0x6ea   : > { %v2420_v55 = vsel %vm1487_vm1, %v9091_v47, %v7576_v18 }
 0x6ef   : > { %v7579_v33 = vpop.permute.xlu1 %7578 }
 0x6f0   : > { %v7581_v60 = vunpack.i.h.bf16 %v7579_v33  ;;  %v7580_v38 = vunpack.i.l.bf16 %v7579_v33 }
 0x6f2   : > { %v2422_v47 = vsel %vm1487_vm1, %v9095_v12, %v7581_v60  ;;  %v2421_v6 = vsel %vm1487_vm1, %v9093_v28, %v7580_v38 }
 0x704   : > { %v2337_v7 = vpop.f32.mrf.mxu1 }
 0x706   : > { %v7291_v27 = vpop.f32.mrf.mxu1 }
 0x707   : > { %v2566_v27 = vsub.s32 4, %v8650_v8 }
 0x708   : > { %v2340_v16 = vpop.f32.mrf.mxu1 }
 0x709   : > { %v7587_v48 = vpack.i.bf16 %v2340_v16, %v2337_v7 }
 0x70a   : > { %v7292_v51 = vpop.f32.mrf.mxu1 }
 0x70b   : > { %7588 = vrot.lane.b32.xlu1 %v7587_v48, %s8262_s24 }
 0x70c   : > { %v2345_v17 = vpop.f32.mrf.mxu1 }
 0x70e   : > { %v7295_v45 = vpop.f32.mrf.mxu1 }
 0x70f   : > { %7593 = vrot.lane.b32.xlu1 %v7592_v29, %s8263_s27 }
 0x710   : > { %v2348_v2 = vpop.f32.mrf.mxu1 }
 0x711   : > { %v7597_v42 = vpack.i.bf16 %v2348_v2, %v2345_v17 }
 0x712   : > { %v7296_v54 = vpop.f32.mrf.mxu1 }
 0x713   : > { %7598 = vrot.lane.b32.xlu1 %v7597_v42, %s8262_s24 }
 0x714   : > { %v2353_v3 = vpop.f32.mrf.mxu1 }
 0x716   : > { %v7299_v26 = vpop.f32.mrf.mxu1 }
 0x717   : > { %2372 = vrot.lane.b32.xlu1 %v1913_v37, %s8264_s28  ;;  %v2419_v37 = vsel %vm1487_vm1, %v9087_v61, %v7575_v25 }
 0x718   : > { %v2356_v22 = vpop.f32.mrf.mxu1 }
 0x71a   : > { %v7300_v23 = vpop.f32.mrf.mxu1 }
 0x71b   : > { %2412 = vrot.lane.b32.xlu1 %v2353_v3, %s8262_s24 }
 0x724   : > { %v7584_v9 = vpop.permute.xlu1 %7583 }
 0x725   : > { %v7586_v21 = vunpack.i.h.bf16 %v7584_v9  ;;  %v7585_v43 = vunpack.i.l.bf16 %v7584_v9 }
 0x727   : > { %v2426_v0 = vsel %vm2424_vm4, %v2420_v55, %v7586_v21  ;;  %v2425_v49 = vsel %vm2424_vm4, %v2419_v37, %v7585_v43  ;;  %v7746_v55 = vld [vmem:[%s10794_s7 + $0xe4] ss:$16 sps:$4 sm:$0xff]   ;;  %v7749_v37 = vld [vmem:[%s10794_s7 + $0xec] ss:$16 sps:$4 sm:$0xff]  }
 0x728   : > { %2863 = vmatprep.subr.bf16.mxu1 %v7746_v55  ;;  %2924 = vmatprep.subr.bf16.mxu0 %v7749_v37 }
 0x72e   : > { %v2393_v12 = vpop.permute.xlu0 %2392 }
 0x77d   : > { %v7589_v58 = vpop.permute.xlu1 %7588 }
 0x77e   : > { %v7591_v32 = vunpack.i.h.bf16 %v7589_v58  ;;  %v7590_v56 = vunpack.i.l.bf16 %v7589_v58 }
 0x780   : > { %v2432_v41 = vsel %vm2430_vm5, %v2426_v0, %v7591_v32  ;;  %v2431_v34 = vsel %vm2430_vm5, %v2425_v49, %v7590_v56 }
 0x781   : > { %v2436_v19 = vpack.c.bf16 %v2432_v41, %v2431_v34  ;;  %v7594_v1 = vpop.permute.xlu1 %7593 }
 0x782   : > { %v7596_v30 = vunpack.i.h.bf16 %v7594_v1  ;;  %v7595_v35 = vunpack.i.l.bf16 %v7594_v1 }
 0x783   : > { %7318 = vmatmul.mubr.bf16.vlgmr.msra.gmra.mxu0 %v2436_v19 }
 0x784   : > { %7321 = vmatprep.mubr.msk.bf16.mxu0 %vm8261_vm0, %v8259_v14  ;;  %v2427_v40 = vsel %vm2424_vm4, %v2421_v6, %v7595_v35  ;;  %v2428_v57 = vsel %vm2424_vm4, %v2422_v47, %v7596_v30 }
 0x785   : > { %v7599_v61 = vpop.permute.xlu1 %7598 }
 0x786   : > { %v7601_v29 = vunpack.i.h.bf16 %v7599_v61  ;;  %v7600_v52 = vunpack.i.l.bf16 %v7599_v61 }
 0x788   : > { %v2433_v63 = vsel %vm2430_vm5, %v2427_v40, %v7600_v52  ;;  %v2434_v50 = vsel %vm2430_vm5, %v2428_v57, %v7601_v29 }
 0x789   : > { %v2373_v46 = vpop.permute.xlu1 %2372  ;;  %v2437_v4 = vpack.c.bf16 %v2434_v50, %v2433_v63  ;;  %v7752_v63 = vld [vmem:[%s10794_s7 + $0xc4] ss:$16 sps:$4 sm:$0xff]   ;;  %v7755_v50 = vld [vmem:[%s10794_s7 + $0xcc] ss:$16 sps:$4 sm:$0xff]  }
 0x78a   : > { %v2423_v36 = vsel %vm1487_vm1, %v9113_v20, %v2373_v46  ;;  %v9184_v20 = vld [vmem:[%s10797_s10] sm:$0x3f] }
 0x78b   : > { %7322 = vmatmul.mubr.bf16.gmra.mxu0 %v2437_v4  ;;  %v2429_v28 = vsel %vm2424_vm4, %v2423_v36, %v2393_v12  ;;  %v2567_v16 = vrot.slane %v9184_v20, %v2566_v27  ;;  %v7750_v46 = vld [vmem:[%s10794_s7 + $0xc0] ss:$16 sps:$4 sm:$0xff]   ;;  %v7753_v4 = vld [vmem:[%s10794_s7 + $0xc8] ss:$16 sps:$4 sm:$0xff]   ;;  %v7758_v12 = vld [vmem:[%s10794_s7 + $0xa4] ss:$16 sps:$4 sm:$0xff]  }
 0x78c   : > { %7325 = vmatprep.mubr.msk.bf16.mxu0 %vm8261_vm0, %v8259_v14 }
 0x78d   : > { %v2413_v11 = vpop.permute.xlu1 %2412 }
 0x78e   : > { %v2435_v15 = vsel %vm2430_vm5, %v2429_v28, %v2413_v11  ;;  %v7761_v28 = vld [vmem:[%s10794_s7 + $0xac] ss:$16 sps:$4 sm:$0xff]   ;;  %v7756_v11 = vld [vmem:[%s10794_s7 + $0xa0] ss:$16 sps:$4 sm:$0xff]  }
 0x78f   : > { %v2438_v7 = vpack.c.bf16 %v2435_v15, %v2435_v15  ;;  %v7759_v15 = vld [vmem:[%s10794_s7 + $0xa8] ss:$16 sps:$4 sm:$0xff]  }
 0x793   : > { %7326 = vmatmul.mubr.bf16.gmra.mxu0 %v2438_v7  ;;  %v7764_v7 = vld [vmem:[%s10794_s7 + $0x84] ss:$16 sps:$4 sm:$0xff]  }
 0x794   : > { %2956 = vmatprep.mubr.bf16.mxu0 %v8260_v59 }
 0x843   : > { %v2537_v48 = vpop.f32.mrf.mxu0 }
 0x844   : > { %v2559_v51 = vadd.f32 %v2537_v48, %v8519_v44  ;;  %v7762_v48 = vld [vmem:[%s10794_s7 + $0x80] ss:$16 sps:$4 sm:$0xff]  }
 0x845   : > { %v7319_v17 = vpop.f32.mrf.mxu0 }
 0x846   : > { %v9190_v45 = vadd.f32 %v2567_v16, %v2559_v51  ;;  %v7765_v51 = vld [vmem:[%s10794_s7 + $0x88] ss:$16 sps:$4 sm:$0xff]   ;;  %v7770_v17 = vld [vmem:[%s10794_s7 + $0x64] ss:$16 sps:$4 sm:$0xff]  }
 0x847   : > { %v2540_v2 = vpop.f32.mrf.mxu0 }
 0x848   : > { %v2560_v42 = vadd.f32 %v2540_v2, %v8525_v53  ;;  %2573 = vadd.xlane.f32.xlu1 %v9190_v45  ;;  %v7773_v2 = vld [vmem:[%s10794_s7 + $0x6c] ss:$16 sps:$4 sm:$0xff]  }
 0x849   : > { %v7320_v54 = vpop.f32.mrf.mxu0 }
 0x84a   : > { %v9194_v3 = vadd.f32 %v2567_v16, %v2560_v42  ;;  %v7768_v42 = vld [vmem:[%s10794_s7 + $0x60] ss:$16 sps:$4 sm:$0xff]   ;;  %v7771_v54 = vld [vmem:[%s10794_s7 + $0x68] ss:$16 sps:$4 sm:$0xff]  }
 0x84b   : > { %v2545_v26 = vpop.f32.mrf.mxu0 }
 0x84c   : > { %v2561_v22 = vadd.f32 %v2545_v26, %v8531_v62  ;;  %2575 = vadd.xlane.f32.xlu0 %v9194_v3  ;;  %v7776_v26 = vld [vmem:[%s10794_s7 + $0x44] ss:$16 sps:$4 sm:$0xff]  }
 0x84d   : > { %v7323_v23 = vpop.f32.mrf.mxu0 }
 0x84e   : > { %v9198_v31 = vadd.f32 %v2567_v16, %v2561_v22  ;;  %v7779_v22 = vld [vmem:[%s10794_s7 + $0x4c] ss:$16 sps:$4 sm:$0xff]   ;;  %v7774_v23 = vld [vmem:[%s10794_s7 + $0x40] ss:$16 sps:$4 sm:$0xff]  }
 0x84f   : > { %v2548_v44 = vpop.f32.mrf.mxu0 }
 0x850   : > { %v2562_v33 = vadd.f32 %v2548_v44, %v8534_v5  ;;  %2577 = vadd.xlane.f32.xlu1 %v9198_v31  ;;  %v7744_v5 = vld [vmem:[%s10794_s7 + $0xe0] ss:$16 sps:$4 sm:$0xff]   ;;  %v7777_v44 = vld [vmem:[%s10794_s7 + $0x48] ss:$16 sps:$4 sm:$0xff]  }
 0x851   : > { %v7324_v9 = vpop.f32.mrf.mxu0  ;;  %2864 = vmatpush1.bf16.msra.mxu1 %v7744_v5  ;;  %v7789_v5 = vld [vmem:[%s10794_s7 + $0x8] ss:$16 sps:$4 sm:$0xff]  }
 0x852   : > { %v9202_v53 = vadd.f32 %v2567_v16, %v2562_v33  ;;  %2865 = vmatprep.subr.bf16.mxu1 %v7752_v63  ;;  %v7780_v33 = vld [vmem:[%s10794_s7 + $0x20] ss:$16 sps:$4 sm:$0xff]   ;;  %v7782_v9 = vld [vmem:[%s10794_s7 + $0x24] ss:$16 sps:$4 sm:$0xff]   ;;  %v2631_v63 = vrot.slane %v9184_v20, %v8700_v39 }
 0x853   : > { %v2553_v18 = vpop.f32.mrf.mxu0 }
 0x854   : > { %v2563_v25 = vadd.f32 %v2553_v18, %v8537_v10  ;;  %2579 = vadd.xlane.f32.xlu1 %v9202_v53  ;;  %v7747_v10 = vld [vmem:[%s10794_s7 + $0xe8] ss:$16 sps:$4 sm:$0xff]  }
 0x855   : > { %v7327_v21 = vpop.f32.mrf.mxu0  ;;  %2925 = vmatpush1.bf16.msra.mxu0 %v7747_v10  ;;  %2866 = vmatpush1.bf16.msra.mxu1 %v7750_v46  ;;  %v7783_v18 = vld [vmem:[%s10794_s7 + $0x28] ss:$16 sps:$4 sm:$0xff]  }
 0x856   : > { %v9206_v62 = vadd.f32 %v2567_v16, %v2563_v25  ;;  %2926 = vmatprep.subr.bf16.mxu0 %v7755_v50  ;;  %2867 = vmatprep.subr.bf16.mxu1 %v7758_v12  ;;  %v7767_v16 = vld [vmem:[%s10794_s7 + $0x8c] ss:$16 sps:$4 sm:$0xff]   ;;  %v7788_v21 = vld [vmem:[%s10794_s7 + $0x4] ss:$16 sps:$4 sm:$0xff]   ;;  %v9334_v50 = vsub.s32 3, %v8650_v8 }
 0x857   : > { %v2556_v43 = vpop.f32.mrf.mxu0  ;;  %v7785_v25 = vld [vmem:[%s10794_s7 + $0x2c] ss:$16 sps:$4 sm:$0xff]  }
 0x858   : > { %2581 = vadd.xlane.f32.xlu1 %v9206_v62  ;;  %v7791_v43 = vld [vmem:[%s10794_s7 + $0xc] ss:$16 sps:$4 sm:$0xff]   ;;  %v2640_v12 = vrot.slane %v9184_v20, %v9334_v50 }
 0x859   : > { %v7328_v58 = vpop.f32.mrf.mxu0  ;;  %2927 = vmatpush1.bf16.msra.mxu0 %v7753_v4  ;;  %2868 = vmatpush1.bf16.msra.mxu1 %v7756_v11 }
 0x85a   : > { %2928 = vmatprep.subr.bf16.mxu0 %v7761_v28  ;;  %2869 = vmatprep.subr.bf16.mxu1 %v7764_v7  ;;  %v7786_v58 = vld [vmem:[%s10794_s7] ss:$16 sps:$4 sm:$0xff]  }
 0x85d   : > { %2929 = vmatpush1.bf16.msra.mxu0 %v7759_v15  ;;  %2870 = vmatpush1.bf16.msra.mxu1 %v7762_v48 }
 0x85e   : > { %2930 = vmatprep.subr.bf16.mxu0 %v7767_v16  ;;  %2871 = vmatprep.subr.bf16.mxu1 %v7770_v17 }
 0x861   : > { %2931 = vmatpush1.bf16.msra.mxu0 %v7765_v51  ;;  %2872 = vmatpush1.bf16.msra.mxu1 %v7768_v42 }
 0x862   : > { %2932 = vmatprep.subr.bf16.mxu0 %v7773_v2  ;;  %2873 = vmatprep.subr.bf16.mxu1 %v7776_v26 }
 0x865   : > { %2933 = vmatpush1.bf16.msra.mxu0 %v7771_v54  ;;  %2874 = vmatpush1.bf16.msra.mxu1 %v7774_v23  ;;  %v7792_v23 = vld [vmem:[%s10796_s9 + $0x78] sm:$0xff]  }
 0x866   : > { %2934 = vmatprep.subr.bf16.mxu0 %v7779_v22  ;;  %2875 = vmatprep.subr.bf16.mxu1 %v7782_v9  ;;  %v7796_v9 = vld [vmem:[%s10796_s9 + $0x70] sm:$0xff]  }
 0x869   : > { %2935 = vmatpush1.bf16.msra.mxu0 %v7777_v44  ;;  %2876 = vmatpush1.bf16.msra.mxu1 %v7780_v33  ;;  %v7794_v44 = vld [vmem:[%s10796_s9 + $0x38] sm:$0xff]  }
 0x86a   : > { %2936 = vmatprep.subr.bf16.mxu0 %v7785_v25  ;;  %2877 = vmatprep.subr.bf16.mxu1 %v7788_v21  ;;  %v7795_v33 = vld [vmem:[%s10796_s9 + $0xb8] sm:$0xff]   ;;  %v7798_v25 = vld [vmem:[%s10796_s9 + $0x30] sm:$0xff]  }
 0x86b   : > { %v7799_v21 = vld [vmem:[%s10796_s9 + $0xb0] sm:$0xff]  }
 0x86d   : > { %2937 = vmatpush1.bf16.msra.mxu0 %v7783_v18  ;;  %2878 = vmatpush1.bf16.msra.mxu1 %v7786_v58  ;;  %v7797_v18 = vld [vmem:[%s10796_s9 + $0xf0] sm:$0xff]   ;;  %v7801_v58 = vld [vmem:[%s10796_s9 + $0xe8] sm:$0xff]  }
 0x86e   : > { %2938 = vmatprep.subr.bf16.mxu0 %v7791_v43  ;;  %6912 = vmatprep.subr.bf16.mxu1 %v7792_v23  ;;  %v7800_v43 = vld [vmem:[%s10796_s9 + $0x68] sm:$0xff]  }
 0x871   : > { %2939 = vmatpush1.bf16.msra.mxu0 %v7789_v5  ;;  %v7802_v5 = vld [vmem:[%s10796_s9 + $0x28] sm:$0xff]  }
 0x8d1   : > { %v2574_v32 = vpop.xlane.xlu1 %2573 }
 0x8d2   : > { %v2583_v56 = vmul.f32 0.0078125, %v2574_v32 }
 0x8d4   : > { %v9222_v0 = vsub.f32 %v9190_v45, %v2583_v56 }
 0x8d5   : > { %v2576_v49 = vpop.xlane.xlu0 %2575 }
 0x8d6   : > { %v2584_v41 = vmul.f32 0.0078125, %v2576_v49  ;;  %v2593_v34 = vmul.f32 %v9222_v0, %v9222_v0 }
 0x8d8   : > { %2598 = vadd.xlane.f32.xlu1 %v2593_v34  ;;  %v9227_v19 = vsub.f32 %v9194_v3, %v2584_v41 }
 0x8d9   : > { %v2578_v1 = vpop.xlane.xlu1 %2577 }
 0x8da   : > { %v2585_v60 = vmul.f32 0.0078125, %v2578_v1  ;;  %v2594_v38 = vmul.f32 %v9227_v19, %v9227_v19 }
 0x8dc   : > { %v9232_v30 = vsub.f32 %v9198_v31, %v2585_v60  ;;  %2600 = vadd.xlane.f32.xlu0 %v2594_v38 }
 0x8dd   : > { %v2580_v35 = vpop.xlane.xlu1 %2579 }
 0x8de   : > { %v2586_v61 = vmul.f32 0.0078125, %v2580_v35  ;;  %v2595_v47 = vmul.f32 %v9232_v30, %v9232_v30 }
 0x8e0   : > { %2602 = vadd.xlane.f32.xlu1 %v2595_v47  ;;  %v9237_v6 = vsub.f32 %v9202_v53, %v2586_v61 }
 0x8e1   : > { %v2582_v29 = vpop.xlane.xlu1 %2581 }
 0x8e2   : > { %v2587_v52 = vmul.f32 0.0078125, %v2582_v29  ;;  %v2596_v40 = vmul.f32 %v9237_v6, %v9237_v6 }
 0x8e4   : > { %v9242_v57 = vsub.f32 %v9206_v62, %v2587_v52  ;;  %2604 = vadd.xlane.f32.xlu0 %v2596_v40 }
 0x8e6   : > { %v2597_v36 = vmul.f32 %v9242_v57, %v9242_v57 }
 0x8e8   : > { %2606 = vadd.xlane.f32.xlu1 %v2597_v36 }
 0x961   : > { %v2599_v55 = vpop.xlane.xlu1 %2598 }
 0x962   : > { %v2608_v10 = vmul.f32 0.0078125, %v2599_v55  ;;  %v7803_v55 = vld [vmem:[%s10796_s9 + $0xa8] sm:$0xff]  }
 0x964   : > { %v2613_v37 = vadd.f32 1e-06, %v2608_v10  ;;  %v7804_v10 = vld [vmem:[%s10796_s9 + $0x60] sm:$0xff]  }
 0x965   : > { %v2601_v32 = vpop.xlane.xlu0 %2600 }
 0x966   : > { %8042 = vrsqrt.f32 %v2613_v37  ;;  %v2609_v56 = vmul.f32 0.0078125, %v2601_v32  ;;  %v7805_v37 = vld [vmem:[%s10796_s9 + $0xe0] sm:$0xff]  }
 0x967   : > { %v7806_v32 = vld [vmem:[%s10796_s9 + $0x20] sm:$0xff]  }
 0x968   : > { %v2614_v49 = vadd.f32 1e-06, %v2609_v56  ;;  %v7807_v56 = vld [vmem:[%s10796_s9 + $0xa0] sm:$0xff]  }
 0x969   : > { %v2603_v41 = vpop.xlane.xlu1 %2602 }
 0x96a   : > { %8044 = vrsqrt.f32 %v2614_v49  ;;  %v2610_v34 = vmul.f32 0.0078125, %v2603_v41  ;;  %v7808_v49 = vld [vmem:[%s10796_s9 + $0x58] sm:$0xff]  }
 0x96b   : > { %v7809_v41 = vld [vmem:[%s10796_s9 + $0xd8] sm:$0xff]  }
 0x96c   : > { %v2615_v1 = vadd.f32 1e-06, %v2610_v34  ;;  %v7810_v34 = vld [vmem:[%s10796_s9 + $0x18] sm:$0xff]  }
 0x96d   : > { %v2605_v60 = vpop.xlane.xlu0 %2604 }
 0x96e   : > { %8046 = vrsqrt.f32 %v2615_v1  ;;  %v2611_v38 = vmul.f32 0.0078125, %v2605_v60  ;;  %v7811_v1 = vld [vmem:[%s10796_s9 + $0x98] sm:$0xff]   ;;  %v7812_v60 = vld [vmem:[%s10796_s9 + $0x50] sm:$0xff]  }
 0x970   : > { %v2616_v35 = vadd.f32 1e-06, %v2611_v38  ;;  %v7813_v38 = vld [vmem:[%s10796_s9 + $0xd0] sm:$0xff]  }
 0x971   : > { %v2607_v61 = vpop.xlane.xlu1 %2606 }
 0x972   : > { %8048 = vrsqrt.f32 %v2616_v35  ;;  %v2612_v47 = vmul.f32 0.0078125, %v2607_v61  ;;  %v7814_v35 = vld [vmem:[%s10796_s9 + $0x10] sm:$0xff]  }
 0x973   : > { %v8043_v29 = vpop.eup %8042  ;;  %v7815_v61 = vld [vmem:[%s10796_s9 + $0x90] sm:$0xff]  }
 0x974   : > { %v2623_v52 = vmul.f32 %v8043_v29, %v9222_v0  ;;  %v2617_v40 = vadd.f32 1e-06, %v2612_v47  ;;  %v7816_v47 = vld [vmem:[%s10796_s9 + $0x48] sm:$0xff]  }
 0x975   : > { %v7817_v29 = vld [vmem:[%s10796_s9 + $0xc8] sm:$0xff]  }
 0x976   : > { %8050 = vrsqrt.f32 %v2617_v40  ;;  %v2632_v36 = vmul.f32 %v2631_v63, %v2623_v52  ;;  %v7818_v52 = vld [vmem:[%s10796_s9 + $0x8] sm:$0xff]  }
 0x977   : > { %v8045_v46 = vpop.eup %8044  ;;  %v7819_v40 = vld [vmem:[%s10796_s9 + $0x88] sm:$0xff]  }
 0x978   : > { %v2624_v4 = vmul.f32 %v8045_v46, %v9227_v19  ;;  %v2641_v15 = vadd.f32 %v2640_v12, %v2632_v36  ;;  %v7821_v46 = vld [vmem:[%s10796_s9 + $0xc0] sm:$0xff]  }
 0x979   : > { %v7823_v36 = vld [vmem:[%s10796_s9 + $0x80] sm:$0xff]  }
 0x97a   : > { %v2633_v28 = vmul.f32 %v2631_v63, %v2624_v4  ;;  %v7822_v4 = vld [vmem:[%s10796_s9] sm:$0xff]  }
 0x97b   : > { %v8047_v11 = vpop.eup %8046 }
 0x97c   : > { %v2642_v7 = vadd.f32 %v2640_v12, %v2633_v28  ;;  %v2625_v0 = vmul.f32 %v8047_v11, %v9232_v30 }
 0x97e   : > { %v2646_v16 = vpack.c.bf16 %v2642_v7, %v2641_v15  ;;  %v2634_v17 = vmul.f32 %v2631_v63, %v2625_v0 }
 0x97f   : > { %v8049_v48 = vpop.eup %8048 }
 0x980   : > { %2896 = vmatmul.mubr.bf16.vlgmr.msra.gmra.mxu1 %v2646_v16  ;;  %2957 = vmatmul.mubr.bf16.vlgmr.msra.gmra.mxu0 %v2646_v16  ;;  %v2626_v51 = vmul.f32 %v8049_v48, %v9237_v6  ;;  %v2643_v20 = vadd.f32 %v2640_v12, %v2634_v17 }
 0x981   : > { %2905 = vmatprep.mubr.bf16.mxu1 %v8260_v59  ;;  %2966 = vmatprep.mubr.bf16.mxu0 %v8260_v59 }
 0x982   : > { %v2635_v19 = vmul.f32 %v2631_v63, %v2626_v51  ;;  %6913 = vmatpush3.bf16.msra.mxu1 %v7794_v44 }
 0x983   : > { %v8051_v2 = vpop.eup %8050  ;;  %6914 = vmatprep.subr.bf16.mxu1 %v7796_v9 }
 0x984   : > { %v2644_v42 = vadd.f32 %v2640_v12, %v2635_v19  ;;  %v2627_v54 = vmul.f32 %v8051_v2, %v9242_v57  ;;  %v7793_v57 = vld [vmem:[%s10796_s9 + $0xf8] sm:$0xff]  }
 0x985   : > { %6946 = vmatprep.subr.bf16.mxu0 %v7793_v57 }
 0x986   : > { %v2647_v26 = vpack.c.bf16 %v2644_v42, %v2643_v20  ;;  %v2636_v22 = vmul.f32 %v2631_v63, %v2627_v54  ;;  %6947 = vmatpush3.bf16.msra.mxu0 %v7795_v33  ;;  %6915 = vmatpush3.bf16.msra.mxu1 %v7798_v25  ;;  %v7820_v63 = vld [vmem:[%s10796_s9 + $0x40] sm:$0xff]  }
 0x987   : > { %6948 = vmatprep.subr.bf16.mxu0 %v7797_v18  ;;  %6916 = vmatprep.subr.bf16.mxu1 %v7800_v43 }
 0x988   : > { %2906 = vmatmul.mubr.bf16.gmra.mxu1 %v2647_v26  ;;  %2967 = vmatmul.mubr.bf16.gmra.mxu0 %v2647_v26  ;;  %v2645_v30 = vadd.f32 %v2640_v12, %v2636_v22  ;;  %v2681_v12 = vld [vmem:[%s10795_s8] sm:$0xf] }
 0x989   : > { %2915 = vmatprep.mubr.bf16.mxu1 %v8260_v59  ;;  %2976 = vmatprep.mubr.bf16.mxu0 %v8260_v59  ;;  %v9447_v28 = vrot.slane %v2681_v12, %v8653_v13  ;;  %v9450_v11 = vrot.slane %v2681_v12, %v8700_v39  ;;  %v9455_v2 = vrot.slane %v2681_v12, %v8661_v24 }
 0x98a   : > { %v2648_v6 = vpack.c.bf16 %v2645_v30, %v2645_v30  ;;  %6949 = vmatpush3.bf16.msra.mxu0 %v7799_v21  ;;  %6917 = vmatpush3.bf16.msra.mxu1 %v7802_v5  ;;  %v9458_v26 = vrot.slane %v2681_v12, %v9334_v50 }
 0x98b   : > { %6950 = vmatprep.subr.bf16.mxu0 %v7801_v58  ;;  %6918 = vmatprep.subr.bf16.mxu1 %v7804_v10 }
 0x98e   : > { %6951 = vmatpush3.bf16.msra.mxu0 %v7803_v55  ;;  %6919 = vmatpush3.bf16.msra.mxu1 %v7806_v32 }
 0x98f   : > { %6952 = vmatprep.subr.bf16.mxu0 %v7805_v37  ;;  %6920 = vmatprep.subr.bf16.mxu1 %v7808_v49 }
 0x990   : > { %2916 = vmatmul.mubr.bf16.gmra.mxu1 %v2648_v6  ;;  %2977 = vmatmul.mubr.bf16.gmra.mxu0 %v2648_v6 }
 0x992   : > { %6953 = vmatpush3.bf16.msra.mxu0 %v7807_v56  ;;  %6921 = vmatpush3.bf16.msra.mxu1 %v7810_v34 }
 0x993   : > { %6954 = vmatprep.subr.bf16.mxu0 %v7809_v41  ;;  %6922 = vmatprep.subr.bf16.mxu1 %v7812_v60 }
 0x996   : > { %6955 = vmatpush3.bf16.msra.mxu0 %v7811_v1  ;;  %6923 = vmatpush3.bf16.msra.mxu1 %v7814_v35 }
 0x997   : > { %6956 = vmatprep.subr.bf16.mxu0 %v7813_v38  ;;  %6924 = vmatprep.subr.bf16.mxu1 %v7816_v47 }
 0x99a   : > { %6957 = vmatpush3.bf16.msra.mxu0 %v7815_v61  ;;  %6925 = vmatpush3.bf16.msra.mxu1 %v7818_v52 }
 0x99b   : > { %6958 = vmatprep.subr.bf16.mxu0 %v7817_v29  ;;  %6926 = vmatprep.subr.bf16.mxu1 %v7820_v63 }
 0x99e   : > { %6959 = vmatpush3.bf16.msra.mxu0 %v7819_v40  ;;  %6927 = vmatpush3.bf16.msra.mxu1 %v7822_v4 }
 0x99f   : > { %6960 = vmatprep.subr.bf16.mxu0 %v7821_v46 }
 0x9a2   : > { %6961 = vmatpush3.bf16.msra.mxu0 %v7823_v36 }
 0x9a3   : > { %7329 = vmatprep.subr.bf16.mxu0 %v8259_v14 }
 0xa40   : > { %v2897_v15 = vpop.f32.mrf.mxu1  ;;  %v2958_v7 = vpop.f32.mrf.mxu0 }
 0xa41   : > { %v2898_v0 = vadd.f32 %v2897_v15, %v9447_v28  ;;  %v2959_v16 = vadd.f32 %v2958_v7, %v9450_v11 }
 0xa42   : > { %v2899_v48 = vpop.f32.mrf.mxu1  ;;  %v2960_v51 = vpop.f32.mrf.mxu0 }
 0xa43   : > { %v3005_v17 = vmul.f32 0.044715, %v2898_v0  ;;  %v3007_v19 = vmul.f32 0.044715, %v2959_v16  ;;  %v9469_v21 = vadd.f32 %v2899_v48, %v9455_v2  ;;  %v9472_v43 = vadd.f32 %v2960_v51, %v9458_v26 }
 0xa44   : > { %v2901_v20 = vpop.f32.mrf.mxu1  ;;  %v2962_v42 = vpop.f32.mrf.mxu0  ;;  %v9499_v7 = vmul.f32 0.5, %v2898_v0  ;;  %v9501_v48 = vmul.f32 0.5, %v2959_v16 }
 0xa45   : > { %v3025_v54 = vmul.f32 %v3005_v17, %v2898_v0  ;;  %v9461_v22 = vadd.f32 %v2901_v20, %v9447_v28  ;;  %v9464_v30 = vadd.f32 %v2962_v42, %v9450_v11  ;;  %v3027_v6 = vmul.f32 %v3007_v19, %v2959_v16 }
 0xa46   : > { %v2903_v23 = vpop.f32.mrf.mxu1  ;;  %v2964_v57 = vpop.f32.mrf.mxu0  ;;  %v3006_v61 = vmul.f32 0.044715, %v9469_v21  ;;  %v3008_v40 = vmul.f32 0.044715, %v9472_v43 }
 0xa47   : > { %v3045_v44 = vmul.f32 %v3025_v54, %v2898_v0  ;;  %v3009_v33 = vmul.f32 0.044715, %v9461_v22  ;;  %v3011_v9 = vmul.f32 0.044715, %v9464_v30  ;;  %v3047_v55 = vmul.f32 %v3027_v6, %v2959_v16 }
 0xa48   : > { %v2907_v18 = vpop.f32.mrf.mxu1  ;;  %v2968_v25 = vpop.f32.mrf.mxu0  ;;  %v9477_v37 = vadd.f32 %v2903_v23, %v9455_v2  ;;  %v9481_v41 = vadd.f32 %v2964_v57, %v9458_v26  ;;  %v3026_v42 = vmul.f32 %v3006_v61, %v9469_v21  ;;  %v9511_v23 = vmul.f32 0.5, %v9469_v21 }
 0xa49   : > { %v3029_v58 = vmul.f32 %v3009_v33, %v9461_v22  ;;  %v3065_v5 = vadd.f32 %v3045_v44, %v2898_v0  ;;  %v3031_v10 = vmul.f32 %v3011_v9, %v9464_v30  ;;  %v9485_v1 = vadd.f32 %v2907_v18, %v9447_v28 }
 0xa4a   : > { %v2909_v32 = vpop.f32.mrf.mxu1  ;;  %v2970_v56 = vpop.f32.mrf.mxu0  ;;  %v9488_v60 = vadd.f32 %v2968_v25, %v9450_v11  ;;  %v3067_v52 = vadd.f32 %v3047_v55, %v2959_v16  ;;  %v3010_v63 = vmul.f32 0.044715, %v9477_v37  ;;  %v3012_v15 = vmul.f32 0.044715, %v9481_v41 }
 0xa4b   : > { %v3049_v49 = vmul.f32 %v3029_v58, %v9461_v22  ;;  %v3051_v34 = vmul.f32 %v3031_v10, %v9464_v30  ;;  %v9492_v47 = vadd.f32 %v2909_v32, %v9455_v2  ;;  %v3085_v29 = vmul.f32 0.7978846, %v3065_v5 }
 0xa4c   : > { %v2911_v38 = vpop.f32.mrf.mxu1  ;;  %v2972_v35 = vpop.f32.mrf.mxu0  ;;  %v3013_v51 = vmul.f32 0.044715, %v9485_v1  ;;  %v3015_v17 = vmul.f32 0.044715, %v9488_v60  ;;  %v9508_v6 = vadd.f32 %v2970_v56, %v9458_v26  ;;  %v3087_v0 = vmul.f32 0.7978846, %v3067_v52 }
 0xa4d   : > { %v3069_v36 = vadd.f32 %v3049_v49, %v9461_v22  ;;  %v3071_v12 = vadd.f32 %v3051_v34, %v9464_v30  ;;  %v3014_v54 = vmul.f32 0.044715, %v9492_v47  ;;  %8052 = vtanh.f32 %v3085_v29 }
 0xa4e   : > { %v2913_v46 = vpop.f32.mrf.mxu1  ;;  %v2974_v4 = vpop.f32.mrf.mxu0  ;;  %v3028_v16 = vmul.f32 %v3008_v40, %v9472_v43  ;;  %v3030_v57 = vmul.f32 %v3010_v63, %v9477_v37  ;;  %v3032_v25 = vmul.f32 %v3012_v15, %v9481_v41  ;;  %v3033_v5 = vmul.f32 %v3013_v51, %v9485_v1 }
 0xa4f   : > { %v3089_v9 = vmul.f32 0.7978846, %v3069_v36  ;;  %v3091_v18 = vmul.f32 0.7978846, %v3071_v12  ;;  %v9517_v58 = vadd.f32 %v2913_v46, %v9455_v2  ;;  %v3035_v55 = vmul.f32 %v3015_v17, %v9488_v60 }
 0xa50   : > { %v2917_v19 = vpop.f32.mrf.mxu1  ;;  %v2978_v20 = vpop.f32.mrf.mxu0  ;;  %v9522_v10 = vadd.f32 %v2911_v38, %v9447_v28  ;;  %v9525_v32 = vadd.f32 %v2974_v4, %v9458_v26  ;;  %v3034_v34 = vmul.f32 %v3014_v54, %v9492_v47  ;;  %v3016_v61 = vmul.f32 0.044715, %v9508_v6 }
 0xa51   : > { %v9530_v29 = vadd.f32 %v2972_v35, %v9450_v11  ;;  %v3018_v52 = vmul.f32 0.044715, %v9517_v58  ;;  %8054 = vtanh.f32 %v3087_v0  ;;  %v3046_v40 = vmul.f32 %v3026_v42, %v9469_v21 }
 0xa52   : > { %v2919_v44 = vpop.f32.mrf.mxu1  ;;  %v2980_v33 = vpop.f32.mrf.mxu0  ;;  %v3050_v38 = vmul.f32 %v3030_v57, %v9477_v37  ;;  %v3020_v63 = vmul.f32 0.044715, %v9525_v32  ;;  %v3048_v36 = vmul.f32 %v3028_v16, %v9472_v43  ;;  %8056 = vtanh.f32 %v3089_v9 }
 0xa53   : > { %v3052_v12 = vmul.f32 %v3032_v25, %v9481_v41  ;;  %v3038_v15 = vmul.f32 %v3018_v52, %v9517_v58  ;;  %8058 = vtanh.f32 %v3091_v18  ;;  %v3053_v35 = vmul.f32 %v3033_v5, %v9485_v1 }
 0xa54   : > { %v2921_v56 = vpop.f32.mrf.mxu1  ;;  %v2982_v49 = vpop.f32.mrf.mxu0  ;;  %v3017_v51 = vmul.f32 0.044715, %v9522_v10  ;;  %v9542_v17 = vmul.f32 0.5, %v9472_v43  ;;  %v3055_v42 = vmul.f32 %v3035_v55, %v9488_v60  ;;  %v3054_v54 = vmul.f32 %v3034_v34, %v9492_v47 }
 0xa55   : > { %v3036_v0 = vmul.f32 %v3016_v61, %v9508_v6  ;;  %v3019_v16 = vmul.f32 0.044715, %v9530_v29  ;;  %v3040_v57 = vmul.f32 %v3020_v63, %v9525_v32  ;;  %v9550_v9 = vadd.f32 %v2917_v19, %v9447_v28 }
 0xa56   : > { %v2922_v46 = vpop.f32.mrf.mxu1  ;;  %v2983_v4 = vpop.f32.mrf.mxu0  ;;  %v3066_v18 = vadd.f32 %v3046_v40, %v9469_v21  ;;  %v3070_v25 = vadd.f32 %v3050_v38, %v9477_v37  ;;  %v3058_v5 = vmul.f32 %v3038_v15, %v9517_v58  ;;  %v9556_v56 = vadd.f32 %v2919_v44, %v9455_v2 }
 0xa57   : > { %v3068_v55 = vadd.f32 %v3048_v36, %v9472_v43  ;;  %v3072_v49 = vadd.f32 %v3052_v12, %v9481_v41  ;;  %v3037_v34 = vmul.f32 %v3017_v51, %v9522_v10  ;;  %v9562_v61 = vadd.f32 %v2980_v33, %v9458_v26 }
 0xa58   : > { %v3086_v28 = vmul.f32 0.7978846, %v3066_v18  ;;  %v3090_v19 = vmul.f32 0.7978846, %v3070_v25  ;;  %v3056_v21 = vmul.f32 %v3036_v0, %v9508_v6  ;;  %v9566_v52 = vadd.f32 %v2978_v20, %v9450_v11 }
 0xa59   : > { %v3088_v40 = vmul.f32 0.7978846, %v3068_v55  ;;  %v3092_v38 = vmul.f32 0.7978846, %v3072_v49  ;;  %v3039_v2 = vmul.f32 %v3019_v16, %v9530_v29  ;;  %v3060_v43 = vmul.f32 %v3040_v57, %v9525_v32 }
 0xa5a   : > { %8060 = vtanh.f32 %v3086_v28  ;;  %v3074_v44 = vadd.f32 %v3054_v54, %v9492_v47  ;;  %v8053_v63 = vpop.eup %8052  ;;  %v3021_v26 = vmul.f32 0.044715, %v9550_v9  ;;  %v3022_v33 = vmul.f32 0.044715, %v9556_v56 }
 0xa5b   : > { %8062 = vtanh.f32 %v3090_v19  ;;  %v3078_v46 = vadd.f32 %v3058_v5, %v9517_v58  ;;  %v3057_v11 = vmul.f32 %v3037_v34, %v9522_v10  ;;  %v3024_v20 = vmul.f32 0.044715, %v9562_v61 }
 0xa5c   : > { %8064 = vtanh.f32 %v3088_v40  ;;  %v3094_v4 = vmul.f32 0.7978846, %v3074_v44  ;;  %v3023_v36 = vmul.f32 0.044715, %v9566_v52  ;;  %v3076_v15 = vadd.f32 %v3056_v21, %v9508_v6 }
 0xa5d   : > { %8066 = vtanh.f32 %v3092_v38  ;;  %v3098_v12 = vmul.f32 0.7978846, %v3078_v46  ;;  %v2989_v51 = vmul.f32 0.5, %v9461_v22  ;;  %v3059_v54 = vmul.f32 %v3039_v2, %v9530_v29 }
 0xa5e   : > { %8068 = vtanh.f32 %v3094_v4  ;;  %v3080_v0 = vadd.f32 %v3060_v43, %v9525_v32  ;;  %v8055_v16 = vpop.eup %8054  ;;  %v2991_v57 = vmul.f32 0.5, %v9464_v30  ;;  %v3042_v18 = vmul.f32 %v3022_v33, %v9556_v56 }
 0xa5f   : > { %8070 = vtanh.f32 %v3098_v12  ;;  %v3096_v25 = vmul.f32 0.7978846, %v3076_v15  ;;  %v8057_v5 = vpop.eup %8056  ;;  %v3044_v55 = vmul.f32 %v3024_v20, %v9562_v61  ;;  %v3073_v34 = vadd.f32 %v3053_v35, %v9485_v1 }
 0xa60   : > { %v3100_v49 = vmul.f32 0.7978846, %v3080_v0  ;;  %v3077_v22 = vadd.f32 %v3057_v11, %v9522_v10  ;;  %v8059_v28 = vpop.eup %8058  ;;  %v3041_v19 = vmul.f32 %v3021_v26, %v9550_v9  ;;  %v3043_v21 = vmul.f32 %v3023_v36, %v9566_v52 }
 0xa61   : > { %8072 = vtanh.f32 %v3096_v25  ;;  %v3075_v30 = vadd.f32 %v3055_v42, %v9488_v60  ;;  %v3093_v40 = vmul.f32 0.7978846, %v3073_v34  ;;  %v3079_v2 = vadd.f32 %v3059_v54, %v9530_v29 }
 0xa62   : > { %8074 = vtanh.f32 %v3100_v49  ;;  %v3097_v38 = vmul.f32 0.7978846, %v3077_v22  ;;  %v2990_v43 = vmul.f32 0.5, %v9477_v37  ;;  %v3125_v44 = vadd.f32 1.0, %v8053_v63 }
 0xa63   : > { %v3095_v33 = vmul.f32 0.7978846, %v3075_v30  ;;  %v3062_v35 = vmul.f32 %v3042_v18, %v9556_v56  ;;  %v2992_v46 = vmul.f32 0.5, %v9481_v41  ;;  %8076 = vtanh.f32 %v3093_v40 }
 0xa64   : > { %v3099_v26 = vmul.f32 0.7978846, %v3079_v2  ;;  %v3064_v11 = vmul.f32 %v3044_v55, %v9562_v61  ;;  %v3127_v20 = vadd.f32 1.0, %v8055_v16  ;;  %8078 = vtanh.f32 %v3097_v38 }
 0xa65   : > { %v3082_v42 = vadd.f32 %v3062_v35, %v9556_v56  ;;  %v3061_v4 = vmul.f32 %v3041_v19, %v9550_v9  ;;  %v3129_v36 = vadd.f32 1.0, %v8057_v5  ;;  %8080 = vtanh.f32 %v3095_v33 }
 0xa66   : > { %v3084_v37 = vadd.f32 %v3064_v11, %v9562_v61  ;;  %v3063_v63 = vmul.f32 %v3043_v21, %v9566_v52  ;;  %v3145_v15 = vmul.f32 %v3125_v44, %v9499_v7  ;;  %8082 = vtanh.f32 %v3099_v26 }
 0xa67   : > { %v8061_v12 = vpop.eup %8060  ;;  %v3102_v41 = vmul.f32 0.7978846, %v3082_v42  ;;  %v3081_v54 = vadd.f32 %v3061_v4, %v9550_v9  ;;  %v3131_v18 = vadd.f32 1.0, %v8059_v28  ;;  %v2994_v34 = vmul.f32 0.5, %v9492_v47 }
 0xa68   : > { %v8063_v0 = vpop.eup %8062  ;;  %v3126_v16 = vadd.f32 1.0, %v8061_v12  ;;  %v3104_v25 = vmul.f32 0.7978846, %v3084_v37  ;;  %v3083_v55 = vadd.f32 %v3063_v63, %v9566_v52  ;;  %v3149_v30 = vmul.f32 %v3129_v36, %v2989_v51 }
 0xa69   : > { %v8065_v49 = vpop.eup %8064  ;;  %v3130_v5 = vadd.f32 1.0, %v8063_v0  ;;  %8084 = vtanh.f32 %v3102_v41  ;;  %v3101_v22 = vmul.f32 0.7978846, %v3081_v54  ;;  %v3151_v33 = vmul.f32 %v3131_v18, %v2991_v57 }
 0xa6a   : > { %v8067_v19 = vpop.eup %8066  ;;  %v3128_v21 = vadd.f32 1.0, %v8065_v49  ;;  %8086 = vtanh.f32 %v3104_v25  ;;  %v3103_v7 = vmul.f32 0.7978846, %v3083_v55  ;;  %v3146_v38 = vmul.f32 %v3126_v16, %v9511_v23 }
 0xa6b   : > { %v8069_v40 = vpop.eup %8068  ;;  %v3150_v2 = vmul.f32 %v3130_v5, %v2990_v43  ;;  %v3132_v44 = vadd.f32 1.0, %v8067_v19  ;;  %8088 = vtanh.f32 %v3101_v22  ;;  %v2998_v35 = vmul.f32 0.5, %v9517_v58 }
 0xa6c   : > { %v8071_v28 = vpop.eup %8070  ;;  %v3134_v26 = vadd.f32 1.0, %v8069_v40  ;;  %8090 = vtanh.f32 %v3103_v7  ;;  %v3148_v11 = vmul.f32 %v3128_v21, %v9542_v17  ;;  %v3165_v36 = vpack.c.bf16 %v3149_v30, %v3145_v15 }
 0xa6d   : > { %v3166_v47 = vpack.c.bf16 %v3150_v2, %v3146_v38  ;;  %v3152_v42 = vmul.f32 %v3132_v44, %v2992_v46  ;;  %v3138_v4 = vadd.f32 1.0, %v8071_v28  ;;  %v3147_v37 = vmul.f32 %v3127_v20, %v9501_v48 }
 0xa6e   : > { %v8073_v51 = vpop.eup %8072  ;;  %v3154_v43 = vmul.f32 %v3134_v26, %v2994_v34  ;;  %v2996_v58 = vmul.f32 0.5, %v9508_v6  ;;  %v3000_v54 = vmul.f32 0.5, %v9525_v32  ;;  %v2993_v25 = vmul.f32 0.5, %v9485_v1 }
 0xa6f   : > { %v8075_v63 = vpop.eup %8074  ;;  %3469 = vmatprep.mubr.bf16.mxu1 %v3166_v47  ;;  %v3168_v23 = vpack.c.bf16 %v3152_v42, %v3148_v11  ;;  %v3158_v12 = vmul.f32 %v3138_v4, %v2998_v35  ;;  %v3136_v41 = vadd.f32 1.0, %v8073_v51  ;;  %v3167_v57 = vpack.c.bf16 %v3151_v33, %v3147_v37 }
 0xa70   : > { %3470 = vmatmul.mubr.bf16.vlgmr.msra.gmra.mxu1 %v3165_v36  ;;  %v3140_v0 = vadd.f32 1.0, %v8075_v63  ;;  %v8077_v17 = vpop.eup %8076  ;;  %v2997_v55 = vmul.f32 0.5, %v9522_v10  ;;  %v2995_v32 = vmul.f32 0.5, %v9488_v60  ;;  %v2999_v21 = vmul.f32 0.5, %v9530_v29 }
 0xa71   : > { %3525 = vmatprep.mubr.bf16.mxu0 %v3168_v23  ;;  %v3170_v46 = vpack.c.bf16 %v3158_v12, %v3154_v43  ;;  %v8079_v16 = vpop.eup %8078  ;;  %v3156_v15 = vmul.f32 %v3136_v41, %v2996_v58  ;;  %v3133_v20 = vadd.f32 1.0, %v8077_v17  ;;  %v3002_v40 = vmul.f32 0.5, %v9556_v56 }
 0xa72   : > { %3526 = vmatmul.mubr.bf16.vlgmr.msra.gmra.mxu0 %v3167_v57  ;;  %v3160_v48 = vmul.f32 %v3140_v0, %v3000_v54  ;;  %v8081_v18 = vpop.eup %8080  ;;  %v3137_v49 = vadd.f32 1.0, %v8079_v16  ;;  %v3004_v33 = vmul.f32 0.5, %v9562_v61  ;;  %v3001_v29 = vmul.f32 0.5, %v9550_v9 }
 0xa73   : > { %3477 = vmatprep.mubr.bf16.mxu1 %v3170_v46  ;;  %v8083_v5 = vpop.eup %8082  ;;  %v3135_v34 = vadd.f32 1.0, %v8081_v18  ;;  %v3153_v22 = vmul.f32 %v3133_v20, %v2993_v25  ;;  %v3003_v36 = vmul.f32 0.5, %v9566_v52  ;;  %v3243_v9 = vsub.s32 5, %v8650_v8  ;;  %v8243_v52 = vld [vmem:[%s10797_s10] sm:$0x3f] }
 0xa74   : > { %v3172_v6 = vpack.c.bf16 %v3160_v48, %v3156_v15  ;;  %v3157_v19 = vmul.f32 %v3137_v49, %v2997_v55  ;;  %v3139_v30 = vadd.f32 1.0, %v8083_v5 }
 0xa75   : > { %v3155_v1 = vmul.f32 %v3135_v34, %v2995_v32  ;;  %v3244_v12 = vrot.slane %v8243_v52, %v3243_v9 }
 0xa76   : > { %v8085_v7 = vpop.eup %8084  ;;  %3533 = vmatprep.mubr.bf16.mxu0 %v3172_v6  ;;  %v3169_v2 = vpack.c.bf16 %v3157_v19, %v3153_v22  ;;  %v3159_v44 = vmul.f32 %v3139_v30, %v2999_v21 }
 0xa77   : > { %v8087_v38 = vpop.eup %8086  ;;  %v3142_v10 = vadd.f32 1.0, %v8085_v7 }
 0xa78   : > { %v8089_v28 = vpop.eup %8088  ;;  %v3144_v35 = vadd.f32 1.0, %v8087_v38  ;;  %3478 = vmatmul.mubr.bf16.gmra.mxu1 %v3169_v2  ;;  %v3171_v26 = vpack.c.bf16 %v3159_v44, %v3155_v1 }
 0xa79   : > { %v8091_v60 = vpop.eup %8090  ;;  %v3162_v47 = vmul.f32 %v3142_v10, %v3002_v40  ;;  %v3141_v11 = vadd.f32 1.0, %v8089_v28 }
 0xa7a   : > { %v3164_v42 = vmul.f32 %v3144_v35, %v3004_v33  ;;  %v3143_v4 = vadd.f32 1.0, %v8091_v60  ;;  %3534 = vmatmul.mubr.bf16.gmra.mxu0 %v3171_v26 }
 0xa7b   : > { %v3174_v56 = vpack.c.bf16 %v3162_v47, %v3162_v47  ;;  %v3161_v51 = vmul.f32 %v3141_v11, %v3001_v29 }
 0xa7c   : > { %v3176_v37 = vpack.c.bf16 %v3164_v42, %v3164_v42  ;;  %v3163_v63 = vmul.f32 %v3143_v4, %v3003_v36 }
 0xa7d   : > { %3485 = vmatprep.mubr.bf16.mxu1 %v3174_v56  ;;  %v3173_v61 = vpack.c.bf16 %v3161_v51, %v3161_v51 }
 0xa7e   : > { %3541 = vmatprep.mubr.bf16.mxu0 %v3176_v37  ;;  %v3175_v23 = vpack.c.bf16 %v3163_v63, %v3163_v63 }
 0xa80   : > { %3486 = vmatmul.mubr.bf16.gmra.mxu1 %v3173_v61  ;;  %v7824_v61 = vld [vmem:[%s10791_s4 + $0x168] ss:$12 sps:$4 sm:$0xff]  }
 0xa81   : > { %3843 = vmatprep.mubr.bf16.mxu1 %v8260_v59 }
 0xa82   : > { %3542 = vmatmul.mubr.bf16.gmra.mxu0 %v3175_v23  ;;  %v7827_v23 = vld [vmem:[%s10791_s4 + $0x170] ss:$12 sps:$4 sm:$0xff]  }
 0xa83   : > { %7345 = vmatprep.mubr.msk.bf16.mxu0 %vm8261_vm0, %v8259_v14  ;;  %7330 = vmatpush3.bf16.msra.mxu0 %v7827_v23 }
 0xa84   : > { %7331 = vmatprep.subr.bf16.mxu0 %v8259_v14 }
 0xb30   : > { %v6928_v43 = vpop.f32.mrf.mxu1 }
 0xb32   : > { %v6962_v41 = vpop.f32.mrf.mxu0  ;;  %v6929_v57 = vpop.f32.mrf.mxu1 }
 0xb33   : > { %v6930_v58 = vadd.f32 %v6929_v57, %v6928_v43 }
 0xb34   : > { %v6963_v54 = vpop.f32.mrf.mxu0  ;;  %v6931_v0 = vpop.f32.mrf.mxu1 }
 0xb35   : > { %v3472_v17 = vadd.f32 %v6930_v58, %v3244_v12  ;;  %v6964_v46 = vadd.f32 %v6963_v54, %v6962_v41 }
 0xb36   : > { %v6965_v16 = vpop.f32.mrf.mxu0  ;;  %v6932_v15 = vpop.f32.mrf.mxu1 }
 0xb37   : > { %v3528_v48 = vadd.f32 %v6964_v46, %v3472_v17  ;;  %v6933_v20 = vadd.f32 %v6932_v15, %v6931_v0 }
 0xb38   : > { %v6966_v18 = vpop.f32.mrf.mxu0  ;;  %v6934_v49 = vpop.f32.mrf.mxu1 }
 0xb39   : > { %v3475_v25 = vadd.f32 %v6933_v20, %v3244_v12  ;;  %v6967_v55 = vadd.f32 %v6966_v18, %v6965_v16  ;;  %v9626_v5 = vadd.f32 %v3528_v48, %v9190_v45 }
 0xb3a   : > { %v6968_v32 = vpop.f32.mrf.mxu0  ;;  %v6935_v34 = vpop.f32.mrf.mxu1 }
 0xb3b   : > { %v3531_v6 = vadd.f32 %v6967_v55, %v3475_v25  ;;  %3556 = vadd.xlane.f32.xlu0 %v9626_v5  ;;  %v6936_v22 = vadd.f32 %v6935_v34, %v6934_v49  ;;  %v7828_v34 = vld [vmem:[%s10791_s4 + $0x150] ss:$12 sps:$4 sm:$0xff]  }
 0xb3c   : > { %v6969_v19 = vpop.f32.mrf.mxu0  ;;  %v6937_v21 = vpop.f32.mrf.mxu1 }
 0xb3d   : > { %v9630_v30 = vadd.f32 %v3531_v6, %v9194_v3  ;;  %v3480_v7 = vadd.f32 %v6936_v22, %v3244_v12  ;;  %v6970_v40 = vadd.f32 %v6969_v19, %v6968_v32  ;;  %v7830_v32 = vld [vmem:[%s10791_s4 + $0x154] ss:$12 sps:$4 sm:$0xff]   ;;  %v7831_v22 = vld [vmem:[%s10791_s4 + $0x158] ss:$12 sps:$4 sm:$0xff]   ;;  %v7834_v19 = vld [vmem:[%s10791_s4 + $0x13c] ss:$12 sps:$4 sm:$0xff]  }
 0xb3e   : > { %v6971_v38 = vpop.f32.mrf.mxu0  ;;  %v6938_v2 = vpop.f32.mrf.mxu1  ;;  %7332 = vmatpush3.bf16.msra.mxu0 %v7831_v22 }
 0xb3f   : > { %3558 = vadd.xlane.f32.xlu1 %v9630_v30  ;;  %v3536_v1 = vadd.f32 %v6970_v40, %v3480_v7  ;;  %v6939_v45 = vadd.f32 %v6938_v2, %v6937_v21  ;;  %7333 = vmatprep.subr.bf16.mxu0 %v8259_v14  ;;  %v7832_v21 = vld [vmem:[%s10791_s4 + $0x138] ss:$12 sps:$4 sm:$0xff]   ;;  %v7835_v7 = vld [vmem:[%s10791_s4 + $0x140] ss:$12 sps:$4 sm:$0xff]   ;;  %v7839_v2 = vld [vmem:[%s10791_s4 + $0x128] ss:$12 sps:$4 sm:$0xff]  }
 0xb40   : > { %v6972_v44 = vpop.f32.mrf.mxu0  ;;  %v6940_v10 = vpop.f32.mrf.mxu1  ;;  %v7836_v40 = vld [vmem:[%s10791_s4 + $0x120] ss:$12 sps:$4 sm:$0xff]  }
 0xb41   : > { %v3483_v28 = vadd.f32 %v6939_v45, %v3244_v12  ;;  %v6973_v33 = vadd.f32 %v6972_v44, %v6971_v38  ;;  %v9634_v35 = vadd.f32 %v3536_v1, %v9198_v31  ;;  %v7838_v38 = vld [vmem:[%s10791_s4 + $0x124] ss:$12 sps:$4 sm:$0xff]   ;;  %v7842_v1 = vld [vmem:[%s10791_s4 + $0x10c] ss:$12 sps:$4 sm:$0xff]   ;;  %v7840_v45 = vld [vmem:[%s10791_s4 + $0x108] ss:$12 sps:$4 sm:$0xff]  }
 0xb42   : > { %v6974_v60 = vpop.f32.mrf.mxu0  ;;  %v6941_v26 = vpop.f32.mrf.mxu1  ;;  %7334 = vmatpush3.bf16.msra.mxu0 %v7835_v7  ;;  %v7843_v44 = vld [vmem:[%s10791_s4 + $0x110] ss:$12 sps:$4 sm:$0xff]  }
 0xb43   : > { %v3539_v47 = vadd.f32 %v6973_v33, %v3483_v28  ;;  %v6942_v3 = vadd.f32 %v6941_v26, %v6940_v10  ;;  %3560 = vadd.xlane.f32.xlu0 %v9634_v35  ;;  %7335 = vmatprep.subr.bf16.mxu0 %v8259_v14  ;;  %v7846_v10 = vld [vmem:[%s10791_s4 + $0xf4] ss:$12 sps:$4 sm:$0xff]   ;;  %v7844_v28 = vld [vmem:[%s10791_s4 + $0xf0] ss:$12 sps:$4 sm:$0xff]   ;;  %v7847_v33 = vld [vmem:[%s10791_s4 + $0xf8] ss:$12 sps:$4 sm:$0xff]  }
 0xb44   : > { %v6975_v29 = vpop.f32.mrf.mxu0  ;;  %v6943_v11 = vpop.f32.mrf.mxu1  ;;  %v7848_v26 = vld [vmem:[%s10791_s4 + $0xd8] ss:$12 sps:$4 sm:$0xff]  }
 0xb45   : > { %v3488_v42 = vadd.f32 %v6942_v3, %v3244_v12  ;;  %v6976_v4 = vadd.f32 %v6975_v29, %v6974_v60  ;;  %v9638_v56 = vadd.f32 %v3539_v47, %v9202_v53  ;;  %v7826_v53 = vld [vmem:[%s10791_s4 + $0x16c] ss:$12 sps:$4 sm:$0xff]   ;;  %v7850_v60 = vld [vmem:[%s10791_s4 + $0xdc] ss:$12 sps:$4 sm:$0xff]   ;;  %v7854_v3 = vld [vmem:[%s10791_s4 + $0xc4] ss:$12 sps:$4 sm:$0xff]  }
 0xb46   : > { %v6977_v51 = vpop.f32.mrf.mxu0  ;;  %v6944_v36 = vpop.f32.mrf.mxu1  ;;  %3811 = vmatprep.subr.bf16.mxu1 %v7826_v53  ;;  %7336 = vmatpush3.bf16.msra.mxu0 %v7839_v2  ;;  %v7851_v47 = vld [vmem:[%s10791_s4 + $0xe0] ss:$12 sps:$4 sm:$0xff]   ;;  %v7855_v11 = vld [vmem:[%s10791_s4 + $0xc8] ss:$12 sps:$4 sm:$0xff]  }
 0xb47   : > { %v3544_v37 = vadd.f32 %v6976_v4, %v3488_v42  ;;  %3562 = vadd.xlane.f32.xlu1 %v9638_v56  ;;  %3812 = vmatpush1.bf16.msra.mxu1 %v7824_v61  ;;  %v7852_v29 = vld [vmem:[%s10791_s4 + $0xc0] ss:$12 sps:$4 sm:$0xff]  }
 0xb48   : > { %v6978_v31 = vpop.f32.mrf.mxu0  ;;  %3813 = vmatprep.subr.bf16.mxu1 %v7830_v32  ;;  %7337 = vmatprep.subr.bf16.mxu0 %v8259_v14 }
 0xb49   : > { %v9642_v63 = vadd.f32 %v3544_v37, %v9206_v62 }
 0xb4a   : > { %7338 = vmatpush3.bf16.msra.mxu0 %v7843_v44 }
 0xb4b   : > { %3564 = vadd.xlane.f32.xlu0 %v9642_v63  ;;  %3814 = vmatpush1.bf16.msra.mxu1 %v7828_v34 }
 0xb4c   : > { %3815 = vmatprep.subr.bf16.mxu1 %v7834_v19  ;;  %7339 = vmatprep.subr.bf16.mxu0 %v8259_v14 }
 0xb4e   : > { %7340 = vmatpush3.bf16.msra.mxu0 %v7847_v33 }
 0xb4f   : > { %3816 = vmatpush1.bf16.msra.mxu1 %v7832_v21  ;;  %7341 = vmatprep.subr.bf16.mxu0 %v8259_v14 }
 0xb50   : > { %3817 = vmatprep.subr.bf16.mxu1 %v7838_v38 }
 0xb52   : > { %7342 = vmatpush3.bf16.msra.mxu0 %v7851_v47 }
 0xb53   : > { %3818 = vmatpush1.bf16.msra.mxu1 %v7836_v40  ;;  %7343 = vmatprep.subr.bf16.mxu0 %v8259_v14 }
 0xb54   : > { %3819 = vmatprep.subr.bf16.mxu1 %v7842_v1 }
 0xb56   : > { %7344 = vmatpush3.bf16.msra.mxu0 %v7855_v11 }
 0xb57   : > { %3820 = vmatpush1.bf16.msra.mxu1 %v7840_v45  ;;  %7375 = vmatprep.subr.bf16.mxu0 %v8259_v14 }
 0xb58   : > { %3821 = vmatprep.subr.bf16.mxu1 %v7846_v10 }
 0xb5b   : > { %3822 = vmatpush1.bf16.msra.mxu1 %v7844_v28 }
 0xb5c   : > { %3823 = vmatprep.subr.bf16.mxu1 %v7850_v60 }
 0xb5f   : > { %3824 = vmatpush1.bf16.msra.mxu1 %v7848_v26 }
 0xb60   : > { %3825 = vmatprep.subr.bf16.mxu1 %v7854_v3 }
 0xb63   : > { %3826 = vmatpush1.bf16.msra.mxu1 %v7852_v29 }
 0xb64   : > { %7357 = vmatprep.subr.bf16.mxu1 %v8259_v14 }
 0xbc4   : > { %v3557_v62 = vpop.xlane.xlu0 %3556 }
 0xbc5   : > { %v3566_v43 = vmul.f32 0.0078125, %v3557_v62 }
 0xbc7   : > { %v9656_v52 = vsub.f32 %v9626_v5, %v3566_v43 }
 0xbc8   : > { %v3559_v12 = vpop.xlane.xlu1 %3558 }
 0xbc9   : > { %v3567_v41 = vmul.f32 0.0078125, %v3559_v12  ;;  %v3576_v57 = vmul.f32 %v9656_v52, %v9656_v52 }
 0xbcb   : > { %3581 = vadd.xlane.f32.xlu1 %v3576_v57  ;;  %v9661_v58 = vsub.f32 %v9630_v30, %v3567_v41  ;;  %v6460_v41 = vld [vmem:[%s10797_s10 + $0x8] sm:$0x3f] }
 0xbcc   : > { %v3561_v54 = vpop.xlane.xlu0 %3560 }
 0xbcd   : > { %v3577_v0 = vmul.f32 %v9661_v58, %v9661_v58  ;;  %v3568_v17 = vmul.f32 0.0078125, %v3561_v54 }
 0xbcf   : > { %3583 = vadd.xlane.f32.xlu0 %v3577_v0  ;;  %v9666_v46 = vsub.f32 %v9634_v35, %v3568_v17 }
 0xbd0   : > { %v3563_v16 = vpop.xlane.xlu1 %3562 }
 0xbd1   : > { %v3569_v15 = vmul.f32 0.0078125, %v3563_v16  ;;  %v3578_v48 = vmul.f32 %v9666_v46, %v9666_v46  ;;  %v3614_v16 = vrot.slane %v6460_v41, %v8653_v13 }
 0xbd3   : > { %3585 = vadd.xlane.f32.xlu1 %v3578_v48  ;;  %v9671_v20 = vsub.f32 %v9638_v56, %v3569_v15 }
 0xbd4   : > { %v3565_v18 = vpop.xlane.xlu0 %3564 }
 0xbd5   : > { %v3570_v25 = vmul.f32 0.0078125, %v3565_v18  ;;  %v3579_v55 = vmul.f32 %v9671_v20, %v9671_v20 }
 0xbd7   : > { %v9676_v49 = vsub.f32 %v9642_v63, %v3570_v25  ;;  %3587 = vadd.xlane.f32.xlu0 %v3579_v55  ;;  %v3623_v55 = vrot.slane %v6460_v41, %v8661_v24 }
 0xbd9   : > { %v3580_v6 = vmul.f32 %v9676_v49, %v9676_v49 }
 0xbdb   : > { %3589 = vadd.xlane.f32.xlu1 %v3580_v6 }
 0xc54   : > { %v3582_v42 = vpop.xlane.xlu1 %3581 }
 0xc55   : > { %v3591_v4 = vmul.f32 0.0078125, %v3582_v42 }
 0xc57   : > { %v3596_v51 = vadd.f32 1e-06, %v3591_v4 }
 0xc58   : > { %v3584_v36 = vpop.xlane.xlu0 %3583 }
 0xc59   : > { %8092 = vrsqrt.f32 %v3596_v51  ;;  %v3592_v37 = vmul.f32 0.0078125, %v3584_v36  ;;  %v6493_v36 = vld [vmem:[%s10792_s5 + $0x3] sm:$0x7] }
 0xc5b   : > { %v3597_v31 = vadd.f32 1e-06, %v3592_v37 }
 0xc5c   : > { %v3586_v61 = vpop.xlane.xlu1 %3585 }
 0xc5d   : > { %8094 = vrsqrt.f32 %v3597_v31  ;;  %v3593_v53 = vmul.f32 0.0078125, %v3586_v61  ;;  %v3675_v61 = vrot.slane %v6493_v36, %v8661_v24 }
 0xc5f   : > { %v3598_v23 = vadd.f32 1e-06, %v3593_v53 }
 0xc60   : > { %v3588_v62 = vpop.xlane.xlu0 %3587 }
 0xc61   : > { %8096 = vrsqrt.f32 %v3598_v23  ;;  %v3594_v43 = vmul.f32 0.0078125, %v3588_v62  ;;  %v3679_v62 = vrot.slane %v6493_v36, %v8700_v39 }
 0xc63   : > { %v3599_v12 = vadd.f32 1e-06, %v3594_v43 }
 0xc64   : > { %v3590_v57 = vpop.xlane.xlu1 %3589 }
 0xc65   : > { %8098 = vrsqrt.f32 %v3599_v12  ;;  %v3595_v0 = vmul.f32 0.0078125, %v3590_v57 }
 0xc66   : > { %v8093_v54 = vpop.eup %8092 }
 0xc67   : > { %v3606_v17 = vmul.f32 %v8093_v54, %v9656_v52  ;;  %v3600_v15 = vadd.f32 1e-06, %v3595_v0 }
 0xc69   : > { %8100 = vrsqrt.f32 %v3600_v15  ;;  %v3615_v25 = vmul.f32 %v3614_v16, %v3606_v17 }
 0xc6a   : > { %v8095_v48 = vpop.eup %8094 }
 0xc6b   : > { %v3607_v18 = vmul.f32 %v8095_v48, %v9661_v58  ;;  %v3624_v34 = vadd.f32 %v3623_v55, %v3615_v25  ;;  %v3671_v48 = vrot.slane %v6493_v36, %v8653_v13 }
 0xc6d   : > { %v3616_v6 = vmul.f32 %v3614_v16, %v3607_v18 }
 0xc6e   : > { %v8097_v32 = vpop.eup %8096 }
 0xc6f   : > { %v3625_v22 = vadd.f32 %v3623_v55, %v3616_v6  ;;  %v3608_v19 = vmul.f32 %v8097_v32, %v9666_v46 }
 0xc71   : > { %v3629_v21 = vpack.c.bf16 %v3625_v22, %v3624_v34  ;;  %v3617_v58 = vmul.f32 %v3614_v16, %v3608_v19 }
 0xc72   : > { %v8099_v7 = vpop.eup %8098 }
 0xc73   : > { %3844 = vmatmul.mubr.bf16.vlgmr.msra.gmra.mxu1 %v3629_v21  ;;  %7346 = vmatmul.mubr.bf16.vlgmr.msra.gmra.mxu0 %v3629_v21  ;;  %v3609_v52 = vmul.f32 %v8099_v7, %v9671_v20  ;;  %v3626_v2 = vadd.f32 %v3623_v55, %v3617_v58 }
 0xc74   : > { %3853 = vmatprep.mubr.bf16.mxu1 %v8260_v59  ;;  %7349 = vmatprep.mubr.msk.bf16.mxu0 %vm8261_vm0, %v8259_v14 }
 0xc75   : > { %v3618_v40 = vmul.f32 %v3614_v16, %v3609_v52 }
 0xc76   : > { %v8101_v38 = vpop.eup %8100 }
 0xc77   : > { %v3627_v1 = vadd.f32 %v3623_v55, %v3618_v40  ;;  %v3610_v45 = vmul.f32 %v8101_v38, %v9676_v49 }
 0xc79   : > { %v3630_v44 = vpack.c.bf16 %v3627_v1, %v3626_v2  ;;  %v3619_v46 = vmul.f32 %v3614_v16, %v3610_v45 }
 0xc7b   : > { %3854 = vmatmul.mubr.bf16.gmra.mxu1 %v3630_v44  ;;  %7350 = vmatmul.mubr.bf16.gmra.mxu0 %v3630_v44  ;;  %v3628_v10 = vadd.f32 %v3623_v55, %v3619_v46 }
 0xc7c   : > { %3863 = vmatprep.mubr.bf16.mxu1 %v8260_v59  ;;  %7353 = vmatprep.mubr.msk.bf16.mxu0 %vm8261_vm0, %v8259_v14 }
 0xc7d   : > { %v3631_v28 = vpack.c.bf16 %v3628_v10, %v3628_v10 }
 0xc83   : > { %3864 = vmatmul.mubr.bf16.gmra.mxu1 %v3631_v28  ;;  %7354 = vmatmul.mubr.bf16.gmra.mxu0 %v3631_v28 }
 0xc84   : > { %7363 = vmatprep.mubr.msk.bf16.mxu1 %vm8261_vm0, %v8259_v14  ;;  %7381 = vmatprep.mubr.msk.bf16.mxu0 %vm8261_vm0, %v8259_v14 }
 0xd33   : > { %v3845_v20 = vpop.f32.mrf.mxu1  ;;  %v3906_v49 = vpop.f32.mrf.mxu0 }
 0xd34   : > { %v3846_v38 = vadd.f32 %v3845_v20, %v3671_v48  ;;  %v3907_v10 = vadd.f32 %v3906_v49, %v3679_v62 }
 0xd35   : > { %v3847_v33 = vpop.f32.mrf.mxu1  ;;  %v7347_v60 = vpop.f32.mrf.mxu0 }
 0xd36   : > { %v3848_v18 = vadd.f32 %v3847_v33, %v3675_v61 }
 0xd37   : > { %v3849_v26 = vpop.f32.mrf.mxu1  ;;  %v3909_v47 = vpop.f32.mrf.mxu0 }
 0xd38   : > { %v3850_v22 = vadd.f32 %v3849_v26, %v3671_v48  ;;  %v3910_v1 = vadd.f32 %v3909_v47, %v3679_v62 }
 0xd39   : > { %v3851_v3 = vpop.f32.mrf.mxu1  ;;  %v7348_v29 = vpop.f32.mrf.mxu0 }
 0xd3a   : > { %v3852_v54 = vadd.f32 %v3851_v3, %v3675_v61  ;;  %v3928_v44 = vpack.c.bf16 %v3850_v22, %v3846_v38  ;;  %v9792_v20 = vpack.c.bf16 %v3910_v1, %v3907_v10  ;;  %v9873_v22 = vld [vmem:[%s10790_s3] sm:$0xff] }
 0xd3b   : > { %v3855_v11 = vpop.f32.mrf.mxu1  ;;  %v3914_v42 = vpop.f32.mrf.mxu0 }
 0xd3c   : > { %v3931_v19 = vpack.c.bf16 %v3852_v54, %v3848_v18  ;;  %v3915_v52 = vadd.f32 %v3914_v42, %v3679_v62  ;;  %v3856_v28 = vadd.f32 %v3855_v11, %v3671_v48 }
 0xd3d   : > { %v3857_v4 = vpop.f32.mrf.mxu1  ;;  %v7351_v51 = vpop.f32.mrf.mxu0 }
 0xd3e   : > { %v3858_v43 = vadd.f32 %v3857_v4, %v3675_v61  ;;  %v3947_v47 = vsel %vm1487_vm1, %v3931_v19, 0 }
 0xd3f   : > { %v3859_v37 = vpop.f32.mrf.mxu1  ;;  %v3917_v31 = vpop.f32.mrf.mxu0 }
 0xd40   : > { %v3918_v6 = vadd.f32 %v3917_v31, %v3679_v62  ;;  %v3860_v46 = vadd.f32 %v3859_v37, %v3671_v48 }
 0xd41   : > { %v3861_v53 = vpop.f32.mrf.mxu1  ;;  %v7352_v23 = vpop.f32.mrf.mxu0 }
 0xd42   : > { %v3862_v12 = vadd.f32 %v3861_v53, %v3675_v61  ;;  %v9785_v45 = vpack.c.bf16 %v3918_v6, %v3915_v52  ;;  %v3929_v33 = vpack.c.bf16 %v3860_v46, %v3856_v28 }
 0xd43   : > { %v3865_v41 = vpop.f32.mrf.mxu1  ;;  %v3922_v57 = vpop.f32.mrf.mxu0 }
 0xd44   : > { %v3932_v0 = vpack.c.bf16 %v3862_v12, %v3858_v43  ;;  %v3923_v17 = vadd.f32 %v3922_v57, %v3679_v62  ;;  %v3866_v60 = vadd.f32 %v3865_v41, %v3671_v48 }
 0xd45   : > { %v3867_v16 = vpop.f32.mrf.mxu1  ;;  %v7355_v15 = vpop.f32.mrf.mxu0 }
 0xd46   : > { %v9777_v25 = vpack.c.bf16 %v3923_v17, %v3923_v17  ;;  %v3868_v55 = vadd.f32 %v3867_v16, %v3675_v61  ;;  %4151 = vrot.lane.b32.xlu1 %v3932_v0, %s8262_s24  ;;  %v3950_v49 = vsel %vm1487_vm1, %v3932_v0, 0  ;;  %v3930_v26 = vpack.c.bf16 %v3866_v60, %v3866_v60  ;;  %v9903_v60 = vld [vmem:[%s10790_s3 + $0x18] sm:$0xff] }
 0xd47   : > { %v3869_v32 = vpop.f32.mrf.mxu1  ;;  %v3925_v34 = vpop.f32.mrf.mxu0 }
 0xd48   : > { %v3933_v21 = vpack.c.bf16 %v3868_v55, %v3868_v55  ;;  %v4079_v7 = vsel %vm1630_vm2, %v9777_v25, 0 }
 0xd49   : > { %v3870_v58 = vpop.f32.mrf.mxu1  ;;  %v7356_v40 = vpop.f32.mrf.mxu0  ;;  %7376 = vmatpush3.bf16.msra.mxu0 %v4079_v7 }
 0xd4a   : > { %4153 = vrot.lane.b32.xlu0 %v3933_v21, %s8262_s24  ;;  %4149 = vrot.lane.b32.xlu1 %v3931_v19, %s8262_s24  ;;  %v3953_v2 = vsel %vm1487_vm1, %v3933_v21, 0  ;;  %v9883_v58 = vld [vmem:[%s10790_s3 + $0x8] sm:$0xff] }
 0xd4b   : > { %7358 = vmatpush3.bf16.xpose.msra.mxu1 %v3953_v2  ;;  %7377 = vmatprep.subr.bf16.mxu0 %v8259_v14 }
 0xd4c   : > { %7359 = vmatprep.subr.bf16.mxu1 %v8259_v14 }
 0xd4d   : > { %7378 = vmatpush3.bf16.msra.mxu0 %v9785_v45 }
 0xd4e   : > { %4140 = vrot.lane.b32.xlu0 %v3928_v44, %s8262_s24  ;;  %4376 = vrot.lane.b32.xlu1 %v3933_v21, %s8263_s27 }
 0xd4f   : > { %7379 = vmatprep.subr.bf16.mxu0 %v8259_v14 }
 0xd51   : > { %7380 = vmatpush3.bf16.msra.mxu0 %v9792_v20 }
 0xd52   : > { %4374 = vrot.lane.b32.xlu1 %v3932_v0, %s8263_s27  ;;  %4142 = vrot.lane.b32.xlu0 %v3929_v33, %s8262_s24 }
 0xd53   : > { %7360 = vmatpush3.bf16.xpose.msra.mxu1 %v3950_v49  ;;  %7411 = vmatprep.subr.bf16.mxu0 %v8259_v14 }
 0xd54   : > { %7361 = vmatprep.subr.bf16.mxu1 %v8259_v14 }
 0xd56   : > { %4372 = vrot.lane.b32.xlu1 %v3931_v19, %s8263_s27  ;;  %4144 = vrot.lane.b32.xlu0 %v3930_v26, %s8262_s24 }
 0xd5a   : > { %4596 = vrot.lane.b32.xlu1 %v3933_v21, %s8264_s28  ;;  %4366 = vrot.lane.b32.xlu0 %v3928_v44, %s8263_s27 }
 0xd5b   : > { %7362 = vmatpush3.bf16.xpose.msra.mxu1 %v3947_v47 }
 0xd5c   : > { %7393 = vmatprep.subr.bf16.mxu1 %v8259_v14 }
 0xd5e   : > { %4594 = vrot.lane.b32.xlu1 %v3932_v0, %s8264_s28  ;;  %4368 = vrot.lane.b32.xlu0 %v3929_v33, %s8263_s27 }
 0xd62   : > { %4592 = vrot.lane.b32.xlu1 %v3931_v19, %s8264_s28  ;;  %7364 = vmatmul.mubr.msk.bf16.vlgmr.msra.gmra.mxu1 %vm1487_vm1, %v3928_v44 }
 0xd63   : > { %4370 = vrot.lane.b32.xlu0 %v3930_v26, %s8263_s27  ;;  %7367 = vmatprep.mubr.msk.bf16.mxu1 %vm8261_vm0, %v8259_v14 }
 0xd66   : > { %4588 = vrot.lane.b32.xlu1 %v3929_v33, %s8264_s28 }
 0xd67   : > { %4586 = vrot.lane.b32.xlu0 %v3928_v44, %s8264_s28  ;;  %v9893_v44 = vld [vmem:[%s10790_s3 + $0x10] sm:$0xff] }
 0xd6a   : > { %7368 = vmatmul.mubr.msk.bf16.gmra.mxu1 %vm1487_vm1, %v3929_v33 }
 0xd6b   : > { %4590 = vrot.lane.b32.xlu0 %v3930_v26, %s8264_s28  ;;  %7371 = vmatprep.mubr.msk.bf16.mxu1 %vm8261_vm0, %v8259_v14 }
 0xd6f   : > { %4294 = vrot.lane.b32.xlu0 %v9777_v25, %s8262_s24 }
 0xd72   : > { %7372 = vmatmul.mubr.msk.bf16.gmra.mxu1 %vm1487_vm1, %v3930_v26 }
 0xd73   : > { %7399 = vmatprep.mubr.msk.bf16.mxu1 %vm8261_vm0, %v8259_v14 }
 0xdb8   : > { %v4152_v11 = vpop.permute.xlu1 %4151 }
 0xdb9   : > { %v4168_v42 = vsel %vm1487_vm1, %v4152_v11, 0 }
 0xdbc   : > { %v4154_v3 = vpop.permute.xlu0 %4153  ;;  %v4150_v4 = vpop.permute.xlu1 %4149 }
 0xdbd   : > { %v4171_v29 = vsel %vm1487_vm1, %v4154_v3, 0  ;;  %v4165_v51 = vsel %vm1487_vm1, %v4150_v4, 0  ;;  %v9917_v4 = vld [vmem:[%s10790_s3 + $0x20] sm:$0xff] }
 0xdbe   : > { %7394 = vmatpush3.bf16.xpose.msra.mxu1 %v4171_v29 }
 0xdbf   : > { %7395 = vmatprep.subr.bf16.mxu1 %v8259_v14 }
 0xdc0   : > { %v4377_v36 = vpop.permute.xlu1 %4376  ;;  %v4141_v37 = vpop.permute.xlu0 %4140 }
 0xdc1   : > { %v4394_v31 = vsel %vm1487_vm1, %v4377_v36, 0 }
 0xdc4   : > { %v4375_v61 = vpop.permute.xlu1 %4374  ;;  %v4143_v53 = vpop.permute.xlu0 %4142 }
 0xdc5   : > { %v4391_v23 = vsel %vm1487_vm1, %v4375_v61, 0 }
 0xdc6   : > { %7396 = vmatpush3.bf16.xpose.msra.mxu1 %v4168_v42 }
 0xdc7   : > { %7397 = vmatprep.subr.bf16.mxu1 %v8259_v14 }
 0xdc8   : > { %v4373_v62 = vpop.permute.xlu1 %4372  ;;  %v4145_v43 = vpop.permute.xlu0 %4144 }
 0xdc9   : > { %v4388_v12 = vsel %vm1487_vm1, %v4373_v62, 0 }
 0xdcc   : > { %v4597_v41 = vpop.permute.xlu1 %4596  ;;  %v4367_v57 = vpop.permute.xlu0 %4366 }
 0xdcd   : > { %v4614_v54 = vsel %vm1487_vm1, %v4597_v41, 0 }
 0xdce   : > { %7398 = vmatpush3.bf16.xpose.msra.mxu1 %v4165_v51 }
 0xdcf   : > { %7429 = vmatprep.subr.bf16.mxu1 %v8259_v14 }
 0xdd0   : > { %v4595_v0 = vpop.permute.xlu1 %4594  ;;  %v4369_v17 = vpop.permute.xlu0 %4368 }
 0xdd1   : > { %v4611_v16 = vsel %vm1487_vm1, %v4595_v0, 0 }
 0xdd4   : > { %v4593_v15 = vpop.permute.xlu1 %4592 }
 0xdd5   : > { %7400 = vmatmul.mubr.msk.bf16.vlgmr.msra.gmra.mxu1 %vm1487_vm1, %v4141_v37  ;;  %v4371_v48 = vpop.permute.xlu0 %4370  ;;  %v4608_v18 = vsel %vm1487_vm1, %v4593_v15, 0 }
 0xdd6   : > { %7430 = vmatpush3.bf16.xpose.msra.mxu1 %v4394_v31  ;;  %7403 = vmatprep.mubr.msk.bf16.mxu1 %vm8261_vm0, %v8259_v14 }
 0xdd7   : > { %7431 = vmatprep.subr.bf16.mxu1 %v8259_v14 }
 0xdd8   : > { %v4589_v6 = vpop.permute.xlu1 %4588 }
 0xdd9   : > { %v4587_v55 = vpop.permute.xlu0 %4586 }
 0xddd   : > { %7404 = vmatmul.mubr.msk.bf16.gmra.mxu1 %vm1487_vm1, %v4143_v53  ;;  %v4591_v32 = vpop.permute.xlu0 %4590 }
 0xdde   : > { %7432 = vmatpush3.bf16.xpose.msra.mxu1 %v4391_v23  ;;  %7407 = vmatprep.mubr.msk.bf16.mxu1 %vm8261_vm0, %v8259_v14 }
 0xddf   : > { %7433 = vmatprep.subr.bf16.mxu1 %v8259_v14 }
 0xde5   : > { %7408 = vmatmul.mubr.msk.bf16.gmra.mxu1 %vm1487_vm1, %v4145_v43 }
 0xde6   : > { %7434 = vmatpush3.bf16.xpose.msra.mxu1 %v4388_v12  ;;  %7435 = vmatprep.mubr.msk.bf16.mxu1 %vm8261_vm0, %v8259_v14 }
 0xde7   : > { %7465 = vmatprep.subr.bf16.mxu1 %v8259_v14 }
 0xded   : > { %7436 = vmatmul.mubr.msk.bf16.vlgmr.msra.gmra.mxu1 %vm1487_vm1, %v4367_v57 }
 0xdee   : > { %7466 = vmatpush3.bf16.xpose.msra.mxu1 %v4614_v54  ;;  %7439 = vmatprep.mubr.msk.bf16.mxu1 %vm8261_vm0, %v8259_v14 }
 0xdef   : > { %7467 = vmatprep.subr.bf16.mxu1 %v8259_v14 }
 0xdf5   : > { %7440 = vmatmul.mubr.msk.bf16.gmra.mxu1 %vm1487_vm1, %v4369_v17 }
 0xdf6   : > { %7468 = vmatpush3.bf16.xpose.msra.mxu1 %v4611_v16  ;;  %7443 = vmatprep.mubr.msk.bf16.mxu1 %vm8261_vm0, %v8259_v14 }
 0xdf7   : > { %7469 = vmatprep.subr.bf16.mxu1 %v8259_v14 }
 0xdfd   : > { %7444 = vmatmul.mubr.msk.bf16.gmra.mxu1 %vm1487_vm1, %v4371_v48 }
 0xdfe   : > { %7470 = vmatpush3.bf16.xpose.msra.mxu1 %v4608_v18  ;;  %7471 = vmatprep.mubr.msk.bf16.mxu1 %vm8261_vm0, %v8259_v14 }
 0xdff   : > { %7501 = vmatprep.subr.bf16.mxu1 %v8259_v14 }
 0xe05   : > { %7472 = vmatmul.mubr.msk.bf16.vlgmr.msra.gmra.mxu1 %vm1487_vm1, %v4587_v55 }
 0xe06   : > { %7475 = vmatprep.mubr.msk.bf16.mxu1 %vm8261_vm0, %v8259_v14 }
 0xe0d   : > { %7476 = vmatmul.mubr.msk.bf16.gmra.mxu1 %vm1487_vm1, %v4589_v6 }
 0xe0e   : > { %7479 = vmatprep.mubr.msk.bf16.mxu1 %vm8261_vm0, %v8259_v14 }
 0xe15   : > { %7480 = vmatmul.mubr.msk.bf16.gmra.mxu1 %vm1487_vm1, %v4591_v32 }
 0xe16   : > { %7517 = vmatprep.mubr.msk.bf16.mxu1 %vm8261_vm0, %v8259_v14 }
 0xe22   : > { %v3989_v34 = vpop.f32.mrf.mxu1 }
 0xe23   : > { %v9876_v19 = vadd.f32 %v9873_v22, %v3989_v34 }
 0xe24   : > { %v7365_v21 = vpop.f32.mrf.mxu1 }
 0xe25   : > { %v4011_v7 = vsel %vm1562_vm3, %v9876_v19, -inf }
 0xe26   : > { %v3992_v52 = vpop.f32.mrf.mxu1  ;;  %4012 = vmax.xlane.f32.xlu1 %v4011_v7 }
 0xe27   : > { %v9886_v40 = vadd.f32 %v9883_v58, %v3992_v52  ;;  %v9949_v52 = vpop.permute.xlu0 %4294 }
 0xe28   : > { %v7366_v38 = vpop.f32.mrf.mxu1 }
 0xe29   : > { %v4014_v2 = vsel %vm1562_vm3, %v9886_v40, -inf }
 0xe2a   : > { %4015 = vmax.xlane.f32.xlu0 %v4014_v2  ;;  %v3997_v1 = vpop.f32.mrf.mxu1 }
 0xe2b   : > { %v9896_v46 = vadd.f32 %v9893_v44, %v3997_v1 }
 0xe2c   : > { %v7369_v10 = vpop.f32.mrf.mxu1 }
 0xe2d   : > { %v4017_v28 = vsel %vm1562_vm3, %v9896_v46, -inf }
 0xe2e   : > { %4018 = vmax.xlane.f32.xlu0 %v4017_v28  ;;  %v4000_v33 = vpop.f32.mrf.mxu1 }
 0xe2f   : > { %v9906_v49 = vadd.f32 %v9903_v60, %v4000_v33 }
 0xe30   : > { %v7370_v26 = vpop.f32.mrf.mxu1 }
 0xe31   : > { %v4020_v47 = vsel %vm1562_vm3, %v9906_v49, -inf }
 0xe32   : > { %4021 = vmax.xlane.f32.xlu1 %v4020_v47  ;;  %v4005_v3 = vpop.f32.mrf.mxu1 }
 0xe33   : > { %v9920_v51 = vadd.f32 %v9917_v4, %v4005_v3 }
 0xe34   : > { %v7373_v29 = vpop.f32.mrf.mxu1 }
 0xe35   : > { %v4023_v36 = vsel %vm1562_vm3, %v9920_v51, -inf }
 0xe36   : > { %v4008_v11 = vpop.f32.mrf.mxu1 }
 0xe38   : > { %v7374_v42 = vpop.f32.mrf.mxu1 }
 0xe43   : > { %4292 = vrot.lane.b32.xlu1 %v9785_v45, %s8262_s24 }
 0xe44   : > { %4290 = vrot.lane.b32.xlu0 %v9792_v20, %s8262_s24 }
 0xe63   : > { %4024 = vmax.xlane.f32.xlu0 %v4023_v36 }
 0xe95   : > { %v4207_v37 = vpop.f32.mrf.mxu1 }
 0xe96   : > { %v9925_v31 = vadd.f32 %v9873_v22, %v4207_v37 }
 0xe97   : > { %v7401_v61 = vpop.f32.mrf.mxu1 }
 0xe98   : > { %v4229_v53 = vsel %vm1562_vm3, %v9925_v31, -inf }
 0xe99   : > { %4230 = vmax.xlane.f32.xlu1 %v4229_v53  ;;  %v4210_v23 = vpop.f32.mrf.mxu1 }
 0xe9a   : > { %v9930_v62 = vadd.f32 %v9883_v58, %v4210_v23 }
 0xe9b   : > { %v7402_v43 = vpop.f32.mrf.mxu1 }
 0xe9c   : > { %v4232_v12 = vsel %vm1562_vm3, %v9930_v62, -inf }
 0xe9d   : > { %4233 = vmax.xlane.f32.xlu0 %v4232_v12  ;;  %v4215_v41 = vpop.f32.mrf.mxu1 }
 0xe9e   : > { %v9935_v57 = vadd.f32 %v9893_v44, %v4215_v41 }
 0xe9f   : > { %v7405_v54 = vpop.f32.mrf.mxu1 }
 0xea0   : > { %v4235_v0 = vsel %vm1562_vm3, %v9935_v57, -inf }
 0xea1   : > { %4236 = vmax.xlane.f32.xlu1 %v4235_v0  ;;  %v4218_v17 = vpop.f32.mrf.mxu1 }
 0xea2   : > { %v9940_v16 = vadd.f32 %v9903_v60, %v4218_v17 }
 0xea3   : > { %v7406_v15 = vpop.f32.mrf.mxu1 }
 0xea4   : > { %v4238_v48 = vsel %vm1562_vm3, %v9940_v16, -inf }
 0xea5   : > { %4239 = vmax.xlane.f32.xlu0 %v4238_v48  ;;  %v4223_v18 = vpop.f32.mrf.mxu1 }
 0xea6   : > { %v9945_v55 = vadd.f32 %v9917_v4, %v4223_v18 }
 0xea7   : > { %v7409_v6 = vpop.f32.mrf.mxu1 }
 0xea8   : > { %v4241_v32 = vsel %vm1562_vm3, %v9945_v55, -inf }
 0xea9   : > { %4242 = vmax.xlane.f32.xlu1 %v4241_v32  ;;  %v4226_v34 = vpop.f32.mrf.mxu1 }
 0xeab   : > { %v7410_v21 = vpop.f32.mrf.mxu1 }
 0xead   : > { %v4430_v7 = vpop.f32.mrf.mxu1 }
 0xeae   : > { %v9952_v38 = vadd.f32 %v9873_v22, %v4430_v7 }
 0xeaf   : > { %v4013_v2 = vpop.xlane.xlu1 %4012  ;;  %v7437_v1 = vpop.f32.mrf.mxu1 }
 0xeb0   : > { %v4026_v10 = vsub.f32 %v9876_v19, %v4013_v2  ;;  %v4452_v28 = vsel %vm1562_vm3, %v9952_v38, -inf }
 0xeb1   : > { %4453 = vmax.xlane.f32.xlu0 %v4452_v28  ;;  %v4433_v33 = vpop.f32.mrf.mxu1 }
 0xeb2   : > { %v4031_v26 = vmul.f32 1.442695, %v4026_v10  ;;  %v9958_v47 = vadd.f32 %v9883_v58, %v4433_v33 }
 0xeb3   : > { %v4016_v3 = vpop.xlane.xlu0 %4015  ;;  %v7438_v29 = vpop.f32.mrf.mxu1 }
 0xeb4   : > { %8102 = vpow2.f32 %v4031_v26  ;;  %v4027_v11 = vsub.f32 %v9886_v40, %v4016_v3  ;;  %v4455_v42 = vsel %vm1562_vm3, %v9958_v47, -inf }
 0xeb5   : > { %4456 = vmax.xlane.f32.xlu1 %v4455_v42  ;;  %v4438_v36 = vpop.f32.mrf.mxu1 }
 0xeb6   : > { %v4033_v19 = vmul.f32 1.442695, %v4027_v11  ;;  %v9964_v37 = vadd.f32 %v9893_v44, %v4438_v36 }
 0xeb7   : > { %v4019_v61 = vpop.xlane.xlu0 %4018  ;;  %v7441_v53 = vpop.f32.mrf.mxu1 }
 0xeb8   : > { %8104 = vpow2.f32 %v4033_v19  ;;  %v4028_v23 = vsub.f32 %v9896_v46, %v4019_v61  ;;  %v4458_v43 = vsel %vm1562_vm3, %v9964_v37, -inf }
 0xeb9   : > { %4459 = vmax.xlane.f32.xlu0 %v4458_v43  ;;  %v4441_v12 = vpop.f32.mrf.mxu1 }
 0xeba   : > { %v4035_v40 = vmul.f32 1.442695, %v4028_v23  ;;  %v9970_v41 = vadd.f32 %v9903_v60, %v4441_v12 }
 0xebb   : > { %v4022_v54 = vpop.xlane.xlu1 %4021  ;;  %v7442_v17 = vpop.f32.mrf.mxu1 }
 0xebc   : > { %v4029_v0 = vsub.f32 %v9906_v49, %v4022_v54  ;;  %v4461_v15 = vsel %vm1562_vm3, %v9970_v41, -inf  ;;  %8106 = vpow2.f32 %v4035_v40 }
 0xebd   : > { %4462 = vmax.xlane.f32.xlu1 %v4461_v15  ;;  %v4446_v46 = vpop.f32.mrf.mxu1 }
 0xebe   : > { %v4037_v48 = vmul.f32 1.442695, %v4029_v0  ;;  %v9976_v18 = vadd.f32 %v9917_v4, %v4446_v46 }
 0xebf   : > { %v7445_v6 = vpop.f32.mrf.mxu1 }
 0xec0   : > { %8108 = vpow2.f32 %v4037_v48  ;;  %v4464_v34 = vsel %vm1562_vm3, %v9976_v18, -inf }
 0xec1   : > { %v9978_v32 = vpop.eup %8102  ;;  %4465 = vmax.xlane.f32.xlu0 %v4464_v34  ;;  %v4449_v49 = vpop.f32.mrf.mxu1 }
 0xec2   : > { %v4041_v21 = vsel %vm1562_vm3, %v9978_v32, 0.0 }
 0xec3   : > { %4042 = vadd.xlane.f32.xlu1 %v4041_v21  ;;  %v7446_v7 = vpop.f32.mrf.mxu1 }
 0xec5   : > { %v9984_v2 = vpop.eup %8104  ;;  %v4650_v1 = vpop.f32.mrf.mxu1 }
 0xec6   : > { %v4044_v10 = vsel %vm1562_vm3, %v9984_v2, 0.0  ;;  %v9989_v28 = vadd.f32 %v9873_v22, %v4650_v1 }
 0xec7   : > { %4045 = vadd.xlane.f32.xlu0 %v4044_v10  ;;  %v7473_v33 = vpop.f32.mrf.mxu1  ;;  %v10032_v10 = vpop.permute.xlu1 %4292 }
 0xec8   : > { %v4672_v26 = vsel %vm1562_vm3, %v9989_v28, -inf }
 0xec9   : > { %v9993_v3 = vpop.eup %8106  ;;  %4673 = vmax.xlane.f32.xlu1 %v4672_v26  ;;  %v4653_v29 = vpop.f32.mrf.mxu1 }
 0xeca   : > { %v9996_v11 = vadd.f32 %v9883_v58, %v4653_v29  ;;  %v4047_v36 = vsel %vm1562_vm3, %v9993_v3, 0.0 }
 0xecb   : > { %v7474_v42 = vpop.f32.mrf.mxu1 }
 0xecc   : > { %v4675_v22 = vsel %vm1562_vm3, %v9996_v11, -inf }
 0xecd   : > { %v10002_v19 = vpop.eup %8108  ;;  %4048 = vadd.xlane.f32.xlu1 %v4047_v36  ;;  %4676 = vmax.xlane.f32.xlu0 %v4675_v22  ;;  %v4658_v61 = vpop.f32.mrf.mxu1 }
 0xece   : > { %v10005_v53 = vadd.f32 %v9893_v44, %v4658_v61  ;;  %v4050_v58 = vsel %vm1562_vm3, %v10002_v19, 0.0  ;;  %v10013_v44 = vpop.permute.xlu0 %4290 }
 0xecf   : > { %v7477_v23 = vpop.f32.mrf.mxu1 }
 0xed0   : > { %v4678_v43 = vsel %vm1562_vm3, %v10005_v53, -inf }
 0xed1   : > { %4051 = vadd.xlane.f32.xlu0 %v4050_v58  ;;  %4679 = vmax.xlane.f32.xlu1 %v4678_v43  ;;  %v4661_v12 = vpop.f32.mrf.mxu1 }
 0xed2   : > { %v10024_v21 = vadd.f32 %v9903_v60, %v4661_v12 }
 0xed3   : > { %v7478_v40 = vpop.f32.mrf.mxu1 }
 0xed5   : > { %v4666_v54 = vpop.f32.mrf.mxu1 }
 0xed6   : > { %v10019_v34 = vadd.f32 %v9917_v4, %v4666_v54 }
 0xed7   : > { %v7481_v0 = vpop.f32.mrf.mxu1 }
 0xed8   : > { %v4684_v1 = vsel %vm1562_vm3, %v10019_v34, -inf }
 0xed9   : > { %v4669_v17 = vpop.f32.mrf.mxu1 }
 0xedb   : > { %v7482_v15 = vpop.f32.mrf.mxu1 }
 0xee2   : > { %4514 = vrot.lane.b32.xlu1 %v9777_v25, %s8263_s27 }
 0xee7   : > { %4512 = vrot.lane.b32.xlu0 %v9785_v45, %s8263_s27 }
 0xeec   : > { %v4025_v48 = vpop.xlane.xlu0 %4024 }
 0xeed   : > { %v4030_v46 = vsub.f32 %v9920_v51, %v4025_v48  ;;  %v4681_v51 = vsel %vm1562_vm3, %v10024_v21, -inf }
 0xeef   : > { %v4039_v6 = vmul.f32 1.442695, %v4030_v46 }
 0xef1   : > { %8110 = vpow2.f32 %v4039_v6 }
 0xefe   : > { %v10021_v49 = vpop.eup %8110 }
 0xeff   : > { %v4053_v7 = vsel %vm1562_vm3, %v10021_v49, 0.0 }
 0xf06   : > { %4054 = vadd.xlane.f32.xlu0 %v4053_v7  ;;  %4685 = vmax.xlane.f32.xlu1 %v4684_v1 }
 0xf0a   : > { %4682 = vmax.xlane.f32.xlu0 %v4681_v51 }
 0xf22   : > { %v4231_v4 = vpop.xlane.xlu1 %4230 }
 0xf23   : > { %v4244_v33 = vsub.f32 %v9925_v31, %v4231_v4 }
 0xf25   : > { %v4249_v26 = vmul.f32 1.442695, %v4244_v33 }
 0xf26   : > { %v4234_v60 = vpop.xlane.xlu0 %4233 }
 0xf27   : > { %8112 = vpow2.f32 %v4249_v26  ;;  %v4245_v29 = vsub.f32 %v9930_v62, %v4234_v60 }
 0xf29   : > { %v4251_v42 = vmul.f32 1.442695, %v4245_v29 }
 0xf2a   : > { %v4237_v36 = vpop.xlane.xlu1 %4236 }
 0xf2b   : > { %8114 = vpow2.f32 %v4251_v42  ;;  %v4246_v22 = vsub.f32 %v9935_v57, %v4237_v36 }
 0xf2d   : > { %v4253_v61 = vmul.f32 1.442695, %v4246_v22 }
 0xf2e   : > { %v4240_v23 = vpop.xlane.xlu0 %4239 }
 0xf2f   : > { %8116 = vpow2.f32 %v4253_v61  ;;  %v4247_v58 = vsub.f32 %v9940_v16, %v4240_v23 }
 0xf31   : > { %v4255_v43 = vmul.f32 1.442695, %v4247_v58 }
 0xf32   : > { %v4243_v12 = vpop.xlane.xlu1 %4242 }
 0xf33   : > { %8118 = vpow2.f32 %v4255_v43  ;;  %v4248_v31 = vsub.f32 %v9945_v55, %v4243_v12 }
 0xf34   : > { %v10039_v40 = vpop.eup %8112 }
 0xf35   : > { %v4257_v54 = vmul.f32 1.442695, %v4248_v31  ;;  %v4259_v62 = vsel %vm1562_vm3, %v10039_v40, 0.0 }
 0xf36   : > { %4260 = vadd.xlane.f32.xlu1 %v4259_v62 }
 0xf37   : > { %8120 = vpow2.f32 %v4257_v54 }
 0xf38   : > { %v10043_v0 = vpop.eup %8114 }
 0xf39   : > { %v4262_v57 = vsel %vm1562_vm3, %v10043_v0, 0.0 }
 0xf3a   : > { %v4454_v17 = vpop.xlane.xlu0 %4453  ;;  %4263 = vadd.xlane.f32.xlu0 %v4262_v57 }
 0xf3b   : > { %v4467_v16 = vsub.f32 %v9952_v38, %v4454_v17 }
 0xf3c   : > { %v10048_v15 = vpop.eup %8116 }
 0xf3d   : > { %v4472_v55 = vmul.f32 1.442695, %v4467_v16  ;;  %v4265_v48 = vsel %vm1562_vm3, %v10048_v15, 0.0 }
 0xf3e   : > { %4266 = vadd.xlane.f32.xlu1 %v4265_v48  ;;  %v4457_v7 = vpop.xlane.xlu1 %4456 }
 0xf3f   : > { %8122 = vpow2.f32 %v4472_v55 }
 0xf40   : > { %v10052_v46 = vpop.eup %8118 }
 0xf41   : > { %v4268_v6 = vsel %vm1562_vm3, %v10052_v46, 0.0 }
 0xf42   : > { %v4460_v1 = vpop.xlane.xlu0 %4459  ;;  %4269 = vadd.xlane.f32.xlu0 %v4268_v6 }
 0xf43   : > { %v4469_v51 = vsub.f32 %v9964_v37, %v4460_v1 }
 0xf44   : > { %v10057_v4 = vpop.eup %8120 }
 0xf45   : > { %v4476_v38 = vmul.f32 1.442695, %v4469_v51  ;;  %v4271_v33 = vsel %vm1562_vm3, %v10057_v4, 0.0 }
 0xf46   : > { %v4463_v26 = vpop.xlane.xlu1 %4462  ;;  %4272 = vadd.xlane.f32.xlu1 %v4271_v33 }
 0xf47   : > { %8124 = vpow2.f32 %v4476_v38  ;;  %v4470_v60 = vsub.f32 %v9970_v41, %v4463_v26 }
 0xf49   : > { %v4478_v29 = vmul.f32 1.442695, %v4470_v60 }
 0xf4a   : > { %v4466_v42 = vpop.xlane.xlu0 %4465 }
 0xf4b   : > { %8126 = vpow2.f32 %v4478_v29  ;;  %v4471_v22 = vsub.f32 %v9976_v18, %v4466_v42 }
 0xf4c   : > { %v10062_v36 = vpop.eup %8122  ;;  %v4043_v61 = vpop.xlane.xlu1 %4042 }
 0xf4d   : > { %v4482_v37 = vsel %vm1562_vm3, %v10062_v36, 0.0  ;;  %v4480_v23 = vmul.f32 1.442695, %v4471_v22  ;;  %8128 = vrcp.f32 %v4043_v61  ;;  %v4308_v22 = vsel %vm1630_vm2, %v9949_v52, 0 }
 0xf4e   : > { %4483 = vadd.xlane.f32.xlu1 %v4482_v37 }
 0xf4f   : > { %8130 = vpow2.f32 %v4480_v23 }
 0xf50   : > { %v4046_v58 = vpop.xlane.xlu0 %4045 }
 0xf51   : > { %8132 = vrcp.f32 %v4046_v58 }
 0xf52   : > { %v4674_v43 = vpop.xlane.xlu1 %4673 }
 0xf54   : > { %v10067_v12 = vpop.eup %8124 }
 0xf55   : > { %v4488_v41 = vsel %vm1562_vm3, %v10067_v12, 0.0 }
 0xf56   : > { %4489 = vadd.xlane.f32.xlu1 %v4488_v41  ;;  %v4049_v31 = vpop.xlane.xlu1 %4048  ;;  %v4677_v54 = vpop.xlane.xlu0 %4676 }
 0xf57   : > { %v4688_v62 = vsub.f32 %v9996_v11, %v4677_v54  ;;  %8134 = vrcp.f32 %v4049_v31  ;;  %v4468_v11 = vsub.f32 %v9958_v47, %v4457_v7 }
 0xf58   : > { %v10071_v18 = vpop.eup %8126  ;;  %4510 = vrot.lane.b32.xlu0 %v9792_v20, %s8263_s27 }
 0xf59   : > { %v4491_v57 = vsel %vm1562_vm3, %v10071_v18, 0.0  ;;  %v4694_v17 = vmul.f32 1.442695, %v4688_v62  ;;  %v4474_v42 = vmul.f32 1.442695, %v4468_v11 }
 0xf5a   : > { %4492 = vadd.xlane.f32.xlu1 %v4491_v57  ;;  %v4052_v16 = vpop.xlane.xlu0 %4051  ;;  %v4680_v55 = vpop.xlane.xlu1 %4679 }
 0xf5b   : > { %v8129_v48 = vpop.eup %8128  ;;  %8136 = vpow2.f32 %v4694_v17  ;;  %v4689_v6 = vsub.f32 %v10005_v53, %v4680_v55  ;;  %v4687_v53 = vsub.f32 %v9989_v28, %v4674_v43 }
 0xf5c   : > { %v10079_v1 = vpop.eup %8130  ;;  %8138 = vrcp.f32 %v4052_v16  ;;  %v4061_v26 = vmul.f32 %v8129_v48, %v9978_v32 }
 0xf5d   : > { %v4696_v38 = vmul.f32 1.442695, %v4689_v6  ;;  %v4494_v33 = vsel %vm1562_vm3, %v10079_v1, 0.0  ;;  %v4692_v47 = vmul.f32 1.442695, %v4687_v53 }
 0xf5e   : > { %v8133_v51 = vpop.eup %8132  ;;  %4495 = vadd.xlane.f32.xlu1 %v4494_v33  ;;  %v4513_v43 = vpop.permute.xlu0 %4512 }
 0xf5f   : > { %v4062_v60 = vmul.f32 %v8133_v51, %v9984_v2  ;;  %8140 = vpow2.f32 %v4696_v38  ;;  %v4515_v31 = vpop.permute.xlu1 %4514 }
 0xf60   : > { %8142 = vpow2.f32 %v4474_v42 }
 0xf61   : > { %v4066_v29 = vpack.c.bf16 %v4062_v60, %v4061_v26  ;;  %8144 = vpow2.f32 %v4692_v47  ;;  %v4528_v47 = vsel %vm1630_vm2, %v4515_v31, 0 }
 0xf63   : > { %7382 = vmatmul.mubr.msk.bf16.vlgmr.msra.gmra.mxu0 %vm1562_vm3, %v4066_v29 }
 0xf64   : > { %7412 = vmatpush3.bf16.msra.mxu0 %v4308_v22  ;;  %7385 = vmatprep.mubr.msk.bf16.mxu0 %vm8261_vm0, %v8259_v14  ;;  %v8135_v32 = vpop.eup %8134 }
 0xf65   : > { %7413 = vmatprep.subr.bf16.mxu0 %v8259_v14  ;;  %v4063_v7 = vmul.f32 %v8135_v32, %v9993_v3 }
 0xf68   : > { %7414 = vmatpush3.bf16.msra.mxu0 %v10032_v10  ;;  %v10094_v2 = vpop.eup %8136 }
 0xf69   : > { %7415 = vmatprep.subr.bf16.mxu0 %v8259_v14  ;;  %v8139_v28 = vpop.eup %8138  ;;  %v4705_v52 = vsel %vm1562_vm3, %v10094_v2, 0.0 }
 0xf6a   : > { %4706 = vadd.xlane.f32.xlu1 %v4705_v52  ;;  %v4064_v61 = vmul.f32 %v8139_v28, %v10002_v19 }
 0xf6c   : > { %7416 = vmatpush3.bf16.msra.mxu0 %v10013_v44  ;;  %v10102_v37 = vpop.eup %8140  ;;  %v4067_v23 = vpack.c.bf16 %v4064_v61, %v4063_v7 }
 0xf6d   : > { %7447 = vmatprep.subr.bf16.mxu0 %v8259_v14  ;;  %v4708_v10 = vsel %vm1562_vm3, %v10102_v37, 0.0  ;;  %v10110_v58 = vpop.eup %8142 }
 0xf6e   : > { %7386 = vmatmul.mubr.msk.bf16.gmra.mxu0 %vm1562_vm3, %v4067_v23  ;;  %4709 = vadd.xlane.f32.xlu1 %v4708_v10  ;;  %v4485_v3 = vsel %vm1562_vm3, %v10110_v58, 0.0  ;;  %v10114_v19 = vpop.eup %8144 }
 0xf6f   : > { %7389 = vmatprep.mubr.msk.bf16.mxu0 %vm8261_vm0, %v8259_v14  ;;  %v4702_v44 = vsel %vm1562_vm3, %v10114_v19, 0.0 }
 0xf77   : > { %4486 = vadd.xlane.f32.xlu0 %v4485_v3 }
 0xf7b   : > { %4703 = vadd.xlane.f32.xlu0 %v4702_v44 }
 0xf8f   : > { %v4055_v41 = vpop.xlane.xlu0 %4054  ;;  %v4686_v17 = vpop.xlane.xlu1 %4685 }
 0xf90   : > { %8146 = vrcp.f32 %v4055_v41  ;;  %v4691_v16 = vsub.f32 %v10019_v34, %v4686_v17 }
 0xf91   : > { %4732 = vrot.lane.b32.xlu0 %v9785_v45, %s8264_s28 }
 0xf92   : > { %v4700_v48 = vmul.f32 1.442695, %v4691_v16 }
 0xf93   : > { %v4683_v54 = vpop.xlane.xlu0 %4682 }
 0xf94   : > { %v4690_v62 = vsub.f32 %v10024_v21, %v4683_v54 }
 0xf95   : > { %4730 = vrot.lane.b32.xlu0 %v9792_v20, %s8264_s28 }
 0xf96   : > { %v4698_v57 = vmul.f32 1.442695, %v4690_v62 }
 0xf98   : > { %8148 = vpow2.f32 %v4698_v57 }
 0xf99   : > { %8150 = vpow2.f32 %v4700_v48 }
 0xf9d   : > { %v8147_v55 = vpop.eup %8146 }
 0xf9e   : > { %v4065_v6 = vmul.f32 %v8147_v55, %v10021_v49 }
 0xfa0   : > { %v4068_v51 = vpack.c.bf16 %v4065_v6, %v4065_v6 }
 0xfa2   : > { %7390 = vmatmul.mubr.msk.bf16.gmra.mxu0 %vm1562_vm3, %v4068_v51 }
 0xfa3   : > { %7417 = vmatprep.mubr.msk.bf16.mxu0 %vm8261_vm0, %v8259_v14 }
 0xfa5   : > { %v10128_v45 = vpop.eup %8148 }
 0xfa6   : > { %v4711_v20 = vsel %vm1562_vm3, %v10128_v45, 0.0  ;;  %v10132_v21 = vpop.eup %8150 }
 0xfa7   : > { %4712 = vadd.xlane.f32.xlu1 %v4711_v20  ;;  %v4714_v34 = vsel %vm1562_vm3, %v10132_v21, 0.0 }
 0xfb4   : > { %4715 = vadd.xlane.f32.xlu0 %v4714_v34 }
 0xfb8   : > { %4734 = vrot.lane.b32.xlu1 %v9777_v25, %s8264_s28 }
 0xfbf   : > { %v4261_v49 = vpop.xlane.xlu1 %4260 }
 0xfc0   : > { %8152 = vrcp.f32 %v4261_v49 }
 0xfc3   : > { %v4264_v11 = vpop.xlane.xlu0 %4263 }
 0xfc4   : > { %8154 = vrcp.f32 %v4264_v11 }
 0xfc7   : > { %v4267_v38 = vpop.xlane.xlu1 %4266 }
 0xfc8   : > { %8156 = vrcp.f32 %v4267_v38 }
 0xfcb   : > { %v4270_v33 = vpop.xlane.xlu0 %4269 }
 0xfcc   : > { %8158 = vrcp.f32 %v4270_v33 }
 0xfcd   : > { %v8153_v26 = vpop.eup %8152 }
 0xfce   : > { %v4279_v42 = vmul.f32 %v8153_v26, %v10039_v40 }
 0xfcf   : > { %v4273_v60 = vpop.xlane.xlu1 %4272  ;;  %v4511_v7 = vpop.permute.xlu0 %4510 }
 0xfd0   : > { %8160 = vrcp.f32 %v4273_v60 }
 0xfd1   : > { %v8155_v29 = vpop.eup %8154 }
 0xfd2   : > { %v4280_v53 = vmul.f32 %v8155_v29, %v10043_v0 }
 0xfd4   : > { %v4284_v22 = vpack.c.bf16 %v4280_v53, %v4279_v42 }
 0xfd5   : > { %v8157_v25 = vpop.eup %8156 }
 0xfd6   : > { %7418 = vmatmul.mubr.msk.bf16.vlgmr.msra.gmra.mxu0 %vm1562_vm3, %v4284_v22  ;;  %v4281_v28 = vmul.f32 %v8157_v25, %v10048_v15 }
 0xfd7   : > { %7448 = vmatpush3.bf16.msra.mxu0 %v4528_v47  ;;  %7421 = vmatprep.mubr.msk.bf16.mxu0 %vm8261_vm0, %v8259_v14  ;;  %v4484_v15 = vpop.xlane.xlu1 %4483 }
 0xfd8   : > { %7449 = vmatprep.subr.bf16.mxu0 %v8259_v14  ;;  %8162 = vrcp.f32 %v4484_v15 }
 0xfd9   : > { %v8159_v32 = vpop.eup %8158 }
 0xfda   : > { %v4282_v52 = vmul.f32 %v8159_v32, %v10052_v46 }
 0xfdb   : > { %7450 = vmatpush3.bf16.msra.mxu0 %v4513_v43 }
 0xfdc   : > { %7451 = vmatprep.subr.bf16.mxu0 %v8259_v14  ;;  %v4285_v40 = vpack.c.bf16 %v4282_v52, %v4281_v28 }
 0xfdd   : > { %v8161_v0 = vpop.eup %8160 }
 0xfde   : > { %7422 = vmatmul.mubr.msk.bf16.gmra.mxu0 %vm1562_vm3, %v4285_v40  ;;  %v4283_v61 = vmul.f32 %v8161_v0, %v10057_v4 }
 0xfdf   : > { %7452 = vmatpush3.bf16.msra.mxu0 %v4511_v7  ;;  %7425 = vmatprep.mubr.msk.bf16.mxu0 %vm8261_vm0, %v8259_v14  ;;  %v4490_v46 = vpop.xlane.xlu1 %4489 }
 0xfe0   : > { %7483 = vmatprep.subr.bf16.mxu0 %v8259_v14  ;;  %v4286_v23 = vpack.c.bf16 %v4283_v61, %v4283_v61 }
 0xfe3   : > { %v4493_v3 = vpop.xlane.xlu1 %4492 }
 0xfe5   : > { %v8163_v43 = vpop.eup %8162 }
 0xfe6   : > { %7426 = vmatmul.mubr.msk.bf16.gmra.mxu0 %vm1562_vm3, %v4286_v23  ;;  %v4502_v41 = vmul.f32 %v8163_v43, %v10062_v36 }
 0xfe7   : > { %7453 = vmatprep.mubr.msk.bf16.mxu0 %vm8261_vm0, %v8259_v14  ;;  %v4496_v44 = vpop.xlane.xlu1 %4495 }
 0xff3   : > { %v4707_v51 = vpop.xlane.xlu1 %4706 }
 0xff7   : > { %v4710_v49 = vpop.xlane.xlu1 %4709 }
0x1000   : > { %v4487_v10 = vpop.xlane.xlu0 %4486 }
0x1001   : > { %8164 = vrcp.f32 %v4487_v10 }
0x1002   : > { %8166 = vrcp.f32 %v4493_v3 }
0x1003   : > { %8168 = vrcp.f32 %v4490_v46 }
0x1004   : > { %8170 = vrcp.f32 %v4496_v44  ;;  %v4704_v20 = vpop.xlane.xlu0 %4703 }
0x1005   : > { %8172 = vrcp.f32 %v4704_v20 }
0x1006   : > { %8174 = vrcp.f32 %v4707_v51 }
0x1008   : > { %v4733_v33 = vpop.permute.xlu0 %4732 }
0x100c   : > { %v4731_v22 = vpop.permute.xlu0 %4730 }
0x100e   : > { %v8165_v4 = vpop.eup %8164 }
0x100f   : > { %v4503_v31 = vmul.f32 %v8165_v4, %v10110_v58  ;;  %v8167_v62 = vpop.eup %8166 }
0x1010   : > { %v8169_v57 = vpop.eup %8168  ;;  %v4505_v17 = vmul.f32 %v8167_v62, %v10071_v18 }
0x1011   : > { %v4507_v54 = vpack.c.bf16 %v4503_v31, %v4502_v41  ;;  %v4504_v16 = vmul.f32 %v8169_v57, %v10067_v12  ;;  %v8171_v48 = vpop.eup %8170 }
0x1012   : > { %v4506_v36 = vmul.f32 %v8171_v48, %v10079_v1  ;;  %v8173_v53 = vpop.eup %8172 }
0x1013   : > { %7454 = vmatmul.mubr.msk.bf16.vlgmr.msra.gmra.mxu0 %vm1562_vm3, %v4507_v54  ;;  %v4508_v55 = vpack.c.bf16 %v4505_v17, %v4504_v16  ;;  %v8175_v47 = vpop.eup %8174  ;;  %v4722_v25 = vmul.f32 %v8173_v53, %v10114_v19 }
0x1014   : > { %7457 = vmatprep.mubr.msk.bf16.mxu0 %vm8261_vm0, %v8259_v14  ;;  %v4509_v58 = vpack.c.bf16 %v4506_v36, %v4506_v36  ;;  %v4723_v28 = vmul.f32 %v8175_v47, %v10094_v2 }
0x1016   : > { %v4727_v52 = vpack.c.bf16 %v4723_v28, %v4722_v25 }
0x101b   : > { %7458 = vmatmul.mubr.msk.bf16.gmra.mxu0 %vm1562_vm3, %v4508_v55 }
0x101c   : > { %7461 = vmatprep.mubr.msk.bf16.mxu0 %vm8261_vm0, %v8259_v14 }
0x1023   : > { %v10167_v6 = vpop.f32.mrf.mxu0  ;;  %7462 = vmatmul.mubr.msk.bf16.gmra.mxu0 %vm1562_vm3, %v4509_v58 }
0x1024   : > { %7489 = vmatprep.mubr.msk.bf16.mxu0 %vm8261_vm0, %v8259_v14 }
0x1025   : > { %v7383_v18 = vpop.f32.mrf.mxu0 }
0x1026   : > { %v7856_v18 = vld [vmem:[%s10793_s6 + $0x78] sm:$0xff]  }
0x1027   : > { %v10172_v12 = vpop.f32.mrf.mxu0  ;;  %7502 = vmatpush3.bf16.msra.mxu1 %v7856_v18 }
0x1028   : > { %7503 = vmatprep.subr.bf16.mxu1 %v8259_v14 }
0x1029   : > { %v7384_v34 = vpop.f32.mrf.mxu0 }
0x102a   : > { %v7857_v34 = vld [vmem:[%s10793_s6 + $0x70] sm:$0xff]  }
0x102b   : > { %7504 = vmatpush3.bf16.msra.mxu1 %v7857_v34 }
0x102c   : > { %7505 = vmatprep.subr.bf16.mxu1 %v8259_v14 }
0x102e   : > { %v10174_v11 = vpop.f32.mrf.mxu0 }
0x1030   : > { %v7387_v1 = vpop.f32.mrf.mxu0  ;;  %v4713_v38 = vpop.xlane.xlu1 %4712 }
0x1031   : > { %8176 = vrcp.f32 %v4713_v38  ;;  %v7858_v38 = vld [vmem:[%s10793_s6 + $0x68] sm:$0xff]  }
0x1032   : > { %v10176_v26 = vpop.f32.mrf.mxu0  ;;  %8178 = vrcp.f32 %v4710_v49  ;;  %7506 = vmatpush3.bf16.msra.mxu1 %v7858_v38 }
0x1033   : > { %7507 = vmatprep.subr.bf16.mxu1 %v8259_v14 }
0x1034   : > { %v7388_v60 = vpop.f32.mrf.mxu0  ;;  %v4735_v29 = vpop.permute.xlu1 %4734 }
0x1035   : > { %v4748_v42 = vsel %vm1630_vm2, %v4735_v29, 0  ;;  %v7859_v29 = vld [vmem:[%s10793_s6 + $0x60] sm:$0xff]  }
0x1036   : > { %7484 = vmatpush3.bf16.msra.mxu0 %v4748_v42  ;;  %7508 = vmatpush3.bf16.msra.mxu1 %v7859_v29 }
0x1037   : > { %7485 = vmatprep.subr.bf16.mxu0 %v8259_v14  ;;  %7509 = vmatprep.subr.bf16.mxu1 %v8259_v14 }
0x103a   : > { %7486 = vmatpush3.bf16.msra.mxu0 %v4733_v33 }
0x103b   : > { %7487 = vmatprep.subr.bf16.mxu0 %v8259_v14 }
0x103d   : > { %v4716_v32 = vpop.xlane.xlu0 %4715 }
0x103e   : > { %8180 = vrcp.f32 %v4716_v32  ;;  %7488 = vmatpush3.bf16.msra.mxu0 %v4731_v22  ;;  %v8177_v40 = vpop.eup %8176  ;;  %v7860_v22 = vld [vmem:[%s10793_s6 + $0x58] sm:$0xff]   ;;  %v7861_v32 = vld [vmem:[%s10793_s6 + $0x50] sm:$0xff]  }
0x103f   : > { %v8179_v0 = vpop.eup %8178  ;;  %v4725_v7 = vmul.f32 %v8177_v40, %v10128_v45  ;;  %7510 = vmatpush3.bf16.msra.mxu1 %v7860_v22  ;;  %v7863_v40 = vld [vmem:[%s10793_s6 + $0x40] sm:$0xff]  }
0x1040   : > { %v4724_v61 = vmul.f32 %v8179_v0, %v10102_v37  ;;  %7511 = vmatprep.subr.bf16.mxu1 %v8259_v14 }
0x1041   : > { %7490 = vmatmul.mubr.msk.bf16.vlgmr.msra.gmra.mxu0 %vm1562_vm3, %v4727_v52  ;;  %v7862_v52 = vld [vmem:[%s10793_s6 + $0x48] sm:$0xff]  }
0x1042   : > { %7493 = vmatprep.mubr.msk.bf16.mxu0 %vm8261_vm0, %v8259_v14  ;;  %v4728_v19 = vpack.c.bf16 %v4725_v7, %v4724_v61 }
0x1043   : > { %7512 = vmatpush3.bf16.msra.mxu1 %v7861_v32 }
0x1044   : > { %7513 = vmatprep.subr.bf16.mxu1 %v8259_v14 }
0x1047   : > { %7514 = vmatpush3.bf16.msra.mxu1 %v7862_v52 }
0x1048   : > { %7515 = vmatprep.subr.bf16.mxu1 %v8259_v14 }
0x1049   : > { %7494 = vmatmul.mubr.msk.bf16.gmra.mxu0 %vm1562_vm3, %v4728_v19 }
0x104a   : > { %7497 = vmatprep.mubr.msk.bf16.mxu0 %vm8261_vm0, %v8259_v14 }
0x104b   : > { %v8181_v23 = vpop.eup %8180  ;;  %7516 = vmatpush3.bf16.msra.mxu1 %v7863_v40 }
0x104c   : > { %v4726_v2 = vmul.f32 %v8181_v23, %v10132_v21 }
0x104e   : > { %v4729_v15 = vpack.c.bf16 %v4726_v2, %v4726_v2 }
0x1051   : > { %7498 = vmatmul.mubr.msk.bf16.gmra.mxu0 %vm1562_vm3, %v4729_v15 }
0x1052   : > { %5343 = vmatprep.mubr.bf16.mxu0 %v8260_v59 }
0x1062   : > { %v10194_v46 = vpop.f32.mrf.mxu0 }
0x1064   : > { %v7391_v10 = vpop.f32.mrf.mxu0 }
0x1066   : > { %v4134_v45 = vpop.f32.mrf.mxu0 }
0x1068   : > { %v7392_v3 = vpop.f32.mrf.mxu0 }
0x1096   : > { %v4344_v37 = vpop.f32.mrf.mxu0 }
0x1098   : > { %v7419_v44 = vpop.f32.mrf.mxu0 }
0x109a   : > { %v4347_v43 = vpop.f32.mrf.mxu0 }
0x109b   : > { %v7602_v4 = vpack.i.bf16 %v4347_v43, %v4344_v37 }
0x109c   : > { %v7420_v41 = vpop.f32.mrf.mxu0 }
0x109d   : > { %7603 = vrot.lane.b32.xlu1 %v7602_v4, %s8264_s28 }
0x109e   : > { %v4352_v31 = vpop.f32.mrf.mxu0 }
0x10a0   : > { %v7423_v54 = vpop.f32.mrf.mxu0 }
0x10a2   : > { %v4355_v21 = vpop.f32.mrf.mxu0 }
0x10a3   : > { %v7607_v62 = vpack.i.bf16 %v4355_v21, %v4352_v31 }
0x10a4   : > { %v7424_v57 = vpop.f32.mrf.mxu0 }
0x10a5   : > { %7608 = vrot.lane.b32.xlu1 %v7607_v62, %s8264_s28 }
0x10a6   : > { %v4360_v17 = vpop.f32.mrf.mxu0 }
0x10a8   : > { %v7427_v16 = vpop.f32.mrf.mxu0 }
0x10aa   : > { %v4363_v55 = vpop.f32.mrf.mxu0 }
0x10ac   : > { %v7428_v48 = vpop.f32.mrf.mxu0 }
0x10d3   : > { %v4564_v36 = vpop.f32.mrf.mxu0 }
0x10d5   : > { %v7455_v58 = vpop.f32.mrf.mxu0 }
0x10d7   : > { %v4567_v51 = vpop.f32.mrf.mxu0 }
0x10d8   : > { %v7612_v20 = vpack.i.bf16 %v4567_v51, %v4564_v36 }
0x10d9   : > { %v7456_v49 = vpop.f32.mrf.mxu0 }
0x10da   : > { %7613 = vrot.lane.b32.xlu1 %v7612_v20, %s8263_s27 }
0x10db   : > { %v4572_v1 = vpop.f32.mrf.mxu0 }
0x10dd   : > { %v7459_v33 = vpop.f32.mrf.mxu0 }
0x10df   : > { %v4575_v60 = vpop.f32.mrf.mxu0 }
0x10e0   : > { %v7622_v15 = vpack.i.bf16 %v4575_v60, %v4572_v1 }
0x10e1   : > { %v7460_v42 = vpop.f32.mrf.mxu0 }
0x10e3   : > { %v4580_v53 = vpop.f32.mrf.mxu0 }
0x10e4   : > { %4839 = vrot.lane.b32.xlu0 %v4580_v53, %s8263_s27 }
0x10e5   : > { %v7463_v47 = vpop.f32.mrf.mxu0 }
0x10e7   : > { %v4583_v25 = vpop.f32.mrf.mxu0 }
0x10e9   : > { %v7464_v28 = vpop.f32.mrf.mxu0 }
0x1101   : > { %v4784_v0 = vpop.f32.mrf.mxu0 }
0x1103   : > { %v7491_v7 = vpop.f32.mrf.mxu0 }
0x1105   : > { %v4787_v61 = vpop.f32.mrf.mxu0 }
0x1106   : > { %v7617_v19 = vpack.i.bf16 %v4787_v61, %v4784_v0 }
0x1107   : > { %v7492_v23 = vpop.f32.mrf.mxu0 }
0x1108   : > { %7618 = vrot.lane.b32.xlu1 %v7617_v19, %s8262_s24 }
0x1109   : > { %v4792_v2 = vpop.f32.mrf.mxu0 }
0x110b   : > { %v7495_v10 = vpop.f32.mrf.mxu0 }
0x110c   : > { %7623 = vrot.lane.b32.xlu1 %v7622_v15, %s8263_s27 }
0x110d   : > { %v4795_v45 = vpop.f32.mrf.mxu0 }
0x110e   : > { %v7627_v3 = vpack.i.bf16 %v4795_v45, %v4792_v2  ;;  %v10264_v2 = vld [vmem:[%s10797_s10 + $0x8] sm:$0x3f] }
0x110f   : > { %v7496_v37 = vpop.f32.mrf.mxu0  ;;  %v7604_v31 = vpop.permute.xlu1 %7603 }
0x1110   : > { %7628 = vrot.lane.b32.xlu1 %v7627_v3, %s8262_s24  ;;  %v7606_v62 = vunpack.i.h.bf16 %v7604_v31  ;;  %v7605_v57 = vunpack.i.l.bf16 %v7604_v31 }
0x1111   : > { %v4800_v44 = vpop.f32.mrf.mxu0 }
0x1112   : > { %v4867_v36 = vsel %vm1487_vm1, %v10172_v12, %v7606_v62  ;;  %v4866_v58 = vsel %vm1487_vm1, %v10167_v6, %v7605_v57 }
0x1113   : > { %v7499_v43 = vpop.f32.mrf.mxu0 }
0x1114   : > { %4819 = vrot.lane.b32.xlu1 %v4360_v17, %s8264_s28 }
0x1115   : > { %v4803_v4 = vpop.f32.mrf.mxu0 }
0x1117   : > { %v7500_v41 = vpop.f32.mrf.mxu0  ;;  %v7609_v54 = vpop.permute.xlu1 %7608 }
0x1118   : > { %4859 = vrot.lane.b32.xlu1 %v4800_v44, %s8262_s24  ;;  %v7611_v33 = vunpack.i.h.bf16 %v7609_v54  ;;  %v7610_v60 = vunpack.i.l.bf16 %v7609_v54 }
0x111a   : > { %v4869_v12 = vsel %vm1487_vm1, %v10176_v26, %v7611_v33  ;;  %v4868_v53 = vsel %vm1487_vm1, %v10174_v11, %v7610_v60 }
0x114c   : > { %v7614_v21 = vpop.permute.xlu1 %7613 }
0x114d   : > { %v7616_v16 = vunpack.i.h.bf16 %v7614_v21  ;;  %v7615_v55 = vunpack.i.l.bf16 %v7614_v21 }
0x114f   : > { %v4871_v51 = vsel %vm2424_vm4, %v4866_v58, %v7615_v55  ;;  %v4872_v20 = vsel %vm2424_vm4, %v4867_v36, %v7616_v16  ;;  %v7866_v58 = vld [vmem:[%s10794_s7 + $0x1e4] ss:$16 sps:$4 sm:$0xff]  }
0x1150   : > { %5311 = vmatprep.subr.bf16.mxu0 %v7866_v58  ;;  %v7909_v58 = vld [vmem:[%s10794_s7 + $0x108] ss:$16 sps:$4 sm:$0xff]  }
0x1156   : > { %v4840_v26 = vpop.permute.xlu0 %4839 }
0x117a   : > { %v7619_v48 = vpop.permute.xlu1 %7618 }
0x117b   : > { %v7621_v18 = vunpack.i.h.bf16 %v7619_v48  ;;  %v7620_v17 = vunpack.i.l.bf16 %v7619_v48 }
0x117d   : > { %v4876_v34 = vsel %vm2430_vm5, %v4871_v51, %v7620_v17  ;;  %v4877_v49 = vsel %vm2430_vm5, %v4872_v20, %v7621_v18  ;;  %v7869_v18 = vld [vmem:[%s10794_s7 + $0x1ec] ss:$16 sps:$4 sm:$0xff]  }
0x117e   : > { %v4881_v1 = vpack.c.bf16 %v4877_v49, %v4876_v34  ;;  %v7624_v38 = vpop.permute.xlu1 %7623  ;;  %5372 = vmatprep.subr.bf16.mxu1 %v7869_v18 }
0x117f   : > { %v7626_v29 = vunpack.i.h.bf16 %v7624_v38  ;;  %v7625_v42 = vunpack.i.l.bf16 %v7624_v38 }
0x1180   : > { %7518 = vmatmul.mubr.bf16.vlgmr.msra.gmra.mxu1 %v4881_v1 }
0x1181   : > { %7521 = vmatprep.mubr.msk.bf16.mxu1 %vm8261_vm0, %v8259_v14  ;;  %v4873_v25 = vsel %vm2424_vm4, %v4868_v53, %v7625_v42  ;;  %v4874_v32 = vsel %vm2424_vm4, %v4869_v12, %v7626_v29 }
0x1182   : > { %v7629_v6 = vpop.permute.xlu1 %7628 }
0x1183   : > { %v7631_v22 = vunpack.i.h.bf16 %v7629_v6  ;;  %v7630_v47 = vunpack.i.l.bf16 %v7629_v6 }
0x1185   : > { %v4878_v28 = vsel %vm2430_vm5, %v4873_v25, %v7630_v47  ;;  %v4879_v52 = vsel %vm2430_vm5, %v4874_v32, %v7631_v22 }
0x1186   : > { %v4882_v40 = vpack.c.bf16 %v4879_v52, %v4878_v28  ;;  %v4820_v0 = vpop.permute.xlu1 %4819 }
0x1187   : > { %v4870_v7 = vsel %vm1487_vm1, %v10194_v46, %v4820_v0  ;;  %v5013_v46 = vrot.slane %v10264_v2, %v2566_v27  ;;  %v7875_v0 = vld [vmem:[%s10794_s7 + $0x1cc] ss:$16 sps:$4 sm:$0xff]  }
0x1188   : > { %7522 = vmatmul.mubr.bf16.gmra.mxu1 %v4882_v40  ;;  %v4875_v11 = vsel %vm2424_vm4, %v4870_v7, %v4840_v26  ;;  %v7872_v40 = vld [vmem:[%s10794_s7 + $0x1c4] ss:$16 sps:$4 sm:$0xff]   ;;  %v7870_v7 = vld [vmem:[%s10794_s7 + $0x1c0] ss:$16 sps:$4 sm:$0xff]   ;;  %v7873_v26 = vld [vmem:[%s10794_s7 + $0x1c8] ss:$16 sps:$4 sm:$0xff]  }
0x1189   : > { %7525 = vmatprep.mubr.msk.bf16.mxu1 %vm8261_vm0, %v8259_v14 }
0x118a   : > { %v4860_v61 = vpop.permute.xlu1 %4859 }
0x118b   : > { %v4880_v19 = vsel %vm2430_vm5, %v4875_v11, %v4860_v61  ;;  %v7878_v11 = vld [vmem:[%s10794_s7 + $0x1a4] ss:$16 sps:$4 sm:$0xff]   ;;  %v7881_v61 = vld [vmem:[%s10794_s7 + $0x1ac] ss:$16 sps:$4 sm:$0xff]  }
0x118c   : > { %v4883_v23 = vpack.c.bf16 %v4880_v19, %v4880_v19  ;;  %v7876_v19 = vld [vmem:[%s10794_s7 + $0x1a0] ss:$16 sps:$4 sm:$0xff]  }
0x1190   : > { %7526 = vmatmul.mubr.bf16.gmra.mxu1 %v4883_v23  ;;  %v7879_v23 = vld [vmem:[%s10794_s7 + $0x1a8] ss:$16 sps:$4 sm:$0xff]  }
0x1191   : > { %5404 = vmatprep.mubr.bf16.mxu1 %v8260_v59 }
0x1240   : > { %v4983_v15 = vpop.f32.mrf.mxu1 }
0x1241   : > { %v5005_v10 = vadd.f32 %v4983_v15, %v9626_v5  ;;  %v7887_v15 = vld [vmem:[%s10794_s7 + $0x18c] ss:$16 sps:$4 sm:$0xff]  }
0x1242   : > { %v7519_v45 = vpop.f32.mrf.mxu1 }
0x1243   : > { %v10270_v3 = vadd.f32 %v5013_v46, %v5005_v10  ;;  %v7882_v10 = vld [vmem:[%s10794_s7 + $0x180] ss:$16 sps:$4 sm:$0xff]   ;;  %v7885_v45 = vld [vmem:[%s10794_s7 + $0x188] ss:$16 sps:$4 sm:$0xff]  }
0x1244   : > { %v4986_v37 = vpop.f32.mrf.mxu1 }
0x1245   : > { %v5006_v44 = vadd.f32 %v4986_v37, %v9630_v30  ;;  %5019 = vadd.xlane.f32.xlu1 %v10270_v3  ;;  %v7888_v37 = vld [vmem:[%s10794_s7 + $0x160] ss:$16 sps:$4 sm:$0xff]  }
0x1246   : > { %v7520_v43 = vpop.f32.mrf.mxu1 }
0x1247   : > { %v10274_v4 = vadd.f32 %v5013_v46, %v5006_v44  ;;  %v7890_v44 = vld [vmem:[%s10794_s7 + $0x164] ss:$16 sps:$4 sm:$0xff]   ;;  %v7891_v43 = vld [vmem:[%s10794_s7 + $0x168] ss:$16 sps:$4 sm:$0xff]  }
0x1248   : > { %v4991_v41 = vpop.f32.mrf.mxu1 }
0x1249   : > { %v5007_v31 = vadd.f32 %v4991_v41, %v9634_v35  ;;  %5021 = vadd.xlane.f32.xlu0 %v10274_v4  ;;  %v7893_v41 = vld [vmem:[%s10794_s7 + $0x16c] ss:$16 sps:$4 sm:$0xff]  }
0x124a   : > { %v7523_v27 = vpop.f32.mrf.mxu1 }
0x124b   : > { %v10278_v54 = vadd.f32 %v5013_v46, %v5007_v31  ;;  %v7896_v31 = vld [vmem:[%s10794_s7 + $0x144] ss:$16 sps:$4 sm:$0xff]   ;;  %v7899_v27 = vld [vmem:[%s10794_s7 + $0x14c] ss:$16 sps:$4 sm:$0xff]  }
0x124c   : > { %v4994_v5 = vpop.f32.mrf.mxu1 }
0x124d   : > { %v5008_v21 = vadd.f32 %v4994_v5, %v9638_v56  ;;  %5023 = vadd.xlane.f32.xlu1 %v10278_v54  ;;  %v7864_v56 = vld [vmem:[%s10794_s7 + $0x1e0] ss:$16 sps:$4 sm:$0xff]  }
0x124e   : > { %v7524_v62 = vpop.f32.mrf.mxu1  ;;  %5312 = vmatpush1.bf16.msra.mxu0 %v7864_v56  ;;  %v7894_v5 = vld [vmem:[%s10794_s7 + $0x140] ss:$16 sps:$4 sm:$0xff]  }
0x124f   : > { %v10282_v30 = vadd.f32 %v5013_v46, %v5008_v21  ;;  %5313 = vmatprep.subr.bf16.mxu0 %v7872_v40  ;;  %v7897_v21 = vld [vmem:[%s10794_s7 + $0x148] ss:$16 sps:$4 sm:$0xff]   ;;  %v7902_v62 = vld [vmem:[%s10794_s7 + $0x124] ss:$16 sps:$4 sm:$0xff]   ;;  %v7906_v56 = vld [vmem:[%s10794_s7 + $0x100] ss:$16 sps:$4 sm:$0xff]  }
0x1250   : > { %v4999_v57 = vpop.f32.mrf.mxu1 }
0x1251   : > { %v5009_v16 = vadd.f32 %v4999_v57, %v9642_v63  ;;  %5025 = vadd.xlane.f32.xlu1 %v10282_v30  ;;  %v7867_v63 = vld [vmem:[%s10794_s7 + $0x1e8] ss:$16 sps:$4 sm:$0xff]   ;;  %v7905_v57 = vld [vmem:[%s10794_s7 + $0x12c] ss:$16 sps:$4 sm:$0xff]  }
0x1252   : > { %v7527_v55 = vpop.f32.mrf.mxu1  ;;  %5373 = vmatpush1.bf16.msra.mxu1 %v7867_v63  ;;  %5314 = vmatpush1.bf16.msra.mxu0 %v7870_v7 }
0x1253   : > { %v10286_v35 = vadd.f32 %v5013_v46, %v5009_v16  ;;  %5374 = vmatprep.subr.bf16.mxu1 %v7875_v0  ;;  %5315 = vmatprep.subr.bf16.mxu0 %v7878_v11  ;;  %v7884_v46 = vld [vmem:[%s10794_s7 + $0x184] ss:$16 sps:$4 sm:$0xff]   ;;  %v7900_v16 = vld [vmem:[%s10794_s7 + $0x120] ss:$16 sps:$4 sm:$0xff]   ;;  %v7903_v55 = vld [vmem:[%s10794_s7 + $0x128] ss:$16 sps:$4 sm:$0xff]   ;;  %v5086_v11 = vrot.slane %v10264_v2, %v9334_v50 }
0x1254   : > { %v5002_v48 = vpop.f32.mrf.mxu1 }
0x1255   : > { %5027 = vadd.xlane.f32.xlu1 %v10286_v35  ;;  %v7908_v48 = vld [vmem:[%s10794_s7 + $0x104] ss:$16 sps:$4 sm:$0xff]  }
0x1256   : > { %v7528_v36 = vpop.f32.mrf.mxu1  ;;  %5375 = vmatpush1.bf16.msra.mxu1 %v7873_v26  ;;  %5316 = vmatpush1.bf16.msra.mxu0 %v7876_v19 }
0x1257   : > { %5376 = vmatprep.subr.bf16.mxu1 %v7881_v61  ;;  %5317 = vmatprep.subr.bf16.mxu0 %v7884_v46  ;;  %v7911_v36 = vld [vmem:[%s10794_s7 + $0x10c] ss:$16 sps:$4 sm:$0xff]  }
0x125a   : > { %5377 = vmatpush1.bf16.msra.mxu1 %v7879_v23  ;;  %5318 = vmatpush1.bf16.msra.mxu0 %v7882_v10 }
0x125b   : > { %5378 = vmatprep.subr.bf16.mxu1 %v7887_v15  ;;  %5319 = vmatprep.subr.bf16.mxu0 %v7890_v44 }
0x125e   : > { %5379 = vmatpush1.bf16.msra.mxu1 %v7885_v45  ;;  %5320 = vmatpush1.bf16.msra.mxu0 %v7888_v37 }
0x125f   : > { %5380 = vmatprep.subr.bf16.mxu1 %v7893_v41  ;;  %5321 = vmatprep.subr.bf16.mxu0 %v7896_v31 }
0x1262   : > { %5381 = vmatpush1.bf16.msra.mxu1 %v7891_v43  ;;  %5322 = vmatpush1.bf16.msra.mxu0 %v7894_v5  ;;  %v7912_v5 = vld [vmem:[%s10796_s9 + $0x178] sm:$0xff]  }
0x1263   : > { %5382 = vmatprep.subr.bf16.mxu1 %v7899_v27  ;;  %5323 = vmatprep.subr.bf16.mxu0 %v7902_v62  ;;  %v7916_v62 = vld [vmem:[%s10796_s9 + $0x170] sm:$0xff]  }
0x1266   : > { %5383 = vmatpush1.bf16.msra.mxu1 %v7897_v21  ;;  %5324 = vmatpush1.bf16.msra.mxu0 %v7900_v16  ;;  %v7914_v21 = vld [vmem:[%s10796_s9 + $0x138] sm:$0xff]   ;;  %v7918_v16 = vld [vmem:[%s10796_s9 + $0x130] sm:$0xff]  }
0x1267   : > { %5384 = vmatprep.subr.bf16.mxu1 %v7905_v57  ;;  %5325 = vmatprep.subr.bf16.mxu0 %v7908_v48  ;;  %v7917_v57 = vld [vmem:[%s10796_s9 + $0x1f0] sm:$0xff]   ;;  %v7920_v48 = vld [vmem:[%s10796_s9 + $0x168] sm:$0xff]  }
0x126a   : > { %5385 = vmatpush1.bf16.msra.mxu1 %v7903_v55  ;;  %5326 = vmatpush1.bf16.msra.mxu0 %v7906_v56  ;;  %v7919_v55 = vld [vmem:[%s10796_s9 + $0x1b0] sm:$0xff]   ;;  %v7922_v56 = vld [vmem:[%s10796_s9 + $0x128] sm:$0xff]  }
0x126b   : > { %5386 = vmatprep.subr.bf16.mxu1 %v7911_v36  ;;  %7050 = vmatprep.subr.bf16.mxu0 %v7912_v5  ;;  %v7921_v36 = vld [vmem:[%s10796_s9 + $0x1e8] sm:$0xff]  }
0x126e   : > { %5387 = vmatpush1.bf16.msra.mxu1 %v7909_v58  ;;  %v7923_v58 = vld [vmem:[%s10796_s9 + $0x1a8] sm:$0xff]  }
0x12ce   : > { %v5020_v17 = vpop.xlane.xlu1 %5019 }
0x12cf   : > { %v5029_v51 = vmul.f32 0.0078125, %v5020_v17 }
0x12d1   : > { %v10302_v20 = vsub.f32 %v10270_v3, %v5029_v51 }
0x12d2   : > { %v5022_v34 = vpop.xlane.xlu0 %5021 }
0x12d3   : > { %v5030_v49 = vmul.f32 0.0078125, %v5022_v34  ;;  %v5039_v1 = vmul.f32 %v10302_v20, %v10302_v20 }
0x12d5   : > { %v10307_v38 = vsub.f32 %v10274_v4, %v5030_v49  ;;  %5044 = vadd.xlane.f32.xlu0 %v5039_v1 }
0x12d6   : > { %v5024_v33 = vpop.xlane.xlu1 %5023 }
0x12d7   : > { %v5031_v60 = vmul.f32 0.0078125, %v5024_v33  ;;  %v5040_v29 = vmul.f32 %v10307_v38, %v10307_v38 }
0x12d9   : > { %v10312_v42 = vsub.f32 %v10278_v54, %v5031_v60  ;;  %5046 = vadd.xlane.f32.xlu1 %v5040_v29 }
0x12da   : > { %v5026_v6 = vpop.xlane.xlu1 %5025 }
0x12db   : > { %v5032_v12 = vmul.f32 0.0078125, %v5026_v6  ;;  %v5041_v53 = vmul.f32 %v10312_v42, %v10312_v42 }
0x12dd   : > { %v10317_v22 = vsub.f32 %v10282_v30, %v5032_v12  ;;  %5048 = vadd.xlane.f32.xlu0 %v5041_v53 }
0x12de   : > { %v5028_v47 = vpop.xlane.xlu1 %5027 }
0x12df   : > { %v5033_v25 = vmul.f32 0.0078125, %v5028_v47  ;;  %v5042_v32 = vmul.f32 %v10317_v22, %v10317_v22 }
0x12e1   : > { %v10322_v28 = vsub.f32 %v10286_v35, %v5033_v25  ;;  %5050 = vadd.xlane.f32.xlu1 %v5042_v32  ;;  %v5077_v32 = vrot.slane %v10264_v2, %v8700_v39 }
0x12e3   : > { %v5043_v52 = vmul.f32 %v10322_v28, %v10322_v28 }
0x12e5   : > { %5052 = vadd.xlane.f32.xlu0 %v5043_v52 }
0x135e   : > { %v5045_v63 = vpop.xlane.xlu0 %5044 }
0x135f   : > { %v5054_v18 = vmul.f32 0.0078125, %v5045_v63  ;;  %v7924_v63 = vld [vmem:[%s10796_s9 + $0x160] sm:$0xff]  }
0x1361   : > { %v5059_v17 = vadd.f32 1e-06, %v5054_v18  ;;  %v7925_v18 = vld [vmem:[%s10796_s9 + $0x1e0] sm:$0xff]  }
0x1362   : > { %v5047_v51 = vpop.xlane.xlu1 %5046 }
0x1363   : > { %8182 = vrsqrt.f32 %v5059_v17  ;;  %v5055_v34 = vmul.f32 0.0078125, %v5047_v51  ;;  %v7926_v17 = vld [vmem:[%s10796_s9 + $0x120] sm:$0xff]  }
0x1364   : > { %v7927_v51 = vld [vmem:[%s10796_s9 + $0x1a0] sm:$0xff]  }
0x1365   : > { %v5060_v49 = vadd.f32 1e-06, %v5055_v34  ;;  %v7928_v34 = vld [vmem:[%s10796_s9 + $0x158] sm:$0xff]  }
0x1366   : > { %v5049_v1 = vpop.xlane.xlu0 %5048 }
0x1367   : > { %8184 = vrsqrt.f32 %v5060_v49  ;;  %v5056_v33 = vmul.f32 0.0078125, %v5049_v1  ;;  %v7929_v49 = vld [vmem:[%s10796_s9 + $0x1d8] sm:$0xff]  }
0x1368   : > { %v7930_v1 = vld [vmem:[%s10796_s9 + $0x118] sm:$0xff]  }
0x1369   : > { %v5061_v60 = vadd.f32 1e-06, %v5056_v33  ;;  %v7931_v33 = vld [vmem:[%s10796_s9 + $0x198] sm:$0xff]  }
0x136a   : > { %v5051_v29 = vpop.xlane.xlu1 %5050 }
0x136b   : > { %8186 = vrsqrt.f32 %v5061_v60  ;;  %v5057_v6 = vmul.f32 0.0078125, %v5051_v29  ;;  %v7932_v60 = vld [vmem:[%s10796_s9 + $0x150] sm:$0xff]  }
0x136c   : > { %v7933_v29 = vld [vmem:[%s10796_s9 + $0x1d0] sm:$0xff]  }
0x136d   : > { %v5062_v12 = vadd.f32 1e-06, %v5057_v6  ;;  %v7934_v6 = vld [vmem:[%s10796_s9 + $0x110] sm:$0xff]  }
0x136e   : > { %v5053_v53 = vpop.xlane.xlu0 %5052 }
0x136f   : > { %8188 = vrsqrt.f32 %v5062_v12  ;;  %v5058_v47 = vmul.f32 0.0078125, %v5053_v53  ;;  %v7935_v12 = vld [vmem:[%s10796_s9 + $0x190] sm:$0xff]   ;;  %v7936_v53 = vld [vmem:[%s10796_s9 + $0x148] sm:$0xff]  }
0x1370   : > { %v8183_v25 = vpop.eup %8182 }
0x1371   : > { %v5069_v52 = vmul.f32 %v8183_v25, %v10302_v20  ;;  %v5063_v40 = vadd.f32 1e-06, %v5058_v47  ;;  %v7937_v47 = vld [vmem:[%s10796_s9 + $0x1c8] sm:$0xff]  }
0x1372   : > { %v7938_v25 = vld [vmem:[%s10796_s9 + $0x108] sm:$0xff]  }
0x1373   : > { %8190 = vrsqrt.f32 %v5063_v40  ;;  %v5078_v7 = vmul.f32 %v5077_v32, %v5069_v52  ;;  %v7940_v52 = vld [vmem:[%s10796_s9 + $0x140] sm:$0xff]  }
0x1374   : > { %v8185_v0 = vpop.eup %8184  ;;  %v7941_v40 = vld [vmem:[%s10796_s9 + $0x1c0] sm:$0xff]  }
0x1375   : > { %v5070_v26 = vmul.f32 %v8185_v0, %v10307_v38  ;;  %v5087_v23 = vadd.f32 %v5086_v11, %v5078_v7  ;;  %v7942_v0 = vld [vmem:[%s10796_s9 + $0x100] sm:$0xff]  }
0x1376   : > { %v7943_v7 = vld [vmem:[%s10796_s9 + $0x180] sm:$0xff]  }
0x1377   : > { %v5079_v61 = vmul.f32 %v5077_v32, %v5070_v26  ;;  %v6598_v26 = vld [vmem:[%s10795_s8 + $0x4] sm:$0xf] }
0x1378   : > { %v8187_v19 = vpop.eup %8186 }
0x1379   : > { %v5088_v46 = vadd.f32 %v5086_v11, %v5079_v61  ;;  %v5071_v15 = vmul.f32 %v8187_v19, %v10312_v42  ;;  %v10527_v61 = vrot.slane %v6598_v26, %v8700_v39  ;;  %v10541_v39 = vrot.slane %v6598_v26, %v9334_v50 }
0x137b   : > { %v5092_v10 = vpack.c.bf16 %v5088_v46, %v5087_v23  ;;  %v5080_v37 = vmul.f32 %v5077_v32, %v5071_v15 }
0x137c   : > { %v8189_v45 = vpop.eup %8188 }
0x137d   : > { %5344 = vmatmul.mubr.bf16.vlgmr.msra.gmra.mxu0 %v5092_v10  ;;  %5405 = vmatmul.mubr.bf16.vlgmr.msra.gmra.mxu1 %v5092_v10  ;;  %v5072_v20 = vmul.f32 %v8189_v45, %v10317_v22  ;;  %v5089_v2 = vadd.f32 %v5086_v11, %v5080_v37  ;;  %v10536_v10 = vrot.slane %v6598_v26, %v8661_v24 }
0x137e   : > { %5353 = vmatprep.mubr.bf16.mxu0 %v8260_v59  ;;  %5414 = vmatprep.mubr.bf16.mxu1 %v8260_v59 }
0x137f   : > { %v5081_v38 = vmul.f32 %v5077_v32, %v5072_v20  ;;  %7051 = vmatpush3.bf16.msra.mxu0 %v7914_v21 }
0x1380   : > { %v8191_v44 = vpop.eup %8190  ;;  %7052 = vmatprep.subr.bf16.mxu0 %v7916_v62 }
0x1381   : > { %v5090_v43 = vadd.f32 %v5086_v11, %v5081_v38  ;;  %v5073_v41 = vmul.f32 %v8191_v44, %v10322_v28  ;;  %v7913_v28 = vld [vmem:[%s10796_s9 + $0x1f8] sm:$0xff]  }
0x1382   : > { %7084 = vmatprep.subr.bf16.mxu1 %v7913_v28 }
0x1383   : > { %v5093_v31 = vpack.c.bf16 %v5090_v43, %v5089_v2  ;;  %v5082_v27 = vmul.f32 %v5077_v32, %v5073_v41  ;;  %7053 = vmatpush3.bf16.msra.mxu0 %v7918_v16  ;;  %v7939_v32 = vld [vmem:[%s10796_s9 + $0x188] sm:$0xff]  }
0x1384   : > { %7054 = vmatprep.subr.bf16.mxu0 %v7920_v48 }
0x1385   : > { %5354 = vmatmul.mubr.bf16.gmra.mxu0 %v5093_v31  ;;  %5415 = vmatmul.mubr.bf16.gmra.mxu1 %v5093_v31  ;;  %v5091_v42 = vadd.f32 %v5086_v11, %v5082_v27  ;;  %v10524_v11 = vrot.slane %v6598_v26, %v8653_v13 }
0x1386   : > { %5363 = vmatprep.mubr.bf16.mxu0 %v8260_v59  ;;  %5424 = vmatprep.mubr.bf16.mxu1 %v8260_v59  ;;  %v7915_v59 = vld [vmem:[%s10796_s9 + $0x1b8] sm:$0xff]  }
0x1387   : > { %v5094_v22 = vpack.c.bf16 %v5091_v42, %v5091_v42  ;;  %7085 = vmatpush3.bf16.msra.mxu1 %v7915_v59  ;;  %7055 = vmatpush3.bf16.msra.mxu0 %v7922_v56 }
0x1388   : > { %7086 = vmatprep.subr.bf16.mxu1 %v7917_v57  ;;  %7056 = vmatprep.subr.bf16.mxu0 %v7924_v63 }
0x138b   : > { %7087 = vmatpush3.bf16.msra.mxu1 %v7919_v55  ;;  %7057 = vmatpush3.bf16.msra.mxu0 %v7926_v17 }
0x138c   : > { %7088 = vmatprep.subr.bf16.mxu1 %v7921_v36  ;;  %7058 = vmatprep.subr.bf16.mxu0 %v7928_v34 }
0x138d   : > { %5364 = vmatmul.mubr.bf16.gmra.mxu0 %v5094_v22  ;;  %5425 = vmatmul.mubr.bf16.gmra.mxu1 %v5094_v22 }
0x138f   : > { %7089 = vmatpush3.bf16.msra.mxu1 %v7923_v58  ;;  %7059 = vmatpush3.bf16.msra.mxu0 %v7930_v1 }
0x1390   : > { %7090 = vmatprep.subr.bf16.mxu1 %v7925_v18  ;;  %7060 = vmatprep.subr.bf16.mxu0 %v7932_v60 }
0x1393   : > { %7091 = vmatpush3.bf16.msra.mxu1 %v7927_v51  ;;  %7061 = vmatpush3.bf16.msra.mxu0 %v7934_v6 }
0x1394   : > { %7092 = vmatprep.subr.bf16.mxu1 %v7929_v49  ;;  %7062 = vmatprep.subr.bf16.mxu0 %v7936_v53 }
0x1397   : > { %7093 = vmatpush3.bf16.msra.mxu1 %v7931_v33  ;;  %7063 = vmatpush3.bf16.msra.mxu0 %v7938_v25 }
0x1398   : > { %7094 = vmatprep.subr.bf16.mxu1 %v7933_v29  ;;  %7064 = vmatprep.subr.bf16.mxu0 %v7940_v52 }
0x139b   : > { %7095 = vmatpush3.bf16.msra.mxu1 %v7935_v12  ;;  %7065 = vmatpush3.bf16.msra.mxu0 %v7942_v0 }
0x139c   : > { %7096 = vmatprep.subr.bf16.mxu1 %v7937_v47  ;;  %7529 = vmatprep.subr.bf16.mxu0 %v8259_v14 }
0x139f   : > { %7097 = vmatpush3.bf16.msra.mxu1 %v7939_v32 }
0x13a0   : > { %7098 = vmatprep.subr.bf16.mxu1 %v7941_v40 }
0x13a3   : > { %7099 = vmatpush3.bf16.msra.mxu1 %v7943_v7 }
0x143d   : > { %v5345_v19 = vpop.f32.mrf.mxu0  ;;  %v5406_v23 = vpop.f32.mrf.mxu1 }
0x143e   : > { %v10530_v46 = vadd.f32 %v5345_v19, %v10524_v11  ;;  %v10533_v15 = vadd.f32 %v5406_v23, %v10527_v61 }
0x143f   : > { %v5347_v45 = vpop.f32.mrf.mxu0  ;;  %v5408_v20 = vpop.f32.mrf.mxu1 }
0x1440   : > { %v5453_v37 = vmul.f32 0.044715, %v10530_v46  ;;  %v5455_v13 = vmul.f32 0.044715, %v10533_v15  ;;  %v10551_v24 = vadd.f32 %v5347_v45, %v10536_v10  ;;  %v10555_v50 = vadd.f32 %v5408_v20, %v10541_v39 }
0x1441   : > { %v5349_v38 = vpop.f32.mrf.mxu0  ;;  %v5410_v44 = vpop.f32.mrf.mxu1 }
0x1442   : > { %v5473_v2 = vmul.f32 %v5453_v37, %v10530_v46  ;;  %v10545_v43 = vadd.f32 %v5349_v38, %v10524_v11  ;;  %v10548_v41 = vadd.f32 %v5410_v44, %v10527_v61  ;;  %v5475_v42 = vmul.f32 %v5455_v13, %v10533_v15 }
0x1443   : > { %v5351_v31 = vpop.f32.mrf.mxu0  ;;  %v5412_v27 = vpop.f32.mrf.mxu1  ;;  %v5454_v62 = vmul.f32 0.044715, %v10551_v24  ;;  %v5456_v48 = vmul.f32 0.044715, %v10555_v50 }
0x1444   : > { %v5457_v22 = vmul.f32 0.044715, %v10545_v43  ;;  %v5493_v21 = vmul.f32 %v5473_v2, %v10530_v46  ;;  %v5459_v59 = vmul.f32 0.044715, %v10548_v41  ;;  %v5495_v55 = vmul.f32 %v5475_v42, %v10533_v15 }
0x1445   : > { %v5355_v5 = vpop.f32.mrf.mxu0  ;;  %v5416_v28 = vpop.f32.mrf.mxu1  ;;  %v5474_v34 = vmul.f32 %v5454_v62, %v10551_v24  ;;  %v5476_v29 = vmul.f32 %v5456_v48, %v10555_v50  ;;  %v10579_v53 = vadd.f32 %v5351_v31, %v10536_v10  ;;  %v10582_v47 = vadd.f32 %v5412_v27, %v10541_v39 }
0x1446   : > { %v5477_v36 = vmul.f32 %v5457_v22, %v10545_v43  ;;  %v10565_v56 = vadd.f32 %v5355_v5, %v10524_v11  ;;  %v10568_v58 = vadd.f32 %v5416_v28, %v10527_v61  ;;  %v5513_v17 = vadd.f32 %v5493_v21, %v10530_v46 }
0x1447   : > { %v5357_v57 = vpop.f32.mrf.mxu0  ;;  %v5418_v16 = vpop.f32.mrf.mxu1  ;;  %v5479_v51 = vmul.f32 %v5459_v59, %v10548_v41  ;;  %v5515_v60 = vadd.f32 %v5495_v55, %v10533_v15  ;;  %v10591_v19 = vmul.f32 %v5474_v34, %v10551_v24  ;;  %v5458_v42 = vmul.f32 0.044715, %v10579_v53 }
0x1448   : > { %v5461_v49 = vmul.f32 0.044715, %v10565_v56  ;;  %v5463_v6 = vmul.f32 0.044715, %v10568_v58  ;;  %v5497_v12 = vmul.f32 %v5477_v36, %v10545_v43  ;;  %v5533_v40 = vmul.f32 0.7978846, %v5513_v17 }
0x1449   : > { %v5359_v63 = vpop.f32.mrf.mxu0  ;;  %v5420_v18 = vpop.f32.mrf.mxu1  ;;  %v5499_v0 = vmul.f32 %v5479_v51, %v10548_v41  ;;  %v10595_v45 = vadd.f32 %v5357_v57, %v10536_v10  ;;  %v5535_v38 = vmul.f32 0.7978846, %v5515_v60  ;;  %v10602_v2 = vadd.f32 %v5418_v16, %v10541_v39 }
0x144a   : > { %v5481_v25 = vmul.f32 %v5461_v49, %v10565_v56  ;;  %v5483_v7 = vmul.f32 %v5463_v6, %v10568_v58  ;;  %v10588_v26 = vadd.f32 %v5359_v63, %v10524_v11  ;;  %v10598_v20 = vadd.f32 %v5420_v18, %v10527_v61 }
0x144b   : > { %v5361_v1 = vpop.f32.mrf.mxu0  ;;  %v5422_v33 = vpop.f32.mrf.mxu1  ;;  %v5517_v27 = vadd.f32 %v5497_v12, %v10545_v43  ;;  %8192 = vtanh.f32 %v5533_v40  ;;  %v5519_v59 = vadd.f32 %v5499_v0, %v10548_v41  ;;  %v5460_v62 = vmul.f32 0.044715, %v10582_v47 }
0x144c   : > { %v5501_v23 = vmul.f32 %v5481_v25, %v10565_v56  ;;  %v5503_v44 = vmul.f32 %v5483_v7, %v10568_v58  ;;  %v5465_v31 = vmul.f32 0.044715, %v10588_v26  ;;  %v5467_v22 = vmul.f32 0.044715, %v10598_v20 }
0x144d   : > { %v5365_v32 = vpop.f32.mrf.mxu0  ;;  %v5426_v52 = vpop.f32.mrf.mxu1  ;;  %v10609_v5 = vadd.f32 %v5361_v1, %v10536_v10  ;;  %v5462_v55 = vmul.f32 0.044715, %v10595_v45  ;;  %v10618_v36 = vadd.f32 %v5422_v33, %v10541_v39  ;;  %v5464_v51 = vmul.f32 0.044715, %v10602_v2 }
0x144e   : > { %v5485_v57 = vmul.f32 %v5465_v31, %v10588_v26  ;;  %v5521_v16 = vadd.f32 %v5501_v23, %v10565_v56  ;;  %v5487_v48 = vmul.f32 %v5467_v22, %v10598_v20  ;;  %v5523_v17 = vadd.f32 %v5503_v44, %v10568_v58 }
0x144f   : > { %v5367_v37 = vpop.f32.mrf.mxu0  ;;  %v5428_v13 = vpop.f32.mrf.mxu1  ;;  %v10624_v49 = vadd.f32 %v5365_v32, %v10524_v11  ;;  %v5537_v1 = vmul.f32 0.7978846, %v5517_v27  ;;  %v5478_v60 = vmul.f32 %v5458_v42, %v10579_v53  ;;  %v5466_v12 = vmul.f32 0.044715, %v10609_v5 }
0x1450   : > { %v5505_v34 = vmul.f32 %v5485_v57, %v10588_v26  ;;  %v5507_v6 = vmul.f32 %v5487_v48, %v10598_v20  ;;  %8194 = vtanh.f32 %v5535_v38  ;;  %v5539_v33 = vmul.f32 0.7978846, %v5519_v59 }
0x1451   : > { %v5369_v28 = vpop.f32.mrf.mxu0  ;;  %v5430_v21 = vpop.f32.mrf.mxu1  ;;  %v5480_v25 = vmul.f32 %v5460_v62, %v10582_v47  ;;  %v10631_v40 = vadd.f32 %v5426_v52, %v10527_v61  ;;  %v5541_v0 = vmul.f32 0.7978846, %v5521_v16  ;;  %v5482_v7 = vmul.f32 %v5462_v55, %v10595_v45 }
0x1452   : > { %v5525_v11 = vadd.f32 %v5505_v34, %v10588_v26  ;;  %v5468_v32 = vmul.f32 0.044715, %v10618_v36  ;;  %v5543_v23 = vmul.f32 0.7978846, %v5523_v17  ;;  %v5484_v44 = vmul.f32 %v5464_v51, %v10602_v2 }
0x1453   : > { %v5370_v63 = vpop.f32.mrf.mxu0  ;;  %v5431_v18 = vpop.f32.mrf.mxu1  ;;  %v5527_v31 = vadd.f32 %v5507_v6, %v10598_v20  ;;  %v5469_v38 = vmul.f32 0.044715, %v10624_v49  ;;  %v5496_v27 = vmul.f32 %v5476_v29, %v10555_v50  ;;  %8196 = vtanh.f32 %v5537_v1 }
0x1454   : > { %v5498_v61 = vmul.f32 %v5478_v60, %v10579_v53  ;;  %v5486_v52 = vmul.f32 %v5466_v12, %v10609_v5  ;;  %8198 = vtanh.f32 %v5539_v33  ;;  %v5500_v42 = vmul.f32 %v5480_v25, %v10582_v47 }
0x1455   : > { %v5471_v22 = vmul.f32 0.044715, %v10631_v40  ;;  %v10645_v28 = vadd.f32 %v5367_v37, %v10536_v10  ;;  %8200 = vtanh.f32 %v5541_v0  ;;  %v5502_v21 = vmul.f32 %v5482_v7, %v10595_v45 }
0x1456   : > { %v5545_v59 = vmul.f32 0.7978846, %v5525_v11  ;;  %v5488_v62 = vmul.f32 %v5468_v32, %v10618_v36  ;;  %8202 = vtanh.f32 %v5543_v23  ;;  %v5504_v29 = vmul.f32 %v5484_v44, %v10602_v2 }
0x1457   : > { %v5547_v57 = vmul.f32 0.7978846, %v5527_v31  ;;  %v5489_v16 = vmul.f32 %v5469_v38, %v10624_v49  ;;  %v5506_v55 = vmul.f32 %v5486_v52, %v10609_v5  ;;  %v10653_v48 = vadd.f32 %v5428_v13, %v10541_v39 }
0x1458   : > { %v5514_v10 = vadd.f32 %v10591_v19, %v10551_v24  ;;  %v5518_v37 = vadd.f32 %v5498_v61, %v10579_v53  ;;  %v5491_v63 = vmul.f32 %v5471_v22, %v10631_v40  ;;  %v5470_v18 = vmul.f32 0.044715, %v10645_v28  ;;  %v8193_v34 = vpop.eup %8192 }
0x1459   : > { %v5516_v17 = vadd.f32 %v5496_v27, %v10555_v50  ;;  %v5520_v51 = vadd.f32 %v5500_v42, %v10582_v47  ;;  %8204 = vtanh.f32 %v5545_v59  ;;  %v5508_v1 = vmul.f32 %v5488_v62, %v10618_v36 }
0x145a   : > { %v5534_v60 = vmul.f32 0.7978846, %v5514_v10  ;;  %v5538_v39 = vmul.f32 0.7978846, %v5518_v37  ;;  %8206 = vtanh.f32 %v5547_v57  ;;  %v5509_v13 = vmul.f32 %v5489_v16, %v10624_v49 }
0x145b   : > { %v5536_v19 = vmul.f32 0.7978846, %v5516_v17  ;;  %v5540_v6 = vmul.f32 0.7978846, %v5520_v51  ;;  %v5472_v12 = vmul.f32 0.044715, %v10653_v48  ;;  %v5522_v33 = vadd.f32 %v5502_v21, %v10595_v45 }
0x145c   : > { %8208 = vtanh.f32 %v5534_v60  ;;  %v5511_v25 = vmul.f32 %v5491_v63, %v10631_v40  ;;  %v5490_v0 = vmul.f32 %v5470_v18, %v10645_v28  ;;  %v5526_v7 = vadd.f32 %v5506_v55, %v10609_v5 }
0x145d   : > { %8210 = vtanh.f32 %v5538_v39  ;;  %v8195_v11 = vpop.eup %8194  ;;  %v5542_v32 = vmul.f32 0.7978846, %v5522_v33  ;;  %v5524_v23 = vadd.f32 %v5504_v29, %v10602_v2  ;;  %v5528_v44 = vadd.f32 %v5508_v1, %v10618_v36 }
0x145e   : > { %8212 = vtanh.f32 %v5536_v19  ;;  %v5529_v31 = vadd.f32 %v5509_v13, %v10624_v49  ;;  %v5546_v38 = vmul.f32 0.7978846, %v5526_v7  ;;  %v5492_v27 = vmul.f32 %v5472_v12, %v10653_v48 }
0x145f   : > { %8214 = vtanh.f32 %v5540_v6  ;;  %v5544_v61 = vmul.f32 0.7978846, %v5524_v23  ;;  %v5548_v52 = vmul.f32 0.7978846, %v5528_v44  ;;  %v5531_v22 = vadd.f32 %v5511_v25, %v10631_v40 }
0x1460   : > { %8216 = vtanh.f32 %v5542_v32  ;;  %v8197_v42 = vpop.eup %8196  ;;  %v5510_v59 = vmul.f32 %v5490_v0, %v10645_v28  ;;  %v5549_v29 = vmul.f32 0.7978846, %v5529_v31  ;;  %v5512_v55 = vmul.f32 %v5492_v27, %v10653_v48 }
0x1461   : > { %8218 = vtanh.f32 %v5546_v38  ;;  %v8199_v21 = vpop.eup %8198  ;;  %v5551_v10 = vmul.f32 0.7978846, %v5531_v22  ;;  %v5577_v37 = vadd.f32 1.0, %v8197_v42  ;;  %v5437_v51 = vmul.f32 0.5, %v10545_v43 }
0x1462   : > { %8220 = vtanh.f32 %v5544_v61  ;;  %v10675_v62 = vpop.eup %8200  ;;  %v5530_v16 = vadd.f32 %v5510_v59, %v10645_v28  ;;  %v5532_v18 = vadd.f32 %v5512_v55, %v10653_v48  ;;  %v5573_v60 = vadd.f32 1.0, %v8193_v34 }
0x1463   : > { %8222 = vtanh.f32 %v5548_v52  ;;  %v10677_v57 = vpop.eup %8202  ;;  %v5575_v39 = vadd.f32 1.0, %v8195_v11  ;;  %v5433_v6 = vmul.f32 0.5, %v10530_v46  ;;  %v5435_v12 = vmul.f32 0.5, %v10533_v15 }
0x1464   : > { %v5550_v63 = vmul.f32 0.7978846, %v5530_v16  ;;  %8224 = vtanh.f32 %v5549_v29  ;;  %v5552_v13 = vmul.f32 0.7978846, %v5532_v18  ;;  %v5579_v33 = vadd.f32 1.0, %v8199_v21 }
0x1465   : > { %v5597_v0 = vmul.f32 %v5577_v37, %v5437_v51  ;;  %v5434_v7 = vmul.f32 0.5, %v10551_v24  ;;  %v5439_v23 = vmul.f32 0.5, %v10548_v41  ;;  %v5438_v34 = vmul.f32 0.5, %v10579_v53 }
0x1466   : > { %v8205_v17 = vpop.eup %8204  ;;  %8226 = vtanh.f32 %v5550_v63  ;;  %v5436_v44 = vmul.f32 0.5, %v10555_v50  ;;  %v5593_v46 = vmul.f32 %v5573_v60, %v5433_v6  ;;  %v5595_v38 = vmul.f32 %v5575_v39, %v5435_v12 }
0x1467   : > { %v8207_v1 = vpop.eup %8206  ;;  %8228 = vtanh.f32 %v5551_v10  ;;  %v5440_v15 = vmul.f32 0.5, %v10582_v47  ;;  %v5599_v52 = vmul.f32 %v5579_v33, %v5439_v23  ;;  %v5442_v41 = vmul.f32 0.5, %v10595_v45 }
0x1468   : > { %8230 = vtanh.f32 %v5552_v13  ;;  %v5613_v59 = vpack.c.bf16 %v5597_v0, %v5593_v46  ;;  %v5446_v53 = vmul.f32 0.5, %v10609_v5  ;;  %v5444_v47 = vmul.f32 0.5, %v10602_v2 }
0x1469   : > { %v8209_v19 = vpop.eup %8208  ;;  %v5448_v18 = vmul.f32 0.5, %v10618_v36  ;;  %v5585_v60 = vadd.f32 1.0, %v8205_v17  ;;  %v5615_v6 = vpack.c.bf16 %v5599_v52, %v5595_v38  ;;  %v5445_v5 = vmul.f32 0.5, %v10588_v26 }
0x146a   : > { %v8211_v25 = vpop.eup %8210  ;;  %v5574_v32 = vadd.f32 1.0, %v8209_v19  ;;  %v5581_v12 = vadd.f32 1.0, %v10675_v62  ;;  %v5587_v33 = vadd.f32 1.0, %v8207_v1  ;;  %v5583_v36 = vadd.f32 1.0, %v10677_v57 }
0x146b   : > { %v8213_v43 = vpop.eup %8212  ;;  %v5578_v11 = vadd.f32 1.0, %v8211_v25  ;;  %v5441_v17 = vmul.f32 0.5, %v10565_v56  ;;  %v5443_v26 = vmul.f32 0.5, %v10568_v58  ;;  %v5452_v38 = vmul.f32 0.5, %v10653_v48 }
0x146c   : > { %v8215_v31 = vpop.eup %8214  ;;  %v5576_v27 = vadd.f32 1.0, %v8213_v43  ;;  %v5594_v42 = vmul.f32 %v5574_v32, %v5434_v7  ;;  %v5605_v32 = vmul.f32 %v5585_v60, %v5445_v5  ;;  %v5447_v43 = vmul.f32 0.5, %v10598_v20 }
0x146d   : > { %v8217_v61 = vpop.eup %8216  ;;  %v5598_v24 = vmul.f32 %v5578_v11, %v5438_v34  ;;  %v5580_v22 = vadd.f32 1.0, %v8215_v31  ;;  %v5601_v1 = vmul.f32 %v5581_v12, %v5441_v17  ;;  %v5603_v57 = vmul.f32 %v5583_v36, %v5443_v26 }
0x146e   : > { %v8219_v21 = vpop.eup %8218  ;;  %v5582_v29 = vadd.f32 1.0, %v8217_v61  ;;  %v5596_v55 = vmul.f32 %v5576_v27, %v5436_v44  ;;  %v5607_v11 = vmul.f32 %v5587_v33, %v5447_v43  ;;  %v5450_v44 = vmul.f32 0.5, %v10645_v28 }
0x146f   : > { %v8221_v16 = vpop.eup %8220  ;;  %v5614_v50 = vpack.c.bf16 %v5598_v24, %v5594_v42  ;;  %v5600_v10 = vmul.f32 %v5580_v22, %v5440_v15  ;;  %v5586_v37 = vadd.f32 1.0, %v8219_v21  ;;  %v5617_v56 = vpack.c.bf16 %v5605_v32, %v5601_v1 }
0x1470   : > { %v8223_v63 = vpop.eup %8222  ;;  %v5584_v51 = vadd.f32 1.0, %v8221_v16  ;;  %v5602_v13 = vmul.f32 %v5582_v29, %v5442_v41  ;;  %v5449_v61 = vmul.f32 0.5, %v10624_v49  ;;  %v5619_v52 = vpack.c.bf16 %v5607_v11, %v5603_v57 }
0x1471   : > { %5918 = vmatprep.mubr.bf16.mxu0 %v5614_v50  ;;  %v5616_v39 = vpack.c.bf16 %v5600_v10, %v5596_v55  ;;  %v5606_v19 = vmul.f32 %v5586_v37, %v5446_v53  ;;  %v5588_v45 = vadd.f32 1.0, %v8223_v63  ;;  %v8225_v7 = vpop.eup %8224  ;;  %v5451_v21 = vmul.f32 0.5, %v10631_v40  ;;  %v8250_v53 = vld [vmem:[%s10797_s10 + $0x8] sm:$0x3f] }
0x1472   : > { %5919 = vmatmul.mubr.bf16.vlgmr.msra.gmra.mxu0 %v5613_v59  ;;  %v5604_v0 = vmul.f32 %v5584_v51, %v5444_v47  ;;  %v5589_v20 = vadd.f32 1.0, %v8225_v7  ;;  %v5693_v29 = vrot.slane %v8250_v53, %v3243_v9 }
0x1473   : > { %5974 = vmatprep.mubr.bf16.mxu1 %v5616_v39  ;;  %v5618_v25 = vpack.c.bf16 %v5606_v19, %v5602_v13  ;;  %v5608_v2 = vmul.f32 %v5588_v45, %v5448_v18  ;;  %v8227_v23 = vpop.eup %8226 }
0x1474   : > { %5975 = vmatmul.mubr.bf16.vlgmr.msra.gmra.mxu1 %v5615_v6  ;;  %v8229_v62 = vpop.eup %8228  ;;  %v5590_v31 = vadd.f32 1.0, %v8227_v23  ;;  %v5609_v22 = vmul.f32 %v5589_v20, %v5449_v61 }
0x1475   : > { %5926 = vmatprep.mubr.bf16.mxu0 %v5618_v25  ;;  %v5620_v34 = vpack.c.bf16 %v5608_v2, %v5604_v0  ;;  %v8231_v46 = vpop.eup %8230  ;;  %v5591_v24 = vadd.f32 1.0, %v8229_v62 }
0x1476   : > { %v5610_v15 = vmul.f32 %v5590_v31, %v5450_v44  ;;  %v5592_v27 = vadd.f32 1.0, %v8231_v46  ;;  %v5621_v48 = vpack.c.bf16 %v5609_v22, %v5609_v22 }
0x1477   : > { %5982 = vmatprep.mubr.bf16.mxu1 %v5620_v34  ;;  %v5611_v59 = vmul.f32 %v5591_v24, %v5451_v21 }
0x1478   : > { %v5622_v58 = vpack.c.bf16 %v5610_v15, %v5610_v15  ;;  %v5612_v42 = vmul.f32 %v5592_v27, %v5452_v38 }
0x1479   : > { %v5623_v41 = vpack.c.bf16 %v5611_v59, %v5611_v59 }
0x147a   : > { %5927 = vmatmul.mubr.bf16.gmra.mxu0 %v5617_v56  ;;  %v5624_v28 = vpack.c.bf16 %v5612_v42, %v5612_v42 }
0x147b   : > { %5934 = vmatprep.mubr.bf16.mxu0 %v5622_v58 }
0x147c   : > { %5983 = vmatmul.mubr.bf16.gmra.mxu1 %v5619_v52 }
0x147d   : > { %5990 = vmatprep.mubr.bf16.mxu1 %v5624_v28 }
0x1482   : > { %5935 = vmatmul.mubr.bf16.gmra.mxu0 %v5621_v48 }
0x1483   : > { %7545 = vmatprep.mubr.msk.bf16.mxu0 %vm8261_vm0, %v8259_v14 }
0x1484   : > { %5991 = vmatmul.mubr.bf16.gmra.mxu1 %v5623_v41 }
0x1532   : > { %v7066_v49 = vpop.f32.mrf.mxu0 }
0x1534   : > { %v7100_v16 = vpop.f32.mrf.mxu1  ;;  %v7067_v50 = vpop.f32.mrf.mxu0 }
0x1535   : > { %v7068_v40 = vadd.f32 %v7067_v50, %v7066_v49 }
0x1536   : > { %v7101_v55 = vpop.f32.mrf.mxu1  ;;  %v7069_v10 = vpop.f32.mrf.mxu0 }
0x1537   : > { %v5921_v37 = vadd.f32 %v7068_v40, %v5693_v29  ;;  %v7102_v63 = vadd.f32 %v7101_v55, %v7100_v16 }
0x1538   : > { %v7103_v47 = vpop.f32.mrf.mxu1  ;;  %v7070_v18 = vpop.f32.mrf.mxu0 }
0x1539   : > { %v5977_v51 = vadd.f32 %v7102_v63, %v5921_v37  ;;  %v7071_v60 = vadd.f32 %v7070_v18, %v7069_v10  ;;  %v7945_v63 = vld [vmem:[%s10799_s12 + $0x30] sm:$0xff]   ;;  %v7947_v18 = vld [vmem:[%s10799_s12 + $0x20] sm:$0xff]  }
0x153a   : > { %v7104_v39 = vpop.f32.mrf.mxu1  ;;  %v7072_v13 = vpop.f32.mrf.mxu0 }
0x153b   : > { %v5924_v19 = vadd.f32 %v7071_v60, %v5693_v29  ;;  %v7105_v45 = vadd.f32 %v7104_v39, %v7103_v47  ;;  %v5998_v6 = vadd.f32 %v5977_v51, %v10270_v3  ;;  %v7946_v47 = vld [vmem:[%s10799_s12 + $0x28] sm:$0xff]   ;;  %v7948_v51 = vld [vmem:[%s10799_s12 + $0x18] sm:$0xff]   ;;  %v7949_v60 = vld [vmem:[%s10799_s12 + $0x10] sm:$0xff]  }
0x153c   : > { %v7106_v5 = vpop.f32.mrf.mxu1  ;;  %v7073_v8 = vpop.f32.mrf.mxu0  ;;  %v7950_v39 = vld [vmem:[%s10799_s12 + $0x8] sm:$0xff]  }
0x153d   : > { %v5980_v9 = vadd.f32 %v7105_v45, %v5924_v19  ;;  %v7074_v12 = vadd.f32 %v7073_v8, %v7072_v13  ;;  %6005 = vadd.xlane.f32.xlu1 %v5998_v6  ;;  %v7951_v13 = vld [vmem:[%s10799_s12] sm:$0xff]  }
0x153e   : > { %v7107_v33 = vpop.f32.mrf.mxu1  ;;  %v7075_v25 = vpop.f32.mrf.mxu0 }
0x153f   : > { %v5929_v0 = vadd.f32 %v7074_v12, %v5693_v29  ;;  %v7108_v2 = vadd.f32 %v7107_v33, %v7106_v5  ;;  %v5999_v36 = vadd.f32 %v5980_v9, %v10274_v4 }
0x1540   : > { %v7109_v7 = vpop.f32.mrf.mxu1  ;;  %v7076_v17 = vpop.f32.mrf.mxu0 }
0x1541   : > { %v5985_v32 = vadd.f32 %v7108_v2, %v5929_v0  ;;  %v7077_v43 = vadd.f32 %v7076_v17, %v7075_v25  ;;  %6007 = vadd.xlane.f32.xlu0 %v5999_v36 }
0x1542   : > { %v7110_v23 = vpop.f32.mrf.mxu1  ;;  %v7078_v34 = vpop.f32.mrf.mxu0 }
0x1543   : > { %v5932_v26 = vadd.f32 %v7077_v43, %v5693_v29  ;;  %v7111_v3 = vadd.f32 %v7110_v23, %v7109_v7  ;;  %v6000_v62 = vadd.f32 %v5985_v32, %v10278_v54  ;;  %v7944_v54 = vld [vmem:[%s10799_s12 + $0x38] sm:$0xff]  }
0x1544   : > { %v7112_v1 = vpop.f32.mrf.mxu1  ;;  %v7079_v11 = vpop.f32.mrf.mxu0  ;;  %7530 = vmatpush3.bf16.msra.mxu0 %v7944_v54 }
0x1545   : > { %v5988_v44 = vadd.f32 %v7111_v3, %v5932_v26  ;;  %v7080_v31 = vadd.f32 %v7079_v11, %v7078_v34  ;;  %6009 = vadd.xlane.f32.xlu1 %v6000_v62  ;;  %7531 = vmatprep.subr.bf16.mxu0 %v8259_v14  ;;  %v6727_v34 = vld [vmem:[%s10798_s11] ss:$0 sm:$0xff] }
0x1546   : > { %v7113_v46 = vpop.f32.mrf.mxu1  ;;  %v7081_v57 = vpop.f32.mrf.mxu0 }
0x1547   : > { %v5937_v38 = vadd.f32 %v7080_v31, %v5693_v29  ;;  %v7114_v4 = vadd.f32 %v7113_v46, %v7112_v1  ;;  %v6001_v56 = vadd.f32 %v5988_v44, %v10282_v30  ;;  %v6728_v1 = vld [vmem:[%s10798_s11 + $0x1] ss:$0 sm:$0xff] }
0x1548   : > { %v7115_v15 = vpop.f32.mrf.mxu1  ;;  %v7082_v27 = vpop.f32.mrf.mxu0  ;;  %7532 = vmatpush3.bf16.msra.mxu0 %v7945_v63 }
0x1549   : > { %v5993_v20 = vadd.f32 %v7114_v4, %v5937_v38  ;;  %6011 = vadd.xlane.f32.xlu0 %v6001_v56  ;;  %7533 = vmatprep.subr.bf16.mxu0 %v8259_v14 }
0x154a   : > { %v7116_v61 = vpop.f32.mrf.mxu1 }
0x154b   : > { %v6002_v52 = vadd.f32 %v5993_v20, %v10286_v35 }
0x154c   : > { %7534 = vmatpush3.bf16.msra.mxu0 %v7946_v47 }
0x154d   : > { %6013 = vadd.xlane.f32.xlu1 %v6002_v52  ;;  %7535 = vmatprep.subr.bf16.mxu0 %v8259_v14 }
0x1550   : > { %7536 = vmatpush3.bf16.msra.mxu0 %v7947_v18 }
0x1551   : > { %7537 = vmatprep.subr.bf16.mxu0 %v8259_v14 }
0x1554   : > { %7538 = vmatpush3.bf16.msra.mxu0 %v7948_v51 }
0x1555   : > { %7539 = vmatprep.subr.bf16.mxu0 %v8259_v14 }
0x1558   : > { %7540 = vmatpush3.bf16.msra.mxu0 %v7949_v60 }
0x1559   : > { %7541 = vmatprep.subr.bf16.mxu0 %v8259_v14 }
0x155c   : > { %7542 = vmatpush3.bf16.msra.mxu0 %v7950_v39 }
0x155d   : > { %7543 = vmatprep.subr.bf16.mxu0 %v8259_v14 }
0x1560   : > { %7544 = vmatpush3.bf16.msra.mxu0 %v7951_v13 }
0x15c6   : > { %v6006_v58 = vpop.xlane.xlu1 %6005 }
0x15c7   : > { %v6015_v42 = vmul.f32 0.0078125, %v6006_v58 }
0x15c9   : > { %v6020_v24 = vsub.f32 %v5998_v6, %v6015_v42 }
0x15ca   : > { %v6008_v28 = vpop.xlane.xlu0 %6007 }
0x15cb   : > { %v6016_v30 = vmul.f32 0.0078125, %v6008_v28  ;;  %v6025_v22 = vmul.f32 %v6020_v24, %v6020_v24 }
0x15cd   : > { %v10720_v21 = vsub.f32 %v5999_v36, %v6016_v30  ;;  %6030 = vadd.xlane.f32.xlu0 %v6025_v22  ;;  %v6729_v30 = vld [vmem:[%s10798_s11 + $0x2] ss:$0 sm:$0xff] }
0x15ce   : > { %v6010_v59 = vpop.xlane.xlu1 %6009 }
0x15cf   : > { %v6017_v48 = vmul.f32 0.0078125, %v6010_v59  ;;  %v6026_v35 = vmul.f32 %v10720_v21, %v10720_v21 }
0x15d1   : > { %v10724_v41 = vsub.f32 %v6000_v62, %v6017_v48  ;;  %6032 = vadd.xlane.f32.xlu1 %v6026_v35 }
0x15d2   : > { %v6012_v49 = vpop.xlane.xlu0 %6011 }
0x15d3   : > { %v6018_v53 = vmul.f32 0.0078125, %v6012_v49  ;;  %v6027_v29 = vmul.f32 %v10724_v41, %v10724_v41 }
0x15d5   : > { %v10728_v16 = vsub.f32 %v6001_v56, %v6018_v53  ;;  %6034 = vadd.xlane.f32.xlu0 %v6027_v29 }
0x15d6   : > { %v6014_v50 = vpop.xlane.xlu1 %6013 }
0x15d7   : > { %v6019_v40 = vmul.f32 0.0078125, %v6014_v50  ;;  %v6028_v55 = vmul.f32 %v10728_v16, %v10728_v16 }
0x15d9   : > { %v10732_v10 = vsub.f32 %v6002_v52, %v6019_v40  ;;  %6036 = vadd.xlane.f32.xlu1 %v6028_v55 }
0x15db   : > { %v6029_v37 = vmul.f32 %v10732_v10, %v10732_v10 }
0x15dd   : > { %6038 = vadd.xlane.f32.xlu0 %v6029_v37 }
0x1656   : > { %v6031_v19 = vpop.xlane.xlu0 %6030 }
0x1657   : > { %v6040_v45 = vmul.f32 0.0078125, %v6031_v19 }
0x1659   : > { %v6045_v6 = vadd.f32 1e-06, %v6040_v45 }
0x165a   : > { %v6033_v5 = vpop.xlane.xlu1 %6032 }
0x165b   : > { %8232 = vrsqrt.f32 %v6045_v6  ;;  %v6041_v8 = vmul.f32 0.0078125, %v6033_v5 }
0x165d   : > { %v6046_v9 = vadd.f32 1e-06, %v6041_v8 }
0x165e   : > { %v6035_v12 = vpop.xlane.xlu0 %6034 }
0x165f   : > { %8234 = vrsqrt.f32 %v6046_v9  ;;  %v6042_v33 = vmul.f32 0.0078125, %v6035_v12 }
0x1661   : > { %v6047_v25 = vadd.f32 1e-06, %v6042_v33 }
0x1662   : > { %v6037_v0 = vpop.xlane.xlu1 %6036 }
0x1663   : > { %8236 = vrsqrt.f32 %v6047_v25  ;;  %v6043_v2 = vmul.f32 0.0078125, %v6037_v0 }
0x1665   : > { %v6048_v36 = vadd.f32 1e-06, %v6043_v2 }
0x1666   : > { %v6039_v7 = vpop.xlane.xlu0 %6038 }
0x1667   : > { %8238 = vrsqrt.f32 %v6048_v36  ;;  %v6044_v17 = vmul.f32 0.0078125, %v6039_v7 }
0x1668   : > { %v8233_v32 = vpop.eup %8232 }
0x1669   : > { %v6055_v43 = vmul.f32 %v8233_v32, %v6020_v24  ;;  %v6049_v23 = vadd.f32 1e-06, %v6044_v17 }
0x166b   : > { %8240 = vrsqrt.f32 %v6049_v23  ;;  %v6064_v3 = vmul.f32 %v6727_v34, %v6055_v43 }
0x166c   : > { %v8235_v26 = vpop.eup %8234 }
0x166d   : > { %v6056_v62 = vmul.f32 %v8235_v26, %v10720_v21  ;;  %v6073_v31 = vadd.f32 %v6728_v1, %v6064_v3 }
0x166f   : > { %v6065_v11 = vmul.f32 %v6727_v34, %v6056_v62 }
0x1670   : > { %v8237_v44 = vpop.eup %8236 }
0x1671   : > { %v6074_v46 = vadd.f32 %v6728_v1, %v6065_v11  ;;  %v6057_v57 = vmul.f32 %v8237_v44, %v10724_v41 }
0x1673   : > { %v6078_v38 = vpack.c.bf16 %v6074_v46, %v6073_v31  ;;  %v6066_v15 = vmul.f32 %v6727_v34, %v6057_v57 }
0x1674   : > { %v8239_v4 = vpop.eup %8238 }
0x1675   : > { %7546 = vmatmul.mubr.bf16.vlgmr.msra.gmra.mxu0 %v6078_v38  ;;  %v6058_v56 = vmul.f32 %v8239_v4, %v10728_v16  ;;  %v6075_v61 = vadd.f32 %v6728_v1, %v6066_v15 }
0x1676   : > { %7549 = vmatprep.mubr.msk.bf16.mxu0 %vm8261_vm0, %v8259_v14 }
0x1677   : > { %v6067_v27 = vmul.f32 %v6727_v34, %v6058_v56 }
0x1678   : > { %v8241_v20 = vpop.eup %8240 }
0x1679   : > { %v6076_v52 = vadd.f32 %v6728_v1, %v6067_v27  ;;  %v6059_v54 = vmul.f32 %v8241_v20, %v10732_v10 }
0x167b   : > { %v6079_v58 = vpack.c.bf16 %v6076_v52, %v6075_v61  ;;  %v6068_v42 = vmul.f32 %v6727_v34, %v6059_v54 }
0x167d   : > { %7550 = vmatmul.mubr.bf16.gmra.mxu0 %v6079_v58  ;;  %v6077_v24 = vadd.f32 %v6728_v1, %v6068_v42 }
0x167e   : > { %7553 = vmatprep.mubr.msk.bf16.mxu0 %vm8261_vm0, %v8259_v14 }
0x167f   : > { %v6080_v28 = vpack.c.bf16 %v6077_v24, %v6077_v24 }
0x1685   : > { %7554 = vmatmul.mubr.bf16.gmra.mxu0 %v6080_v28 }
0x1735   : > { %v6184_v22 = vpop.f32.mrf.mxu0 }
0x1736   : > { %v6185_v21 = vadd.f32 %v6729_v30, %v6184_v22 }
0x1737   : > { %v7547_v59 = vpop.f32.mrf.mxu0 }
0x1738   : > { %6206 = vst [vmem:[%s445_s15] sm:$0xff] %v6185_v21 }
0x1739   : > { %v6187_v48 = vpop.f32.mrf.mxu0 }
0x173a   : > { %v6188_v35 = vadd.f32 %v6729_v30, %v6187_v48 }
0x173b   : > { %v7548_v41 = vpop.f32.mrf.mxu0 }
0x173c   : > { %6207 = vst [vmem:[%s445_s15 + $0x8] sm:$0xff] %v6188_v35 }
0x173d   : > { %v6192_v14 = vpop.f32.mrf.mxu0 }
0x173e   : > { %v6193_v49 = vadd.f32 %v6729_v30, %v6192_v14 }
0x173f   : > { %v7551_v53 = vpop.f32.mrf.mxu0 }
0x1740   : > { %6208 = vst [vmem:[%s445_s15 + $0x10] sm:$0xff] %v6193_v49 }
0x1741   : > { %v6195_v29 = vpop.f32.mrf.mxu0 }
0x1742   : > { %v6196_v16 = vadd.f32 %v6729_v30, %v6195_v29 }
0x1743   : > { %v7552_v50 = vpop.f32.mrf.mxu0 }
0x1744   : > { %6209 = vst [vmem:[%s445_s15 + $0x18] sm:$0xff] %v6196_v16 }
0x1745   : > { %v6200_v40 = vpop.f32.mrf.mxu0 }
0x1746   : > { %v6201_v55 = vadd.f32 %v6729_v30, %v6200_v40 }
0x1747   : > { %v7555_v10 = vpop.f32.mrf.mxu0 }
0x1748   : > { %6210 = vst [vmem:[%s445_s15 + $0x20] sm:$0xff] %v6201_v55 }
0x1749   : > { %v6203_v37 = vpop.f32.mrf.mxu0 }
0x174b   : > { %v7556_v63 = vpop.f32.mrf.mxu0 }
0x174c PF: > { %s23_s25 = sadd.s32 1, %s8257_s25  }
0x174d   : > { %p20_p4 = scmp.ge.s32.totalorder %s23_s25, 4  }
0x174f   :  { %22 = sbr.rel (!%p20_p4) target bundleno = 1 (0x1), region = 109 }

</bundles_post_ra>
